<compile_context>
chip_gen: v5e
topology: v5e:2x2
jax: 0.10.0
libtpu: 0.0.40
codegen_flags: <defaults>
</compile_context>

<pallas_src>
import jax
import jax.numpy as jnp
from jax.experimental import pallas as pl
from jax.experimental.pallas import tpu as pltpu

K_IN = 784          # 28*28 flattened MNIST image
K_PAD = 896         # padded to a multiple of 128 lanes
H1, H2, H3 = 1024, 512, 256


def discriminator_kernel(x_ref,
                         w1_ref, b1_ref,
                         w2_ref, b2_ref,
                         w3_ref, b3_ref,
                         w4_ref, b4_ref,
                         out_ref):
    # Layer 1: Linear(784->1024) + ReLU   (Dropout = identity in eval).
    # bf16 operands, f32 accumulation on the MXU; bias add + ReLU in f32.
    h = jnp.dot(x_ref[...], w1_ref[...], preferred_element_type=jnp.float32)
    h = jnp.maximum(h + b1_ref[...], 0.0)

    # Layer 2: Linear(1024->512) + ReLU
    h = jnp.dot(h.astype(jnp.bfloat16), w2_ref[...], preferred_element_type=jnp.float32)
    h = jnp.maximum(h + b2_ref[...], 0.0)

    # Layer 3: Linear(512->256) + ReLU
    h = jnp.dot(h.astype(jnp.bfloat16), w3_ref[...], preferred_element_type=jnp.float32)
    h = jnp.maximum(h + b3_ref[...], 0.0)

    # Layer 4: Linear(256->1) + Sigmoid.
    # N=1 matmul would light up 1 of 256 MXU lanes, so do it as a VPU multiply + lane
    # reduction in f32 instead.
    logits = jnp.sum(h * w4_ref[...], axis=-1, keepdims=True) + b4_ref[...]
    # exp goes to the EUP; saturates correctly (IEEE inf) for very negative logits.
    out_ref[...] = 1.0 / (1.0 + jnp.exp(-logits))


def _round_up(n, m):
    return ((n + m - 1) // m) * m


@jax.jit
def discriminator_forward(x, params):
    """x: (B, 1, 28, 28) or (B, 784) float32. Returns (B, 1) float32 in [0, 1]."""
    B = x.shape[0]
    x2d = x.reshape(B, K_IN).astype(jnp.float32)

    (w1, b1), (w2, b2), (w3, b3), (w4, b4) = params

    # Batch tile: multiples of 256 feed the 256x256 MXU fully on v6e/v7x and keep the
    # per-step footprint well under the scoped-VMEM limit; tiny batches round up to the
    # 8-row sublane granule.
    if B >= 512:
        tile_b = 512
    elif B >= 256:
        tile_b = 256
    else:
        tile_b = _round_up(B, 8)
    b_pad = _round_up(B, tile_b)

    # Host-side layout prep (fused by XLA, negligible): zero-pad features 784->896 and batch
    # to a multiple of tile_b; cast x / big weights to bf16; keep biases + tiny layer-4
    # weight row in f32.
    x_pad = jnp.zeros((b_pad, K_PAD), jnp.bfloat16)
    x_pad = x_pad.at[:B, :K_IN].set(x2d.astype(jnp.bfloat16))

    w1p = jnp.zeros((K_PAD, H1), jnp.bfloat16).at[:K_IN, :].set(w1.astype(jnp.bfloat16))
    w2c = w2.astype(jnp.bfloat16)
    w3c = w3.astype(jnp.bfloat16)
    w4_row = w4.reshape(1, H3).astype(jnp.float32)          # (256, 1) -> (1, 256)
    b1c = b1.reshape(1, H1).astype(jnp.float32)
    b2c = b2.reshape(1, H2).astype(jnp.float32)
    b3c = b3.reshape(1, H3).astype(jnp.float32)
    b4c = b4.reshape(1, 1).astype(jnp.float32)

    resident = lambda i: (0, 0)   # same block every grid step -> DMA'd once, stays in VMEM

    flops = 2 * b_pad * (K_PAD * H1 + H1 * H2 + H2 * H3 + H3)
    bytes_accessed = (x_pad.size * 2
                      + (w1p.size + w2c.size + w3c.size) * 2
                      + (b1c.size + b2c.size + b3c.size + b4c.size + w4_row.size) * 4
                      + b_pad * 4)

    out = pl.pallas_call(
        discriminator_kernel,
        out_shape=jax.ShapeDtypeStruct((b_pad, 1), jnp.float32),
        grid_spec=pltpu.PrefetchScalarGridSpec(
            num_scalar_prefetch=0,
            grid=(b_pad // tile_b,),
            in_specs=[
                pl.BlockSpec((tile_b, K_PAD), lambda i: (i, 0)),   # x tile (pipelined)
                pl.BlockSpec((K_PAD, H1), resident),               # w1
                pl.BlockSpec((1, H1), resident),                   # b1
                pl.BlockSpec((H1, H2), resident),                  # w2
                pl.BlockSpec((1, H2), resident),                   # b2
                pl.BlockSpec((H2, H3), resident),                  # w3
                pl.BlockSpec((1, H3), resident),                   # b3
                pl.BlockSpec((1, H3), resident),                   # w4 row
                pl.BlockSpec((1, 1), resident),                    # b4
            ],
            out_specs=pl.BlockSpec((tile_b, 1), lambda i: (i, 0)),
        ),
        compiler_params=pltpu.CompilerParams(
            dimension_semantics=("parallel",),       # shard batch across v7x's 2 TCs
            vmem_limit_bytes=32 * 1024 * 1024,       # explicit; fits v5e/v6e/v7x
        ),
        cost_estimate=pl.CostEstimate(
            flops=flops, transcendentals=b_pad, bytes_accessed=bytes_accessed),
    )(x_pad, w1p, b1c, w2c, b2c, w3c, b3c, w4_row, b4c)

    # Padded tail rows (if any) are independent junk; slice them off.
    return out[:B]


def init_params(key):
    """Deterministic PyTorch-style (uniform +-1/sqrt(fan_in)) init, weights as (in, out) f32."""
    dims = [(K_IN, H1), (H1, H2), (H2, H3), (H3, 1)]
    params = []
    for (fan_in, fan_out) in dims:
        key, kw, kb = jax.random.split(key, 3)
        bound = 1.0 / (fan_in ** 0.5)
        w = jax.random.uniform(kw, (fan_in, fan_out), jnp.float32, -bound, bound)
        b = jax.random.uniform(kb, (1, fan_out), jnp.float32, -bound, bound)
        params.append((w, b))
    return params


def reference_forward(x, params):
    """Plain-JAX reference mimicking the kernel's bf16-operand / f32-accumulate math."""
    B = x.shape[0]
    (w1, b1), (w2, b2), (w3, b3), (w4, b4) = params
    h = x.reshape(B, K_IN).astype(jnp.float32)

    def layer(h, w, b):
        acc = jnp.dot(h.astype(jnp.bfloat16), w.astype(jnp.bfloat16),
                      preferred_element_type=jnp.float32)
        return jnp.maximum(acc + b, 0.0)

    h = layer(h, w1, b1)
    h = layer(h, w2, b2)
    h = layer(h, w3, b3)
    logits = jnp.sum(h * w4.reshape(1, -1), axis=-1, keepdims=True) + b4.reshape(1, 1)
    return 1.0 / (1.0 + jnp.exp(-logits))


if __name__ == "__main__":
    key = jax.random.PRNGKey(0)
    key, kx = jax.random.split(key)

    # MNIST-shaped input: batch=2, NCHW (2, 1, 28, 28) -> flattened to (2, 784).
    x = jax.random.normal(kx, (2, 1, 28, 28), jnp.float32)
    params = init_params(key)

    out = jax.block_until_ready(discriminator_forward(x, params))
    ref = reference_forward(x, params)

    assert out.shape == (2, 1), out.shape
    assert bool(jnp.all(jnp.isfinite(out))), out
    assert jnp.allclose(out, ref, atol=2e-4, rtol=1e-3), (out, ref)

    print("KERNEL_OK")
</pallas_src>

<mosaic_0001>
module attributes {stable_mosaic.version = 11 : i64} {
  func.func @discriminator_kernel(%arg0: i32, %arg1: memref<8x896xbf16, #tpu.memory_space<vmem>>, %arg2: memref<896x1024xbf16, #tpu.memory_space<vmem>>, %arg3: memref<1x1024xf32, #tpu.memory_space<vmem>>, %arg4: memref<1024x512xbf16, #tpu.memory_space<vmem>>, %arg5: memref<1x512xf32, #tpu.memory_space<vmem>>, %arg6: memref<512x256xbf16, #tpu.memory_space<vmem>>, %arg7: memref<1x256xf32, #tpu.memory_space<vmem>>, %arg8: memref<1x256xf32, #tpu.memory_space<vmem>>, %arg9: memref<1x1xf32, #tpu.memory_space<vmem>>, %arg10: memref<8x1xf32, #tpu.memory_space<vmem>>) attributes {dimension_semantics = [#tpu.dimension_semantics<parallel>], iteration_bounds = array<i64: 1>, scalar_prefetch = 0 : i64, scratch_operands = 0 : i64, tpu.core_type = #tpu.core_type<tc>, window_params = [{transform_indices = @transform_0, window_bounds = array<i64: 8, 896>}, {pipeline_mode = #tpu.pipeline_mode<synchronous>, transform_indices = @transform_1, window_bounds = array<i64: 896, 1024>}, {pipeline_mode = #tpu.pipeline_mode<synchronous>, transform_indices = @transform_2, window_bounds = array<i64: 1, 1024>}, {pipeline_mode = #tpu.pipeline_mode<synchronous>, transform_indices = @transform_3, window_bounds = array<i64: 1024, 512>}, {pipeline_mode = #tpu.pipeline_mode<synchronous>, transform_indices = @transform_4, window_bounds = array<i64: 1, 512>}, {pipeline_mode = #tpu.pipeline_mode<synchronous>, transform_indices = @transform_5, window_bounds = array<i64: 512, 256>}, {pipeline_mode = #tpu.pipeline_mode<synchronous>, transform_indices = @transform_6, window_bounds = array<i64: 1, 256>}, {pipeline_mode = #tpu.pipeline_mode<synchronous>, transform_indices = @transform_7, window_bounds = array<i64: 1, 256>}, {pipeline_mode = #tpu.pipeline_mode<synchronous>, transform_indices = @transform_8, window_bounds = array<i64: 1, 1>}, {transform_indices = @transform_9, window_bounds = array<i64: 8, 1>}]} {
    %c0 = arith.constant 0 : index
    %c0_0 = arith.constant 0 : index
    %0 = vector.load %arg1[%c0, %c0_0] : memref<8x896xbf16, #tpu.memory_space<vmem>>, vector<8x896xbf16>
    %c0_1 = arith.constant 0 : index
    %c0_2 = arith.constant 0 : index
    %1 = vector.load %arg2[%c0_1, %c0_2] : memref<896x1024xbf16, #tpu.memory_space<vmem>>, vector<896x1024xbf16>
    %cst = arith.constant dense<0.000000e+00> : vector<8x1024xf32>
    %2 = tpu.matmul %0, %1, %cst {dimension_numbers = #tpu.dot_dimension_numbers<[1], [0], [0], [1], [0, 0, 1, 1], [], []>} : vector<8x896xbf16>, vector<896x1024xbf16>, vector<8x1024xf32> -> vector<8x1024xf32>
    %c0_3 = arith.constant 0 : index
    %c0_4 = arith.constant 0 : index
    %3 = vector.load %arg3[%c0_3, %c0_4] : memref<1x1024xf32, #tpu.memory_space<vmem>>, vector<1x1024xf32>
    %4 = vector.broadcast %3 : vector<1x1024xf32> to vector<8x1024xf32>
    %5 = arith.addf %2, %4 : vector<8x1024xf32>
    %cst_5 = arith.constant 0.000000e+00 : f32
    %6 = vector.broadcast %cst_5 : f32 to vector<8x1024xf32>
    %7 = arith.maximumf %5, %6 : vector<8x1024xf32>
    %8 = arith.truncf %7 : vector<8x1024xf32> to vector<8x1024xbf16>
    %c0_6 = arith.constant 0 : index
    %c0_7 = arith.constant 0 : index
    %9 = vector.load %arg4[%c0_6, %c0_7] : memref<1024x512xbf16, #tpu.memory_space<vmem>>, vector<1024x512xbf16>
    %cst_8 = arith.constant dense<0.000000e+00> : vector<8x512xf32>
    %10 = tpu.matmul %8, %9, %cst_8 {dimension_numbers = #tpu.dot_dimension_numbers<[1], [0], [0], [1], [0, 0, 1, 1], [], []>} : vector<8x1024xbf16>, vector<1024x512xbf16>, vector<8x512xf32> -> vector<8x512xf32>
    %c0_9 = arith.constant 0 : index
    %c0_10 = arith.constant 0 : index
    %11 = vector.load %arg5[%c0_9, %c0_10] : memref<1x512xf32, #tpu.memory_space<vmem>>, vector<1x512xf32>
    %12 = vector.broadcast %11 : vector<1x512xf32> to vector<8x512xf32>
    %13 = arith.addf %10, %12 : vector<8x512xf32>
    %cst_11 = arith.constant 0.000000e+00 : f32
    %14 = vector.broadcast %cst_11 : f32 to vector<8x512xf32>
    %15 = arith.maximumf %13, %14 : vector<8x512xf32>
    %16 = arith.truncf %15 : vector<8x512xf32> to vector<8x512xbf16>
    %c0_12 = arith.constant 0 : index
    %c0_13 = arith.constant 0 : index
    %17 = vector.load %arg6[%c0_12, %c0_13] : memref<512x256xbf16, #tpu.memory_space<vmem>>, vector<512x256xbf16>
    %cst_14 = arith.constant dense<0.000000e+00> : vector<8x256xf32>
    %18 = tpu.matmul %16, %17, %cst_14 {dimension_numbers = #tpu.dot_dimension_numbers<[1], [0], [0], [1], [0, 0, 1, 1], [], []>} : vector<8x512xbf16>, vector<512x256xbf16>, vector<8x256xf32> -> vector<8x256xf32>
    %c0_15 = arith.constant 0 : index
    %c0_16 = arith.constant 0 : index
    %19 = vector.load %arg7[%c0_15, %c0_16] : memref<1x256xf32, #tpu.memory_space<vmem>>, vector<1x256xf32>
    %20 = vector.broadcast %19 : vector<1x256xf32> to vector<8x256xf32>
    %21 = arith.addf %18, %20 : vector<8x256xf32>
    %cst_17 = arith.constant 0.000000e+00 : f32
    %22 = vector.broadcast %cst_17 : f32 to vector<8x256xf32>
    %23 = arith.maximumf %21, %22 : vector<8x256xf32>
    %c0_18 = arith.constant 0 : index
    %c0_19 = arith.constant 0 : index
    %24 = vector.load %arg8[%c0_18, %c0_19] : memref<1x256xf32, #tpu.memory_space<vmem>>, vector<1x256xf32>
    %25 = vector.broadcast %24 : vector<1x256xf32> to vector<8x256xf32>
    %26 = arith.mulf %23, %25 : vector<8x256xf32>
    %cst_20 = arith.constant dense<0.000000e+00> : vector<8xf32>
    %27 = vector.multi_reduction <add>, %26, %cst_20 [1] : vector<8x256xf32> to vector<8xf32>
    %28 = vector.shape_cast %27 : vector<8xf32> to vector<8x1xf32>
    %c0_21 = arith.constant 0 : index
    %c0_22 = arith.constant 0 : index
    %29 = vector.load %arg9[%c0_21, %c0_22] : memref<1x1xf32, #tpu.memory_space<vmem>>, vector<1x1xf32>
    %30 = vector.broadcast %29 : vector<1x1xf32> to vector<8x1xf32>
    %31 = arith.addf %28, %30 : vector<8x1xf32>
    %cst_23 = arith.constant 0.000000e+00 : f32
    %32 = vector.broadcast %cst_23 : f32 to vector<8x1xf32>
    %33 = arith.subf %32, %31 : vector<8x1xf32>
    %34 = math.exp %33 : vector<8x1xf32>
    %cst_24 = arith.constant 1.000000e+00 : f32
    %35 = vector.broadcast %cst_24 : f32 to vector<8x1xf32>
    %36 = arith.addf %35, %34 : vector<8x1xf32>
    %cst_25 = arith.constant 1.000000e+00 : f32
    %37 = vector.broadcast %cst_25 : f32 to vector<8x1xf32>
    %38 = arith.divf %37, %36 : vector<8x1xf32>
    %c0_26 = arith.constant 0 : index
    %c0_27 = arith.constant 0 : index
    %39 = vector.load %arg10[%c0_26, %c0_27] : memref<8x1xf32, #tpu.memory_space<vmem>>, vector<8x1xf32>
    tpu.vector_store %arg10[%c0_26, %c0_27], %38 {strides = array<i32>} : memref<8x1xf32, #tpu.memory_space<vmem>>, vector<8x1xf32>,
    return
  }
  func.func @transform_0(%arg0: i32) -> (i32, i32) {
    %c0_i32 = arith.constant 0 : i32
    %c0_i32_0 = arith.constant 0 : i32
    return %arg0, %c0_i32 : i32, i32
  }
  func.func @transform_1(%arg0: i32) -> (i32, i32) {
    %c0_i32 = arith.constant 0 : i32
    %c0_i32_0 = arith.constant 0 : i32
    %c0_i32_1 = arith.constant 0 : i32
    return %c0_i32, %c0_i32_0 : i32, i32
  }
  func.func @transform_2(%arg0: i32) -> (i32, i32) {
    %c0_i32 = arith.constant 0 : i32
    %c0_i32_0 = arith.constant 0 : i32
    %c0_i32_1 = arith.constant 0 : i32
    return %c0_i32, %c0_i32_0 : i32, i32
  }
  func.func @transform_3(%arg0: i32) -> (i32, i32) {
    %c0_i32 = arith.constant 0 : i32
    %c0_i32_0 = arith.constant 0 : i32
    %c0_i32_1 = arith.constant 0 : i32
    return %c0_i32, %c0_i32_0 : i32, i32
  }
  func.func @transform_4(%arg0: i32) -> (i32, i32) {
    %c0_i32 = arith.constant 0 : i32
    %c0_i32_0 = arith.constant 0 : i32
    %c0_i32_1 = arith.constant 0 : i32
    return %c0_i32, %c0_i32_0 : i32, i32
  }
  func.func @transform_5(%arg0: i32) -> (i32, i32) {
    %c0_i32 = arith.constant 0 : i32
    %c0_i32_0 = arith.constant 0 : i32
    %c0_i32_1 = arith.constant 0 : i32
    return %c0_i32, %c0_i32_0 : i32, i32
  }
  func.func @transform_6(%arg0: i32) -> (i32, i32) {
    %c0_i32 = arith.constant 0 : i32
    %c0_i32_0 = arith.constant 0 : i32
    %c0_i32_1 = arith.constant 0 : i32
    return %c0_i32, %c0_i32_0 : i32, i32
  }
  func.func @transform_7(%arg0: i32) -> (i32, i32) {
    %c0_i32 = arith.constant 0 : i32
    %c0_i32_0 = arith.constant 0 : i32
    %c0_i32_1 = arith.constant 0 : i32
    return %c0_i32, %c0_i32_0 : i32, i32
  }
  func.func @transform_8(%arg0: i32) -> (i32, i32) {
    %c0_i32 = arith.constant 0 : i32
    %c0_i32_0 = arith.constant 0 : i32
    %c0_i32_1 = arith.constant 0 : i32
    return %c0_i32, %c0_i32_0 : i32, i32
  }
  func.func @transform_9(%arg0: i32) -> (i32, i32) {
    %c0_i32 = arith.constant 0 : i32
    %c0_i32_0 = arith.constant 0 : i32
    return %arg0, %c0_i32 : i32, i32
  }
}

</mosaic_0001>

<bundles_post_ra>
// kernel: discriminator_forward.1
= control target key start
LH: loop header
LB: loop body
LE: loop exit
PB: predicated region body
PF: predicated region fallthrough
CT: control target
= control target key end

     0   :  { %vm6014_vm3 = vcmask 7168   ;;  %s14831_s1 = inlined_call_operand.vmem [shape: bf16[896,1024], index: 1, kind: input, shape index: {}]   ;;  %s14832_s0 = inlined_call_operand.vmem [shape: bf16[8,896], index: 0, kind: input, shape index: {}]   ;;  %s14833_s2 = inlined_call_operand.vmem [shape: f32[1,1024], index: 2, kind: input, shape index: {}]   ;;  %s14834_s3 = inlined_call_operand.vmem [shape: bf16[1024,512], index: 3, kind: input, shape index: {}]   ;;  %s14835_s4 = inlined_call_operand.vmem [shape: f32[1,512], index: 4, kind: input, shape index: {}]   ;;  %s14836_s5 = inlined_call_operand.vmem [shape: bf16[512,256], index: 5, kind: input, shape index: {}]   ;;  %s14837_s6 = inlined_call_operand.vmem [shape: f32[1,256], index: 6, kind: input, shape index: {}]   ;;  %s14838_s8 = inlined_call_operand.<no memory space> [shape: f32[1,1], index: 8, kind: input, shape index: {}]   ;;  %s14839_s7 = inlined_call_operand.vmem [shape: f32[1,256], index: 7, kind: input, shape index: {}]   ;;  %s14840_s9 = inlined_call_operand.vmem [shape: f32[8,1], index: 9, kind: output, shape index: {}]  }
   0x1   :  { %v6246_v0 = vld [vmem:[%s14831_s1 + $0x1c0] sm:$0xf] }
   0x2   :  { %v9152_v1 = vld [vmem:[%s14831_s1 + $0x1dc] sm:$0xf0] }
   0x3   :  { %v6502_v2 = vld [vmem:[%s14831_s1 + $0x3c0] sm:$0xf]  ;;  %v6247_v3 = vor.u32 %v9152_v1, %v6246_v0 }
   0x4   :  { %v9216_v4 = vld [vmem:[%s14831_s1 + $0x3dc] sm:$0xf0] }
   0x5   :  { %v6758_v5 = vld [vmem:[%s14831_s1 + $0x5c0] sm:$0xf]  ;;  %v6503_v7 = vor.u32 %v9216_v4, %v6502_v2  ;;  %2769 = vmatpush.bf16.msra.mxu0 %v6247_v3 }
   0x6   :  { %v9280_v6 = vld [vmem:[%s14831_s1 + $0x5dc] sm:$0xf0] }
   0x7   :  { %v6759_v8 = vor.u32 %v9280_v6, %v6758_v5  ;;  %v7014_v9 = vld [vmem:[%s14831_s1 + $0x7c0] sm:$0xf]  ;;  %2782 = vmatpush.bf16.msra.mxu1 %v6503_v7 }
   0x8   :  { %v9344_v10 = vld [vmem:[%s14831_s1 + $0x7dc] sm:$0xf0] }
   0x9   :  { %v6214_v11 = vld [vmem:[%s14831_s1 + $0x180] sm:$0xf]  ;;  %v7015_v12 = vor.u32 %v9344_v10, %v7014_v9  ;;  %2795 = vmatpush.bf16.msra.mxu2 %v6759_v8 }
   0xa   :  { %v9144_v13 = vld [vmem:[%s14831_s1 + $0x19c] sm:$0xf0] }
   0xb   :  { %v6470_v14 = vld [vmem:[%s14831_s1 + $0x380] sm:$0xf]  ;;  %v6215_v16 = vor.u32 %v9144_v13, %v6214_v11  ;;  %2808 = vmatpush.bf16.msra.mxu3 %v7015_v12 }
   0xc   :  { %v9208_v15 = vld [vmem:[%s14831_s1 + $0x39c] sm:$0xf0] }
   0xd   :  { %v6471_v17 = vor.u32 %v9208_v15, %v6470_v14  ;;  %v6726_v18 = vld [vmem:[%s14831_s1 + $0x580] sm:$0xf]  ;;  %2770 = vmatpush.bf16.msra.mxu0 %v6215_v16 }
   0xe   :  { %v9272_v19 = vld [vmem:[%s14831_s1 + $0x59c] sm:$0xf0] }
   0xf   :  { %v6982_v20 = vld [vmem:[%s14831_s1 + $0x780] sm:$0xf]  ;;  %v6727_v21 = vor.u32 %v9272_v19, %v6726_v18  ;;  %2783 = vmatpush.bf16.msra.mxu1 %v6471_v17 }
  0x10   :  { %v9336_v22 = vld [vmem:[%s14831_s1 + $0x79c] sm:$0xf0] }
  0x11   :  { %v6182_v23 = vld [vmem:[%s14831_s1 + $0x140] sm:$0xf]  ;;  %v6983_v25 = vor.u32 %v9336_v22, %v6982_v20  ;;  %2796 = vmatpush.bf16.msra.mxu2 %v6727_v21 }
  0x12   :  { %v9136_v24 = vld [vmem:[%s14831_s1 + $0x15c] sm:$0xf0] }
  0x13   :  { %v6438_v26 = vld [vmem:[%s14831_s1 + $0x340] sm:$0xf]  ;;  %v6183_v29 = vor.u32 %v9136_v24, %v6182_v23  ;;  %2809 = vmatpush.bf16.msra.mxu3 %v6983_v25 }
  0x14   :  { %v9200_v27 = vld [vmem:[%s14831_s1 + $0x35c] sm:$0xf0] }
  0x15   :  { %v6694_v28 = vld [vmem:[%s14831_s1 + $0x540] sm:$0xf]  ;;  %v6439_v33 = vor.u32 %v9200_v27, %v6438_v26  ;;  %2771 = vmatpush.bf16.msra.mxu0 %v6183_v29 }
  0x16   :  { %v9264_v30 = vld [vmem:[%s14831_s1 + $0x55c] sm:$0xf0] }
  0x17   :  { %v6950_v31 = vld [vmem:[%s14831_s1 + $0x740] sm:$0xf]  ;;  %v6695_v34 = vor.u32 %v9264_v30, %v6694_v28  ;;  %2784 = vmatpush.bf16.msra.mxu1 %v6439_v33 }
  0x18   :  { %v9328_v32 = vld [vmem:[%s14831_s1 + $0x75c] sm:$0xf0] }
  0x19   :  { %v6150_v35 = vld [vmem:[%s14831_s1 + $0x100] sm:$0xf]  ;;  %v6951_v38 = vor.u32 %v9328_v32, %v6950_v31  ;;  %2797 = vmatpush.bf16.msra.mxu2 %v6695_v34 }
  0x1a   :  { %v9128_v36 = vld [vmem:[%s14831_s1 + $0x11c] sm:$0xf0] }
  0x1b   :  { %v6406_v37 = vld [vmem:[%s14831_s1 + $0x300] sm:$0xf]  ;;  %v6151_v44 = vor.u32 %v9128_v36, %v6150_v35  ;;  %2810 = vmatpush.bf16.msra.mxu3 %v6951_v38  ;;  %v6248_v38 = vld [vmem:[%s14831_s1 + $0x1e0] sm:$0xf0] }
  0x1c   :  { %v9192_v39 = vld [vmem:[%s14831_s1 + $0x31c] sm:$0xf0] }
  0x1d   :  { %v6662_v40 = vld [vmem:[%s14831_s1 + $0x500] sm:$0xf]  ;;  %v6407_v45 = vor.u32 %v9192_v39, %v6406_v37  ;;  %2772 = vmatpush.bf16.msra.mxu0 %v6151_v44  ;;  %v9148_v37 = vld [vmem:[%s14831_s1 + $0x1c4] sm:$0xf] }
  0x1e   :  { %v9256_v41 = vld [vmem:[%s14831_s1 + $0x51c] sm:$0xf0] }
  0x1f   :  { %v6918_v42 = vld [vmem:[%s14831_s1 + $0x700] sm:$0xf]  ;;  %v6663_v46 = vor.u32 %v9256_v41, %v6662_v40  ;;  %2785 = vmatpush.bf16.msra.mxu1 %v6407_v45 }
  0x20   :  { %v9320_v43 = vld [vmem:[%s14831_s1 + $0x71c] sm:$0xf0] }
  0x21   :  { %v6118_v47 = vld [vmem:[%s14831_s1 + $0xc0] sm:$0xf]  ;;  %v6919_v50 = vor.u32 %v9320_v43, %v6918_v42  ;;  %2798 = vmatpush.bf16.msra.mxu2 %v6663_v46  ;;  %v6251_v46 = vor.u32 %v9148_v37, %v6248_v38 }
  0x22   :  { %v9120_v48 = vld [vmem:[%s14831_s1 + $0xdc] sm:$0xf0] }
  0x23   :  { %v6374_v49 = vld [vmem:[%s14831_s1 + $0x2c0] sm:$0xf]  ;;  %v6119_v56 = vor.u32 %v9120_v48, %v6118_v47  ;;  %2811 = vmatpush.bf16.msra.mxu3 %v6919_v50  ;;  %v9140_v50 = vld [vmem:[%s14831_s1 + $0x184] sm:$0xf] }
  0x24   :  { %v9184_v51 = vld [vmem:[%s14831_s1 + $0x2dc] sm:$0xf0] }
  0x25   :  { %v6630_v52 = vld [vmem:[%s14831_s1 + $0x4c0] sm:$0xf]  ;;  %v6375_v57 = vor.u32 %v9184_v51, %v6374_v49  ;;  %2773 = vmatpush.bf16.msra.mxu0 %v6119_v56  ;;  %v6216_v51 = vld [vmem:[%s14831_s1 + $0x1a0] sm:$0xf0] }
  0x26   :  { %v9248_v53 = vld [vmem:[%s14831_s1 + $0x4dc] sm:$0xf0] }
  0x27   :  { %v6886_v54 = vld [vmem:[%s14831_s1 + $0x6c0] sm:$0xf]  ;;  %v6631_v58 = vor.u32 %v9248_v53, %v6630_v52  ;;  %2786 = vmatpush.bf16.msra.mxu1 %v6375_v57 }
  0x28   :  { %v9312_v55 = vld [vmem:[%s14831_s1 + $0x6dc] sm:$0xf0] }
  0x29   :  { %v6086_v59 = vld [vmem:[%s14831_s1 + $0x80] sm:$0xf]  ;;  %v6887_v62 = vor.u32 %v9312_v55, %v6886_v54  ;;  %2799 = vmatpush.bf16.msra.mxu2 %v6631_v58 }
  0x2a   :  { %v9112_v60 = vld [vmem:[%s14831_s1 + $0x9c] sm:$0xf0] }
  0x2b   :  { %v6342_v61 = vld [vmem:[%s14831_s1 + $0x280] sm:$0xf]  ;;  %v6087_v4 = vor.u32 %v9112_v60, %v6086_v59  ;;  %2812 = vmatpush.bf16.msra.mxu3 %v6887_v62  ;;  %v6219_v59 = vor.u32 %v9140_v50, %v6216_v51  ;;  %v9132_v62 = vld [vmem:[%s14831_s1 + $0x144] sm:$0xf] }
  0x2c   :  { %v9176_v63 = vld [vmem:[%s14831_s1 + $0x29c] sm:$0xf0] }
  0x2d   :  { %v6598_v0 = vld [vmem:[%s14831_s1 + $0x480] sm:$0xf]  ;;  %v6343_v5 = vor.u32 %v9176_v63, %v6342_v61  ;;  %2774 = vmatpush.bf16.msra.mxu0 %v6087_v4  ;;  %v6184_v63 = vld [vmem:[%s14831_s1 + $0x160] sm:$0xf0] }
  0x2e   :  { %v9240_v1 = vld [vmem:[%s14831_s1 + $0x49c] sm:$0xf0] }
  0x2f   :  { %v6854_v2 = vld [vmem:[%s14831_s1 + $0x680] sm:$0xf]  ;;  %v6599_v6 = vor.u32 %v9240_v1, %v6598_v0  ;;  %2787 = vmatpush.bf16.msra.mxu1 %v6343_v5 }
  0x30   :  { %v9304_v3 = vld [vmem:[%s14831_s1 + $0x69c] sm:$0xf0] }
  0x31   :  { %v6054_v7 = vld [vmem:[%s14831_s1 + $0x40] sm:$0xf]  ;;  %v6855_v10 = vor.u32 %v9304_v3, %v6854_v2  ;;  %2800 = vmatpush.bf16.msra.mxu2 %v6599_v6  ;;  %v35_v2 = vld [vmem:[%s14832_s0 + $0x8] sm:$0xff] }
  0x32   :  { %v9104_v8 = vld [vmem:[%s14831_s1 + $0x5c] sm:$0xf0] }
  0x33   :  { %v6310_v9 = vld [vmem:[%s14831_s1 + $0x240] sm:$0xf]  ;;  %v6055_v16 = vor.u32 %v9104_v8, %v6054_v7  ;;  %2813 = vmatpush.bf16.msra.mxu3 %v6855_v10  ;;  %v510_v8 = vunpack.c.l.b16 %v35_v2  ;;  %v511_v10 = vunpack.c.h.b16 %v35_v2 }
  0x34   :  { %v9168_v11 = vld [vmem:[%s14831_s1 + $0x25c] sm:$0xf0] }
  0x35   :  { %v6566_v12 = vld [vmem:[%s14831_s1 + $0x440] sm:$0xf]  ;;  %v6311_v19 = vor.u32 %v9168_v11, %v6310_v9  ;;  %2775 = vmatpush.bf16.msra.mxu0 %v6055_v16  ;;  %v6187_v11 = vor.u32 %v9132_v62, %v6184_v63  ;;  %v9124_v16 = vld [vmem:[%s14831_s1 + $0x104] sm:$0xf] }
  0x36   :  { %v9232_v13 = vld [vmem:[%s14831_s1 + $0x45c] sm:$0xf0] }
  0x37   :  { %v6822_v14 = vld [vmem:[%s14831_s1 + $0x640] sm:$0xf]  ;;  %v6567_v20 = vor.u32 %v9232_v13, %v6566_v12  ;;  %2788 = vmatpush.bf16.msra.mxu1 %v6311_v19 }
  0x38   :  { %v9296_v15 = vld [vmem:[%s14831_s1 + $0x65c] sm:$0xf0] }
  0x39   :  { %v6022_v17 = vld [vmem:[%s14831_s1] sm:$0xf]  ;;  %v6823_v24 = vor.u32 %v9296_v15, %v6822_v14  ;;  %2801 = vmatpush.bf16.msra.mxu2 %v6567_v20  ;;  %v10216_v20 = vpack.c.b16 %v511_v10, %v511_v10  ;;  %v9276_v10 = vld [vmem:[%s14831_s1 + $0x5c4] sm:$0xf] }
  0x3a   :  { %v9096_v18 = vld [vmem:[%s14831_s1 + $0x1c] sm:$0xf0] }
  0x3b   :  { %v6278_v21 = vld [vmem:[%s14831_s1 + $0x200] sm:$0xf]  ;;  %v6023_v31 = vor.u32 %v9096_v18, %v6022_v17  ;;  %2814 = vmatpush.bf16.msra.mxu3 %v6823_v24  ;;  %v6152_v17 = vld [vmem:[%s14831_s1 + $0x120] sm:$0xf0]  ;;  %v10212_v18 = vpack.c.b16 %v510_v8, %v510_v8 }
  0x3c   :  { %v9160_v22 = vld [vmem:[%s14831_s1 + $0x21c] sm:$0xf0]  ;;  %v9212_v8 = vld [vmem:[%s14831_s1 + $0x3c4] sm:$0xf] }
  0x3d   :  { %v6534_v23 = vld [vmem:[%s14831_s1 + $0x400] sm:$0xf]  ;;  %v6279_v35 = vor.u32 %v9160_v22, %v6278_v21  ;;  %2776 = vmatpush.bf16.msra.mxu0 %v6023_v31 }
  0x3e   :  { %v9224_v25 = vld [vmem:[%s14831_s1 + $0x41c] sm:$0xf0] }
  0x3f   :  { %v6790_v26 = vld [vmem:[%s14831_s1 + $0x600] sm:$0xf]  ;;  %v6535_v36 = vor.u32 %v9224_v25, %v6534_v23  ;;  %2789 = vmatpush.bf16.msra.mxu1 %v6279_v35 }
  0x40   :  { %v9288_v27 = vld [vmem:[%s14831_s1 + $0x61c] sm:$0xf0] }
  0x41   :  { %v7270_v28 = vld [vmem:[%s14831_s1 + $0x9c0] sm:$0xf]  ;;  %v6791_v39 = vor.u32 %v9288_v27, %v6790_v26  ;;  %2802 = vmatpush.bf16.msra.mxu2 %v6535_v36 }
  0x42   :  { %v9408_v29 = vld [vmem:[%s14831_s1 + $0x9dc] sm:$0xf0] }
  0x43   :  { %v7526_v30 = vld [vmem:[%s14831_s1 + $0xbc0] sm:$0xf]  ;;  %v7271_v40 = vor.u32 %v9408_v29, %v7270_v28  ;;  %2815 = vmatpush.bf16.msra.mxu3 %v6791_v39  ;;  %v6155_v28 = vor.u32 %v9124_v16, %v6152_v17 }
  0x44   :  { %v9472_v32 = vld [vmem:[%s14831_s1 + $0xbdc] sm:$0xf0]  ;;  %2803 = vmatmul.bf16.vlgmr.msra.gmra.mxu2 %v10212_v18 }
  0x45   :  { %v7782_v33 = vld [vmem:[%s14831_s1 + $0xdc0] sm:$0xf]  ;;  %v7527_v41 = vor.u32 %v9472_v32, %v7526_v30  ;;  %2821 = vmatpush.bf16.msrb.mxu0 %v7271_v40  ;;  %v9116_v32 = vld [vmem:[%s14831_s1 + $0xc4] sm:$0xf] }
  0x46   :  { %v9536_v34 = vld [vmem:[%s14831_s1 + $0xddc] sm:$0xf0]  ;;  %2816 = vmatmul.bf16.vlgmr.msra.gmra.mxu3 %v10216_v20 }
  0x47   :  { %v7783_v42 = vor.u32 %v9536_v34, %v7782_v33  ;;  %v7238_v43 = vld [vmem:[%s14831_s1 + $0x980] sm:$0xf]  ;;  %2834 = vmatpush.bf16.msrb.mxu1 %v7527_v41  ;;  %2860 = vmatpush.bf16.msrb.mxu3 %v6251_v46  ;;  %v6120_v33 = vld [vmem:[%s14831_s1 + $0xe0] sm:$0xf0] }
  0x48   :  { %v9400_v44 = vld [vmem:[%s14831_s1 + $0x99c] sm:$0xf0]  ;;  %v6123_v40 = vor.u32 %v9116_v32, %v6120_v33  ;;  %v9268_v32 = vld [vmem:[%s14831_s1 + $0x584] sm:$0xf] }
  0x49   :  { %v7494_v45 = vld [vmem:[%s14831_s1 + $0xb80] sm:$0xf]  ;;  %v7239_v52 = vor.u32 %v9400_v44, %v7238_v43  ;;  %2847 = vmatpush.bf16.msrb.mxu2 %v7783_v42  ;;  %v9108_v44 = vld [vmem:[%s14831_s1 + $0x84] sm:$0xf] }
  0x4a   :  { %v9464_v47 = vld [vmem:[%s14831_s1 + $0xb9c] sm:$0xf0] }
  0x4b   :  { %v7750_v48 = vld [vmem:[%s14831_s1 + $0xd80] sm:$0xf]  ;;  %v7495_v54 = vor.u32 %v9464_v47, %v7494_v45  ;;  %2822 = vmatpush.bf16.msrb.mxu0 %v7239_v52  ;;  %2861 = vmatpush.bf16.msrb.mxu3 %v6219_v59  ;;  %v6088_v45 = vld [vmem:[%s14831_s1 + $0xa0] sm:$0xf0] }
  0x4c   :  { %v9528_v49 = vld [vmem:[%s14831_s1 + $0xd9c] sm:$0xf0]  ;;  %v6091_v52 = vor.u32 %v9108_v44, %v6088_v45  ;;  %v9196_v45 = vld [vmem:[%s14831_s1 + $0x344] sm:$0xf] }
  0x4d   :  { %v7206_v53 = vld [vmem:[%s14831_s1 + $0x940] sm:$0xf]  ;;  %v7751_v55 = vor.u32 %v9528_v49, %v7750_v48  ;;  %2835 = vmatpush.bf16.msrb.mxu1 %v7495_v54 }
  0x4e   :  { %v9392_v56 = vld [vmem:[%s14831_s1 + $0x95c] sm:$0xf0] }
  0x4f   :  { %v7462_v57 = vld [vmem:[%s14831_s1 + $0xb40] sm:$0xf]  ;;  %v7207_v0 = vor.u32 %v9392_v56, %v7206_v53  ;;  %2848 = vmatpush.bf16.msrb.mxu2 %v7751_v55  ;;  %2862 = vmatpush.bf16.msrb.mxu3 %v6187_v11  ;;  %v9100_v56 = vld [vmem:[%s14831_s1 + $0x44] sm:$0xf] }
  0x50   :  { %v9456_v58 = vld [vmem:[%s14831_s1 + $0xb5c] sm:$0xf0] }
  0x51   :  { %v7718_v60 = vld [vmem:[%s14831_s1 + $0xd40] sm:$0xf]  ;;  %v7463_v1 = vor.u32 %v9456_v58, %v7462_v57  ;;  %2823 = vmatpush.bf16.msrb.mxu0 %v7207_v0  ;;  %v6056_v57 = vld [vmem:[%s14831_s1 + $0x60] sm:$0xf0] }
  0x52   :  { %v9520_v61 = vld [vmem:[%s14831_s1 + $0xd5c] sm:$0xf0] }
  0x53   :  { %v34_v3 = vld [vmem:[%s14832_s0] sm:$0xff]  ;;  %v7719_v4 = vor.u32 %v9520_v61, %v7718_v60  ;;  %2836 = vmatpush.bf16.msrb.mxu1 %v7463_v1  ;;  %2863 = vmatpush.bf16.msrb.mxu3 %v6155_v28 }
  0x54   :  { %v7174_v5 = vld [vmem:[%s14831_s1 + $0x900] sm:$0xf]  ;;  %v508_v9 = vunpack.c.l.b16 %v34_v3  ;;  %v509_v15 = vunpack.c.h.b16 %v34_v3  ;;  %v37_v3 = vld [vmem:[%s14832_s0 + $0x18] sm:$0xf] }
  0x55   :  { %v9384_v6 = vld [vmem:[%s14831_s1 + $0x91c] sm:$0xf0]  ;;  %2849 = vmatpush.bf16.msrb.mxu2 %v7719_v4  ;;  %v6059_v4 = vor.u32 %v9100_v56, %v6056_v57  ;;  %v9188_v57 = vld [vmem:[%s14831_s1 + $0x304] sm:$0xf] }
  0x56   :  { %v7430_v7 = vld [vmem:[%s14831_s1 + $0xb00] sm:$0xf]  ;;  %v10214_v19 = vpack.c.b16 %v508_v9, %v508_v9  ;;  %v7175_v21 = vor.u32 %v9384_v6, %v7174_v5  ;;  %v10218_v22 = vpack.c.b16 %v509_v15, %v509_v15  ;;  %v9092_v5 = vld [vmem:[%s14831_s1 + $0x4] sm:$0xf]  ;;  %v514_v15 = vunpack.c.l.b16 %v37_v3 }
  0x57   :  { %v9448_v12 = vld [vmem:[%s14831_s1 + $0xb1c] sm:$0xf0]  ;;  %2864 = vmatpush.bf16.msrb.mxu3 %v6123_v40  ;;  %v6024_v6 = vld [vmem:[%s14831_s1 + $0x20] sm:$0xf0] }
  0x58   :  { %v7686_v13 = vld [vmem:[%s14831_s1 + $0xd00] sm:$0xf]  ;;  %v7431_v23 = vor.u32 %v9448_v12, %v7430_v7  ;;  %2777 = vmatmul.bf16.vlgmr.msra.gmra.mxu0 %v10214_v19  ;;  %2790 = vmatmul.bf16.vlgmr.msra.gmra.mxu1 %v10218_v22  ;;  %v36_v7 = vld [vmem:[%s14832_s0 + $0x10] sm:$0xff]  ;;  %v6504_v9 = vld [vmem:[%s14831_s1 + $0x3e0] sm:$0xf0] }
  0x59   :  { %v9512_v14 = vld [vmem:[%s14831_s1 + $0xd1c] sm:$0xf0]  ;;  %2824 = vmatpush.bf16.msrb.mxu0 %v7175_v21  ;;  %v6760_v12 = vld [vmem:[%s14831_s1 + $0x5e0] sm:$0xf0] }
  0x5a   :  { %v7687_v24 = vor.u32 %v9512_v14, %v7686_v13  ;;  %v7142_v25 = vld [vmem:[%s14831_s1 + $0x8c0] sm:$0xf]  ;;  %2837 = vmatpush.bf16.msrb.mxu1 %v7431_v23  ;;  %v9340_v13 = vld [vmem:[%s14831_s1 + $0x7c4] sm:$0xf]  ;;  %v6763_v28 = vor.u32 %v9276_v10, %v6760_v12 }
  0x5b   :  { %v9376_v26 = vld [vmem:[%s14831_s1 + $0x8dc] sm:$0xf0]  ;;  %2865 = vmatpush.bf16.msrb.mxu3 %v6091_v52  ;;  %v7016_v14 = vld [vmem:[%s14831_s1 + $0x7e0] sm:$0xf0] }
  0x5c   :  { %v7398_v27 = vld [vmem:[%s14831_s1 + $0xac0] sm:$0xf]  ;;  %v7143_v34 = vor.u32 %v9376_v26, %v7142_v25  ;;  %2850 = vmatpush.bf16.msrb.mxu2 %v7687_v24  ;;  %v9404_v21 = vld [vmem:[%s14831_s1 + $0x9c4] sm:$0xf]  ;;  %v512_v24 = vunpack.c.l.b16 %v36_v7  ;;  %v513_v25 = vunpack.c.h.b16 %v36_v7  ;;  %v6027_v26 = vor.u32 %v9092_v5, %v6024_v6 }
  0x5d   :  { %v9440_v29 = vld [vmem:[%s14831_s1 + $0xadc] sm:$0xf0]  ;;  %v7272_v23 = vld [vmem:[%s14831_s1 + $0x9e0] sm:$0xf0] }
  0x5e   :  { %v7654_v30 = vld [vmem:[%s14831_s1 + $0xcc0] sm:$0xf]  ;;  %v7399_v35 = vor.u32 %v9440_v29, %v7398_v27  ;;  %2825 = vmatpush.bf16.msrb.mxu0 %v7143_v34  ;;  %v6507_v27 = vor.u32 %v9212_v8, %v6504_v9  ;;  %v7019_v29 = vor.u32 %v9340_v13, %v7016_v14  ;;  %v7275_v33 = vor.u32 %v9404_v21, %v7272_v23  ;;  %v6728_v34 = vld [vmem:[%s14831_s1 + $0x5a0] sm:$0xf0] }
  0x5f   :  { %v9504_v31 = vld [vmem:[%s14831_s1 + $0xcdc] sm:$0xf0]  ;;  %2866 = vmatpush.bf16.msrb.mxu3 %v6059_v4  ;;  %v10376_v40 = vpack.c.b16 %v512_v24, %v512_v24  ;;  %v9388_v52 = vld [vmem:[%s14831_s1 + $0x944] sm:$0xf] }
  0x60   :  { %v7655_v36 = vor.u32 %v9504_v31, %v7654_v30  ;;  %v7110_v37 = vld [vmem:[%s14831_s1 + $0x880] sm:$0xf]  ;;  %2838 = vmatpush.bf16.msrb.mxu1 %v7399_v35  ;;  %v9204_v30 = vld [vmem:[%s14831_s1 + $0x384] sm:$0xf] }
  0x61   :  { %v9368_v38 = vld [vmem:[%s14831_s1 + $0x89c] sm:$0xf0]  ;;  %v6472_v31 = vld [vmem:[%s14831_s1 + $0x3a0] sm:$0xf0] }
  0x62   :  { %v7366_v39 = vld [vmem:[%s14831_s1 + $0xa80] sm:$0xf]  ;;  %v7111_v46 = vor.u32 %v9368_v38, %v7110_v37  ;;  %2851 = vmatpush.bf16.msrb.mxu2 %v7655_v36  ;;  %v9332_v35 = vld [vmem:[%s14831_s1 + $0x784] sm:$0xf]  ;;  %v10368_v37 = vpack.c.b16 %v514_v15, %v514_v15 }
  0x63   :  { %v9432_v41 = vld [vmem:[%s14831_s1 + $0xa9c] sm:$0xf0]  ;;  %v6984_v36 = vld [vmem:[%s14831_s1 + $0x7a0] sm:$0xf0]  ;;  %2867 = vmatpush.bf16.msrb.mxu3 %v6027_v26 }
  0x64   :  { %v7622_v42 = vld [vmem:[%s14831_s1 + $0xc80] sm:$0xf]  ;;  %v7367_v47 = vor.u32 %v9432_v41, %v7366_v39  ;;  %2826 = vmatpush.bf16.msrb.mxu0 %v7111_v46  ;;  %v9396_v38 = vld [vmem:[%s14831_s1 + $0x984] sm:$0xf]  ;;  %v10378_v41 = vpack.c.b16 %v513_v25, %v513_v25  ;;  %v6987_v44 = vor.u32 %v9332_v35, %v6984_v36 }
  0x65   :  { %v9496_v43 = vld [vmem:[%s14831_s1 + $0xc9c] sm:$0xf0]  ;;  %v7240_v39 = vld [vmem:[%s14831_s1 + $0x9a0] sm:$0xf0] }
  0x66   :  { %v7623_v48 = vor.u32 %v9496_v43, %v7622_v42  ;;  %v7078_v49 = vld [vmem:[%s14831_s1 + $0x840] sm:$0xf]  ;;  %2839 = vmatpush.bf16.msrb.mxu1 %v7367_v47  ;;  %v6475_v42 = vor.u32 %v9204_v30, %v6472_v31  ;;  %v6731_v43 = vor.u32 %v9268_v32, %v6728_v34  ;;  %v6440_v46 = vld [vmem:[%s14831_s1 + $0x360] sm:$0xf0]  ;;  %2868 = vmatmul.bf16.vlgmr.msrb.gmra.mxu3 %v10214_v19 }
  0x67   :  { %v9360_v50 = vld [vmem:[%s14831_s1 + $0x85c] sm:$0xf0]  ;;  %v9260_v47 = vld [vmem:[%s14831_s1 + $0x544] sm:$0xf]  ;;  %2912 = vmatpush.bf16.msra.mxu3 %v7275_v33 }
  0x68   :  { %v7334_v51 = vld [vmem:[%s14831_s1 + $0xa40] sm:$0xf]  ;;  %v7079_v59 = vor.u32 %v9360_v50, %v7078_v49  ;;  %2852 = vmatpush.bf16.msrb.mxu2 %v7623_v48  ;;  %v7243_v48 = vor.u32 %v9396_v38, %v7240_v39  ;;  %v6696_v49 = vld [vmem:[%s14831_s1 + $0x560] sm:$0xf0] }
  0x69   :  { %v9424_v53 = vld [vmem:[%s14831_s1 + $0xa5c] sm:$0xf0]  ;;  %v9324_v50 = vld [vmem:[%s14831_s1 + $0x744] sm:$0xf] }
  0x6a   :  { %v7590_v54 = vld [vmem:[%s14831_s1 + $0xc40] sm:$0xf]  ;;  %v7335_v63 = vor.u32 %v9424_v53, %v7334_v51  ;;  %2827 = vmatpush.bf16.msrb.mxu0 %v7079_v59  ;;  %v6952_v51 = vld [vmem:[%s14831_s1 + $0x760] sm:$0xf0] }
  0x6b   :  { %v9488_v55 = vld [vmem:[%s14831_s1 + $0xc5c] sm:$0xf0]  ;;  %v7208_v53 = vld [vmem:[%s14831_s1 + $0x960] sm:$0xf0]  ;;  %v6955_v56 = vor.u32 %v9324_v50, %v6952_v51  ;;  %2913 = vmatpush.bf16.msra.mxu3 %v7243_v48 }
  0x6c   :  { %v7046_v58 = vld [vmem:[%s14831_s1 + $0x800] sm:$0xf]  ;;  %v7591_v0 = vor.u32 %v9488_v55, %v7590_v54  ;;  %2840 = vmatpush.bf16.msrb.mxu1 %v7335_v63  ;;  %v6443_v54 = vor.u32 %v9196_v45, %v6440_v46  ;;  %v6699_v55 = vor.u32 %v9260_v47, %v6696_v49  ;;  %v9252_v59 = vld [vmem:[%s14831_s1 + $0x504] sm:$0xf] }
  0x6d   :  { %v9352_v60 = vld [vmem:[%s14831_s1 + $0x81c] sm:$0xf0]  ;;  %v6920_v63 = vld [vmem:[%s14831_s1 + $0x720] sm:$0xf0] }
  0x6e   :  { %v7302_v61 = vld [vmem:[%s14831_s1 + $0xa00] sm:$0xf]  ;;  %v7047_v11 = vor.u32 %v9352_v60, %v7046_v58  ;;  %2853 = vmatpush.bf16.msrb.mxu2 %v7591_v0  ;;  %v6408_v58 = vld [vmem:[%s14831_s1 + $0x320] sm:$0xf0]  ;;  %v7211_v60 = vor.u32 %v9388_v52, %v7208_v53 }
  0x6f   :  { %v9416_v62 = vld [vmem:[%s14831_s1 + $0xa1c] sm:$0xf0]  ;;  %v9380_v0 = vld [vmem:[%s14831_s1 + $0x904] sm:$0xf] }
  0x70   :  { %v7558_v1 = vld [vmem:[%s14831_s1 + $0xc00] sm:$0xf]  ;;  %v7303_v16 = vor.u32 %v9416_v62, %v7302_v61  ;;  %2828 = vmatpush.bf16.msrb.mxu0 %v7047_v11  ;;  %v6664_v61 = vld [vmem:[%s14831_s1 + $0x520] sm:$0xf0]  ;;  %2914 = vmatpush.bf16.msra.mxu3 %v7211_v60 }
  0x71   :  { %v9480_v2 = vld [vmem:[%s14831_s1 + $0xc1c] sm:$0xf0]  ;;  %v9316_v62 = vld [vmem:[%s14831_s1 + $0x704] sm:$0xf]  ;;  %v6667_v3 = vor.u32 %v9252_v59, %v6664_v61 }
  0x72   :  { %v7559_v17 = vor.u32 %v9480_v2, %v7558_v1  ;;  %2841 = vmatpush.bf16.msrb.mxu1 %v7303_v16  ;;  %v7176_v1 = vld [vmem:[%s14831_s1 + $0x920] sm:$0xf0]  ;;  %v6411_v2 = vor.u32 %v9188_v57, %v6408_v58  ;;  %v6923_v4 = vor.u32 %v9316_v62, %v6920_v63  ;;  %v6254_v62 = vld [vmem:[%s14831_s1 + $0x1c8] sm:$0xf] }
  0x73   :  { %2829 = vmatmul.bf16.vlgmr.msrb.gmra.mxu0 %v10376_v40  ;;  %v9180_v5 = vld [vmem:[%s14831_s1 + $0x2c4] sm:$0xf]  ;;  %v7179_v8 = vor.u32 %v9380_v0, %v7176_v1  ;;  %v9153_v63 = vld [vmem:[%s14831_s1 + $0x1e4] sm:$0xf0] }
  0x74   :  { %2854 = vmatpush.bf16.msrb.mxu2 %v7559_v17  ;;  %2873 = vmatpush.bf16.msra.mxu0 %v6507_v27  ;;  %v6376_v6 = vld [vmem:[%s14831_s1 + $0x2e0] sm:$0xf0] }
  0x75   :  { %2842 = vmatmul.bf16.vlgmr.msrb.gmra.mxu1 %v10378_v41  ;;  %v9244_v7 = vld [vmem:[%s14831_s1 + $0x4c4] sm:$0xf]  ;;  %v6379_v14 = vor.u32 %v9180_v5, %v6376_v6  ;;  %2915 = vmatpush.bf16.msra.mxu3 %v7179_v8 }
  0x76   :  { %2886 = vmatpush.bf16.msra.mxu1 %v6763_v28  ;;  %v6632_v9 = vld [vmem:[%s14831_s1 + $0x4e0] sm:$0xf0] }
  0x77   :  { %2855 = vmatmul.bf16.vlgmr.msrb.gmra.mxu2 %v10368_v37  ;;  %v9308_v10 = vld [vmem:[%s14831_s1 + $0x6c4] sm:$0xf]  ;;  %v6635_v15 = vor.u32 %v9244_v7, %v6632_v9  ;;  %v6255_v7 = vor.u32 %v9153_v63, %v6254_v62 }
  0x78   :  { %2899 = vmatpush.bf16.msra.mxu2 %v7019_v29  ;;  %2874 = vmatpush.bf16.msra.mxu0 %v6475_v42  ;;  %v6888_v11 = vld [vmem:[%s14831_s1 + $0x6e0] sm:$0xf0] }
  0x79   :  { %v9372_v12 = vld [vmem:[%s14831_s1 + $0x8c4] sm:$0xf]  ;;  %v6891_v16 = vor.u32 %v9308_v10, %v6888_v11 }
  0x7a   :  { %2887 = vmatpush.bf16.msra.mxu1 %v6731_v43  ;;  %v7144_v13 = vld [vmem:[%s14831_s1 + $0x8e0] sm:$0xf0] }
  0x7b   :  { %v9172_v17 = vld [vmem:[%s14831_s1 + $0x284] sm:$0xf]  ;;  %v7147_v24 = vor.u32 %v9372_v12, %v7144_v13  ;;  %v6222_v13 = vld [vmem:[%s14831_s1 + $0x188] sm:$0xf] }
  0x7c   :  { %2900 = vmatpush.bf16.msra.mxu2 %v6987_v44  ;;  %2875 = vmatpush.bf16.msra.mxu0 %v6443_v54  ;;  %v6344_v21 = vld [vmem:[%s14831_s1 + $0x2a0] sm:$0xf0] }
  0x7d   :  { %v9236_v23 = vld [vmem:[%s14831_s1 + $0x484] sm:$0xf]  ;;  %v6347_v30 = vor.u32 %v9172_v17, %v6344_v21  ;;  %2916 = vmatpush.bf16.msra.mxu3 %v7147_v24 }
  0x7e   :  { %2888 = vmatpush.bf16.msra.mxu1 %v6699_v55  ;;  %v6600_v25 = vld [vmem:[%s14831_s1 + $0x4a0] sm:$0xf0] }
  0x7f   :  { %v9300_v26 = vld [vmem:[%s14831_s1 + $0x684] sm:$0xf]  ;;  %v6603_v31 = vor.u32 %v9236_v23, %v6600_v25 }
  0x80   :  { %2901 = vmatpush.bf16.msra.mxu2 %v6955_v56  ;;  %2876 = vmatpush.bf16.msra.mxu0 %v6411_v2  ;;  %v6856_v27 = vld [vmem:[%s14831_s1 + $0x6a0] sm:$0xf0]  ;;  %v6510_v2 = vld [vmem:[%s14831_s1 + $0x3c8] sm:$0xf] }
  0x81   :  { %v9364_v28 = vld [vmem:[%s14831_s1 + $0x884] sm:$0xf]  ;;  %v6859_v32 = vor.u32 %v9300_v26, %v6856_v27 }
  0x82   :  { %2889 = vmatpush.bf16.msra.mxu1 %v6667_v3  ;;  %v7112_v29 = vld [vmem:[%s14831_s1 + $0x8a0] sm:$0xf0]  ;;  %v9217_v3 = vld [vmem:[%s14831_s1 + $0x3e4] sm:$0xf0] }
  0x83   :  { %v9164_v33 = vld [vmem:[%s14831_s1 + $0x244] sm:$0xf]  ;;  %v7115_v36 = vor.u32 %v9364_v28, %v7112_v29  ;;  %v6511_v11 = vor.u32 %v9217_v3, %v6510_v2  ;;  %v6190_v29 = vld [vmem:[%s14831_s1 + $0x148] sm:$0xf] }
  0x84   :  { %2902 = vmatpush.bf16.msra.mxu2 %v6923_v4  ;;  %2877 = vmatpush.bf16.msra.mxu0 %v6379_v14  ;;  %v6312_v34 = vld [vmem:[%s14831_s1 + $0x260] sm:$0xf0]  ;;  %v9145_v14 = vld [vmem:[%s14831_s1 + $0x1a4] sm:$0xf0] }
  0x85   :  { %v9228_v35 = vld [vmem:[%s14831_s1 + $0x444] sm:$0xf]  ;;  %v6315_v45 = vor.u32 %v9164_v33, %v6312_v34  ;;  %2917 = vmatpush.bf16.msra.mxu3 %v7115_v36  ;;  %v6223_v23 = vor.u32 %v9145_v14, %v6222_v13 }
  0x86   :  { %2890 = vmatpush.bf16.msra.mxu1 %v6635_v15  ;;  %v6568_v38 = vld [vmem:[%s14831_s1 + $0x460] sm:$0xf0]  ;;  %v6478_v15 = vld [vmem:[%s14831_s1 + $0x388] sm:$0xf] }
  0x87   :  { %v9292_v39 = vld [vmem:[%s14831_s1 + $0x644] sm:$0xf]  ;;  %v6571_v48 = vor.u32 %v9228_v35, %v6568_v38 }
  0x88   :  { %2903 = vmatpush.bf16.msra.mxu2 %v6891_v16  ;;  %v6824_v42 = vld [vmem:[%s14831_s1 + $0x660] sm:$0xf0]  ;;  %2878 = vmatpush.bf16.msra.mxu0 %v6347_v30  ;;  %v9209_v16 = vld [vmem:[%s14831_s1 + $0x3a4] sm:$0xf0] }
  0x89   :  { %v9356_v43 = vld [vmem:[%s14831_s1 + $0x844] sm:$0xf]  ;;  %v6827_v49 = vor.u32 %v9292_v39, %v6824_v42  ;;  %v6479_v27 = vor.u32 %v9209_v16, %v6478_v15  ;;  %v9137_v30 = vld [vmem:[%s14831_s1 + $0x164] sm:$0xf0] }
  0x8a   :  { %v7080_v44 = vld [vmem:[%s14831_s1 + $0x860] sm:$0xf0]  ;;  %2891 = vmatpush.bf16.msra.mxu1 %v6603_v31  ;;  %v6446_v31 = vld [vmem:[%s14831_s1 + $0x348] sm:$0xf]  ;;  %v6191_v35 = vor.u32 %v9137_v30, %v6190_v29 }
  0x8b   :  { %v9156_v46 = vld [vmem:[%s14831_s1 + $0x204] sm:$0xf]  ;;  %v7083_v53 = vor.u32 %v9356_v43, %v7080_v44  ;;  %v6158_v44 = vld [vmem:[%s14831_s1 + $0x108] sm:$0xf] }
  0x8c   :  { %v6280_v47 = vld [vmem:[%s14831_s1 + $0x220] sm:$0xf0]  ;;  %2904 = vmatpush.bf16.msra.mxu2 %v6859_v32  ;;  %2879 = vmatpush.bf16.msra.mxu0 %v6315_v45  ;;  %v9201_v32 = vld [vmem:[%s14831_s1 + $0x364] sm:$0xf0] }
  0x8d   :  { %v9220_v50 = vld [vmem:[%s14831_s1 + $0x404] sm:$0xf]  ;;  %v6283_v60 = vor.u32 %v9156_v46, %v6280_v47  ;;  %2918 = vmatpush.bf16.msra.mxu3 %v7083_v53  ;;  %v6447_v42 = vor.u32 %v9201_v32, %v6446_v31  ;;  %v9129_v45 = vld [vmem:[%s14831_s1 + $0x124] sm:$0xf0] }
  0x8e   :  { %v6536_v51 = vld [vmem:[%s14831_s1 + $0x420] sm:$0xf0]  ;;  %2892 = vmatpush.bf16.msra.mxu1 %v6571_v48  ;;  %v6414_v46 = vld [vmem:[%s14831_s1 + $0x308] sm:$0xf] }
  0x8f   :  { %v9284_v52 = vld [vmem:[%s14831_s1 + $0x604] sm:$0xf]  ;;  %v6539_v0 = vor.u32 %v9220_v50, %v6536_v51  ;;  %v9193_v47 = vld [vmem:[%s14831_s1 + $0x324] sm:$0xf0]  ;;  %v6159_v50 = vor.u32 %v9129_v45, %v6158_v44 }
  0x90   :  { %v6792_v54 = vld [vmem:[%s14831_s1 + $0x620] sm:$0xf0]  ;;  %2905 = vmatpush.bf16.msra.mxu2 %v6827_v49  ;;  %2880 = vmatpush.bf16.msra.mxu0 %v6283_v60  ;;  %v6062_v16 = vld [vmem:[%s14831_s1 + $0x48] sm:$0xf] }
  0x91   :  { %v9348_v55 = vld [vmem:[%s14831_s1 + $0x804] sm:$0xf]  ;;  %v6795_v1 = vor.u32 %v9284_v52, %v6792_v54  ;;  %v6415_v54 = vor.u32 %v9193_v47, %v6414_v46  ;;  %v6030_v31 = vld [vmem:[%s14831_s1 + $0x8] sm:$0xf] }
  0x92   :  { %v7048_v56 = vld [vmem:[%s14831_s1 + $0x820] sm:$0xf0]  ;;  %2893 = vmatpush.bf16.msra.mxu1 %v6539_v0  ;;  %v7278_v44 = vld [vmem:[%s14831_s1 + $0x9c8] sm:$0xf] }
  0x93   :  { %v9468_v57 = vld [vmem:[%s14831_s1 + $0xbc4] sm:$0xf]  ;;  %v7051_v4 = vor.u32 %v9348_v55, %v7048_v56  ;;  %2881 = vmatmul.bf16.vlgmr.msra.gmra.mxu0 %v10218_v22  ;;  %v6126_v56 = vld [vmem:[%s14831_s1 + $0xc8] sm:$0xf] }
  0x94   :  { %v7528_v58 = vld [vmem:[%s14831_s1 + $0xbe0] sm:$0xf0]  ;;  %2906 = vmatpush.bf16.msra.mxu2 %v6795_v1  ;;  %v9409_v45 = vld [vmem:[%s14831_s1 + $0x9e4] sm:$0xf0] }
  0x95   :  { %v9532_v59 = vld [vmem:[%s14831_s1 + $0xdc4] sm:$0xf]  ;;  %v7531_v5 = vor.u32 %v9468_v57, %v7528_v58  ;;  %2919 = vmatpush.bf16.msra.mxu3 %v7051_v4  ;;  %2894 = vmatmul.bf16.vlgmr.msra.gmra.mxu1 %v10212_v18  ;;  %v9121_v57 = vld [vmem:[%s14831_s1 + $0xe4] sm:$0xf0] }
  0x96   :  { %v7784_v61 = vld [vmem:[%s14831_s1 + $0xde0] sm:$0xf0]  ;;  %v6382_v58 = vld [vmem:[%s14831_s1 + $0x2c8] sm:$0xf]  ;;  %v6127_v62 = vor.u32 %v9121_v57, %v6126_v56 }
  0x97   :  { %v7787_v6 = vor.u32 %v9532_v59, %v7784_v61  ;;  %v9460_v8 = vld [vmem:[%s14831_s1 + $0xb84] sm:$0xf]  ;;  %2925 = vmatpush.bf16.msrb.mxu0 %v7531_v5  ;;  %2907 = vmatmul.bf16.vlgmr.msra.gmra.mxu2 %v10216_v20  ;;  %v9185_v59 = vld [vmem:[%s14831_s1 + $0x2e4] sm:$0xf0] }
  0x98   :  { %v7496_v9 = vld [vmem:[%s14831_s1 + $0xba0] sm:$0xf0]  ;;  %2951 = vmatpush.bf16.msrb.mxu2 %v6255_v7  ;;  %2920 = vmatmul.bf16.vlgmr.msra.gmra.mxu3 %v10376_v40  ;;  %v6383_v2 = vor.u32 %v9185_v59, %v6382_v58  ;;  %v6094_v4 = vld [vmem:[%s14831_s1 + $0x88] sm:$0xf] }
  0x99   :  { %v9524_v10 = vld [vmem:[%s14831_s1 + $0xd84] sm:$0xf]  ;;  %v7499_v17 = vor.u32 %v9460_v8, %v7496_v9  ;;  %2938 = vmatpush.bf16.msrb.mxu1 %v7787_v6  ;;  %2964 = vmatpush.bf16.msrb.mxu3 %v6511_v11  ;;  %v9113_v5 = vld [vmem:[%s14831_s1 + $0xa4] sm:$0xf0] }
  0x9a   :  { %v7752_v12 = vld [vmem:[%s14831_s1 + $0xda0] sm:$0xf0]  ;;  %v6350_v6 = vld [vmem:[%s14831_s1 + $0x288] sm:$0xf] }
  0x9b   :  { %v7755_v21 = vor.u32 %v9524_v10, %v7752_v12  ;;  %v9452_v24 = vld [vmem:[%s14831_s1 + $0xb44] sm:$0xf]  ;;  %2926 = vmatpush.bf16.msrb.mxu0 %v7499_v17  ;;  %v9177_v7 = vld [vmem:[%s14831_s1 + $0x2a4] sm:$0xf0]  ;;  %v6095_v10 = vor.u32 %v9113_v5, %v6094_v4 }
  0x9c   :  { %v7464_v25 = vld [vmem:[%s14831_s1 + $0xb60] sm:$0xf0]  ;;  %2952 = vmatpush.bf16.msrb.mxu2 %v6223_v23  ;;  %v6351_v14 = vor.u32 %v9177_v7, %v6350_v6  ;;  %v9105_v17 = vld [vmem:[%s14831_s1 + $0x64] sm:$0xf0] }
  0x9d   :  { %v9516_v26 = vld [vmem:[%s14831_s1 + $0xd44] sm:$0xf]  ;;  %v7467_v33 = vor.u32 %v9452_v24, %v7464_v25  ;;  %2939 = vmatpush.bf16.msrb.mxu1 %v7755_v21  ;;  %2965 = vmatpush.bf16.msrb.mxu3 %v6479_v27  ;;  %v6318_v21 = vld [vmem:[%s14831_s1 + $0x248] sm:$0xf] }
  0x9e   :  { %v7720_v28 = vld [vmem:[%s14831_s1 + $0xd60] sm:$0xf0]  ;;  %v9169_v23 = vld [vmem:[%s14831_s1 + $0x264] sm:$0xf0] }
  0x9f   :  { %v7723_v34 = vor.u32 %v9516_v26, %v7720_v28  ;;  %v9444_v36 = vld [vmem:[%s14831_s1 + $0xb04] sm:$0xf]  ;;  %2927 = vmatpush.bf16.msrb.mxu0 %v7467_v33  ;;  %v6063_v28 = vor.u32 %v9105_v17, %v6062_v16  ;;  %v6319_v32 = vor.u32 %v9169_v23, %v6318_v21  ;;  %v9097_v33 = vld [vmem:[%s14831_s1 + $0x24] sm:$0xf0] }
  0xa0   :  { %v7432_v38 = vld [vmem:[%s14831_s1 + $0xb20] sm:$0xf0]  ;;  %2953 = vmatpush.bf16.msrb.mxu2 %v6191_v35  ;;  %v9161_v35 = vld [vmem:[%s14831_s1 + $0x224] sm:$0xf0]  ;;  %v6031_v47 = vor.u32 %v9097_v33, %v6030_v31 }
  0xa1   :  { %v9508_v39 = vld [vmem:[%s14831_s1 + $0xd04] sm:$0xf]  ;;  %v7435_v48 = vor.u32 %v9444_v36, %v7432_v38  ;;  %2940 = vmatpush.bf16.msrb.mxu1 %v7723_v34  ;;  %2966 = vmatpush.bf16.msrb.mxu3 %v6447_v42  ;;  %v6286_v34 = vld [vmem:[%s14831_s1 + $0x208] sm:$0xf] }
  0xa2   :  { %v7688_v43 = vld [vmem:[%s14831_s1 + $0xd20] sm:$0xf0]  ;;  %v6766_v36 = vld [vmem:[%s14831_s1 + $0x5c8] sm:$0xf] }
  0xa3   :  { %v7691_v49 = vor.u32 %v9508_v39, %v7688_v43  ;;  %v9436_v51 = vld [vmem:[%s14831_s1 + $0xac4] sm:$0xf]  ;;  %2928 = vmatpush.bf16.msrb.mxu0 %v7435_v48  ;;  %v9281_v38 = vld [vmem:[%s14831_s1 + $0x5e4] sm:$0xf0] }
  0xa4   :  { %v7400_v52 = vld [vmem:[%s14831_s1 + $0xae0] sm:$0xf0]  ;;  %2954 = vmatpush.bf16.msrb.mxu2 %v6159_v50  ;;  %v7022_v39 = vld [vmem:[%s14831_s1 + $0x7c8] sm:$0xf]  ;;  %v6287_v50 = vor.u32 %v9161_v35, %v6286_v34 }
  0xa5   :  { %v9500_v53 = vld [vmem:[%s14831_s1 + $0xcc4] sm:$0xf]  ;;  %v7403_v60 = vor.u32 %v9436_v51, %v7400_v52  ;;  %2941 = vmatpush.bf16.msrb.mxu1 %v7691_v49  ;;  %2967 = vmatpush.bf16.msrb.mxu3 %v6415_v54  ;;  %v9345_v43 = vld [vmem:[%s14831_s1 + $0x7e4] sm:$0xf0]  ;;  %v6767_v51 = vor.u32 %v9281_v38, %v6766_v36 }
  0xa6   :  { %v7656_v55 = vld [vmem:[%s14831_s1 + $0xce0] sm:$0xf0]  ;;  %v7534_v48 = vld [vmem:[%s14831_s1 + $0xbc8] sm:$0xf]  ;;  %v7023_v52 = vor.u32 %v9345_v43, %v7022_v39 }
  0xa7   :  { %v7659_v61 = vor.u32 %v9500_v53, %v7656_v55  ;;  %v9428_v63 = vld [vmem:[%s14831_s1 + $0xa84] sm:$0xf]  ;;  %2929 = vmatpush.bf16.msrb.mxu0 %v7403_v60  ;;  %v9473_v49 = vld [vmem:[%s14831_s1 + $0xbe4] sm:$0xf0]  ;;  %v7279_v53 = vor.u32 %v9409_v45, %v7278_v44 }
  0xa8   :  { %v7368_v0 = vld [vmem:[%s14831_s1 + $0xaa0] sm:$0xf0]  ;;  %2955 = vmatpush.bf16.msrb.mxu2 %v6127_v62  ;;  %v6734_v54 = vld [vmem:[%s14831_s1 + $0x588] sm:$0xf]  ;;  %v7535_v57 = vor.u32 %v9473_v49, %v7534_v48 }
  0xa9   :  { %v9492_v1 = vld [vmem:[%s14831_s1 + $0xc84] sm:$0xf]  ;;  %v7371_v8 = vor.u32 %v9428_v63, %v7368_v0  ;;  %2942 = vmatpush.bf16.msrb.mxu1 %v7659_v61  ;;  %2968 = vmatpush.bf16.msrb.mxu3 %v6383_v2  ;;  %v9273_v55 = vld [vmem:[%s14831_s1 + $0x5a4] sm:$0xf0] }
  0xaa   :  { %v7624_v3 = vld [vmem:[%s14831_s1 + $0xca0] sm:$0xf0]  ;;  %v6990_v56 = vld [vmem:[%s14831_s1 + $0x788] sm:$0xf]  ;;  %v6735_v63 = vor.u32 %v9273_v55, %v6734_v54 }
  0xab   :  { %v7627_v9 = vor.u32 %v9492_v1, %v7624_v3  ;;  %v9420_v11 = vld [vmem:[%s14831_s1 + $0xa44] sm:$0xf]  ;;  %2930 = vmatpush.bf16.msrb.mxu0 %v7371_v8  ;;  %v9337_v58 = vld [vmem:[%s14831_s1 + $0x7a4] sm:$0xf0] }
  0xac   :  { %v7336_v12 = vld [vmem:[%s14831_s1 + $0xa60] sm:$0xf0]  ;;  %2956 = vmatpush.bf16.msrb.mxu2 %v6095_v10  ;;  %v7246_v59 = vld [vmem:[%s14831_s1 + $0x988] sm:$0xf]  ;;  %v6991_v0 = vor.u32 %v9337_v58, %v6990_v56 }
  0xad   :  { %v9484_v13 = vld [vmem:[%s14831_s1 + $0xc44] sm:$0xf]  ;;  %v7339_v24 = vor.u32 %v9420_v11, %v7336_v12  ;;  %2943 = vmatpush.bf16.msrb.mxu1 %v7627_v9  ;;  %2969 = vmatpush.bf16.msrb.mxu3 %v6351_v14  ;;  %v9401_v60 = vld [vmem:[%s14831_s1 + $0x9a4] sm:$0xf0] }
  0xae   :  { %v7592_v15 = vld [vmem:[%s14831_s1 + $0xc60] sm:$0xf0]  ;;  %v7502_v61 = vld [vmem:[%s14831_s1 + $0xb88] sm:$0xf]  ;;  %v7247_v1 = vor.u32 %v9401_v60, %v7246_v59 }
  0xaf   :  { %v9412_v25 = vld [vmem:[%s14831_s1 + $0xa04] sm:$0xf]  ;;  %v7595_v27 = vor.u32 %v9484_v13, %v7592_v15  ;;  %2931 = vmatpush.bf16.msrb.mxu0 %v7339_v24  ;;  %v9465_v62 = vld [vmem:[%s14831_s1 + $0xba4] sm:$0xf0] }
  0xb0   :  { %v7304_v26 = vld [vmem:[%s14831_s1 + $0xa20] sm:$0xf0]  ;;  %2957 = vmatpush.bf16.msrb.mxu2 %v6063_v28  ;;  %v6702_v2 = vld [vmem:[%s14831_s1 + $0x548] sm:$0xf]  ;;  %v7503_v5 = vor.u32 %v9465_v62, %v7502_v61 }
  0xb1   :  { %v9476_v29 = vld [vmem:[%s14831_s1 + $0xc04] sm:$0xf]  ;;  %v7307_v42 = vor.u32 %v9412_v25, %v7304_v26  ;;  %2944 = vmatpush.bf16.msrb.mxu1 %v7595_v27  ;;  %2970 = vmatpush.bf16.msrb.mxu3 %v6319_v32  ;;  %v9265_v3 = vld [vmem:[%s14831_s1 + $0x564] sm:$0xf0] }
  0xb2   :  { %v7560_v30 = vld [vmem:[%s14831_s1 + $0xc20] sm:$0xf0]  ;;  %v6958_v4 = vld [vmem:[%s14831_s1 + $0x748] sm:$0xf]  ;;  %v6703_v11 = vor.u32 %v9265_v3, %v6702_v2 }
  0xb3   :  { %v7563_v46 = vor.u32 %v9476_v29, %v7560_v30  ;;  %2932 = vmatpush.bf16.msrb.mxu0 %v7307_v42  ;;  %v9329_v6 = vld [vmem:[%s14831_s1 + $0x764] sm:$0xf0] }
  0xb4   :  { %2958 = vmatpush.bf16.msrb.mxu2 %v6031_v47  ;;  %v7214_v7 = vld [vmem:[%s14831_s1 + $0x948] sm:$0xf]  ;;  %v6959_v12 = vor.u32 %v9329_v6, %v6958_v4 }
  0xb5   :  { %2945 = vmatpush.bf16.msrb.mxu1 %v7563_v46  ;;  %2971 = vmatpush.bf16.msrb.mxu3 %v6287_v50  ;;  %v9393_v8 = vld [vmem:[%s14831_s1 + $0x964] sm:$0xf0] }
  0xb6   :  { %2933 = vmatmul.bf16.vlgmr.msrb.gmra.mxu0 %v10378_v41  ;;  %v7470_v9 = vld [vmem:[%s14831_s1 + $0xb48] sm:$0xf]  ;;  %v7215_v13 = vor.u32 %v9393_v8, %v7214_v7 }
  0xb7   :  { %2977 = vmatpush.bf16.msra.mxu0 %v6767_v51  ;;  %v9457_v10 = vld [vmem:[%s14831_s1 + $0xb64] sm:$0xf0]  ;;  %2959 = vmatmul.bf16.vlgmr.msrb.gmra.mxu2 %v10214_v19 }
  0xb8   :  { %3003 = vmatpush.bf16.msra.mxu2 %v7279_v53  ;;  %2946 = vmatmul.bf16.vlgmr.msrb.gmra.mxu1 %v10368_v37  ;;  %v6670_v14 = vld [vmem:[%s14831_s1 + $0x508] sm:$0xf]  ;;  %v7471_v17 = vor.u32 %v9457_v10, %v7470_v9 }
  0xb9   :  { %2990 = vmatpush.bf16.msra.mxu1 %v7023_v52  ;;  %3016 = vmatpush.bf16.msra.mxu3 %v7535_v57  ;;  %v9257_v15 = vld [vmem:[%s14831_s1 + $0x524] sm:$0xf0] }
  0xba   :  { %2972 = vmatmul.bf16.vlgmr.msrb.gmra.mxu3 %v10218_v22  ;;  %v6926_v16 = vld [vmem:[%s14831_s1 + $0x708] sm:$0xf]  ;;  %v6671_v27 = vor.u32 %v9257_v15, %v6670_v14 }
  0xbb   :  { %2978 = vmatpush.bf16.msra.mxu0 %v6735_v63  ;;  %v9321_v21 = vld [vmem:[%s14831_s1 + $0x724] sm:$0xf0] }
  0xbc   :  { %3004 = vmatpush.bf16.msra.mxu2 %v7247_v1  ;;  %v7182_v23 = vld [vmem:[%s14831_s1 + $0x908] sm:$0xf]  ;;  %v6927_v28 = vor.u32 %v9321_v21, %v6926_v16  ;;  %v9149_v16 = vld [vmem:[%s14831_s1 + $0x1cc] sm:$0xf] }
  0xbd   :  { %2991 = vmatpush.bf16.msra.mxu1 %v6991_v0  ;;  %3017 = vmatpush.bf16.msra.mxu3 %v7503_v5  ;;  %v9385_v24 = vld [vmem:[%s14831_s1 + $0x924] sm:$0xf0]  ;;  %v6256_v21 = vld [vmem:[%s14831_s1 + $0x1e8] sm:$0xf0] }
  0xbe   :  { %v7438_v25 = vld [vmem:[%s14831_s1 + $0xb08] sm:$0xf]  ;;  %v7183_v29 = vor.u32 %v9385_v24, %v7182_v23  ;;  %v9213_v23 = vld [vmem:[%s14831_s1 + $0x3cc] sm:$0xf] }
  0xbf   :  { %v9449_v26 = vld [vmem:[%s14831_s1 + $0xb24] sm:$0xf0]  ;;  %2979 = vmatpush.bf16.msra.mxu0 %v6703_v11  ;;  %v6512_v24 = vld [vmem:[%s14831_s1 + $0x3e8] sm:$0xf0] }
  0xc0   :  { %3005 = vmatpush.bf16.msra.mxu2 %v7215_v13  ;;  %v6638_v30 = vld [vmem:[%s14831_s1 + $0x4c8] sm:$0xf]  ;;  %v7439_v33 = vor.u32 %v9449_v26, %v7438_v25 }
  0xc1   :  { %2992 = vmatpush.bf16.msra.mxu1 %v6959_v12  ;;  %v9249_v31 = vld [vmem:[%s14831_s1 + $0x4e4] sm:$0xf0]  ;;  %3018 = vmatpush.bf16.msra.mxu3 %v7471_v17 }
  0xc2   :  { %v6894_v32 = vld [vmem:[%s14831_s1 + $0x6c8] sm:$0xf]  ;;  %v6639_v42 = vor.u32 %v9249_v31, %v6638_v30  ;;  %v6259_v31 = vor.u32 %v9149_v16, %v6256_v21  ;;  %v9245_v16 = vld [vmem:[%s14831_s1 + $0x4cc] sm:$0xf] }
  0xc3   :  { %v9313_v34 = vld [vmem:[%s14831_s1 + $0x6e4] sm:$0xf0]  ;;  %2980 = vmatpush.bf16.msra.mxu0 %v6671_v27  ;;  %v9277_v27 = vld [vmem:[%s14831_s1 + $0x5cc] sm:$0xf] }
  0xc4   :  { %v7150_v35 = vld [vmem:[%s14831_s1 + $0x8c8] sm:$0xf]  ;;  %3006 = vmatpush.bf16.msra.mxu2 %v7183_v29  ;;  %v6895_v43 = vor.u32 %v9313_v34, %v6894_v32  ;;  %v6515_v32 = vor.u32 %v9213_v23, %v6512_v24 }
  0xc5   :  { %v9377_v36 = vld [vmem:[%s14831_s1 + $0x8e4] sm:$0xf0]  ;;  %2993 = vmatpush.bf16.msra.mxu1 %v6927_v28  ;;  %3019 = vmatpush.bf16.msra.mxu3 %v7439_v33  ;;  %v6768_v28 = vld [vmem:[%s14831_s1 + $0x5e8] sm:$0xf0] }
  0xc6   :  { %v7406_v38 = vld [vmem:[%s14831_s1 + $0xac8] sm:$0xf]  ;;  %v7151_v44 = vor.u32 %v9377_v36, %v7150_v35  ;;  %v9141_v35 = vld [vmem:[%s14831_s1 + $0x18c] sm:$0xf]  ;;  %v6771_v36 = vor.u32 %v9277_v27, %v6768_v28 }
  0xc7   :  { %v9441_v39 = vld [vmem:[%s14831_s1 + $0xae4] sm:$0xf0]  ;;  %2981 = vmatpush.bf16.msra.mxu0 %v6639_v42  ;;  %v6480_v42 = vld [vmem:[%s14831_s1 + $0x3a8] sm:$0xf0] }
  0xc8   :  { %v6606_v45 = vld [vmem:[%s14831_s1 + $0x488] sm:$0xf]  ;;  %v7407_v48 = vor.u32 %v9441_v39, %v7406_v38  ;;  %3007 = vmatpush.bf16.msra.mxu2 %v7151_v44  ;;  %v6224_v38 = vld [vmem:[%s14831_s1 + $0x1a8] sm:$0xf0] }
  0xc9   :  { %v9241_v46 = vld [vmem:[%s14831_s1 + $0x4a4] sm:$0xf0]  ;;  %2994 = vmatpush.bf16.msra.mxu1 %v6895_v43  ;;  %v9205_v39 = vld [vmem:[%s14831_s1 + $0x38c] sm:$0xf] }
  0xca   :  { %v6862_v47 = vld [vmem:[%s14831_s1 + $0x688] sm:$0xf]  ;;  %v6607_v54 = vor.u32 %v9241_v46, %v6606_v45  ;;  %3020 = vmatpush.bf16.msra.mxu3 %v7407_v48  ;;  %v9269_v43 = vld [vmem:[%s14831_s1 + $0x58c] sm:$0xf]  ;;  %v6227_v46 = vor.u32 %v9141_v35, %v6224_v38 }
  0xcb   :  { %v9305_v49 = vld [vmem:[%s14831_s1 + $0x6a4] sm:$0xf0]  ;;  %v6736_v44 = vld [vmem:[%s14831_s1 + $0x5a8] sm:$0xf0] }
  0xcc   :  { %v7118_v50 = vld [vmem:[%s14831_s1 + $0x888] sm:$0xf]  ;;  %v6863_v55 = vor.u32 %v9305_v49, %v6862_v47  ;;  %2982 = vmatpush.bf16.msra.mxu0 %v6607_v54  ;;  %v6483_v47 = vor.u32 %v9205_v39, %v6480_v42  ;;  %v6448_v54 = vld [vmem:[%s14831_s1 + $0x368] sm:$0xf0] }
  0xcd   :  { %v9369_v51 = vld [vmem:[%s14831_s1 + $0x8a4] sm:$0xf0]  ;;  %v9109_v27 = vld [vmem:[%s14831_s1 + $0x8c] sm:$0xf] }
  0xce   :  { %v7374_v52 = vld [vmem:[%s14831_s1 + $0xa88] sm:$0xf]  ;;  %v7119_v56 = vor.u32 %v9369_v51, %v7118_v50  ;;  %2995 = vmatpush.bf16.msra.mxu1 %v6863_v55  ;;  %v9133_v50 = vld [vmem:[%s14831_s1 + $0x14c] sm:$0xf]  ;;  %v6739_v51 = vor.u32 %v9269_v43, %v6736_v44 }
  0xcf   :  { %v9433_v53 = vld [vmem:[%s14831_s1 + $0xaa4] sm:$0xf0]  ;;  %v9261_v55 = vld [vmem:[%s14831_s1 + $0x54c] sm:$0xf] }
  0xd0   :  { %v6574_v57 = vld [vmem:[%s14831_s1 + $0x448] sm:$0xf]  ;;  %v7375_v60 = vor.u32 %v9433_v53, %v7374_v52  ;;  %3008 = vmatpush.bf16.msra.mxu2 %v7119_v56  ;;  %v6192_v52 = vld [vmem:[%s14831_s1 + $0x168] sm:$0xf0] }
  0xd1   :  { %v9233_v58 = vld [vmem:[%s14831_s1 + $0x464] sm:$0xf0]  ;;  %v9197_v53 = vld [vmem:[%s14831_s1 + $0x34c] sm:$0xf] }
  0xd2   :  { %v6830_v59 = vld [vmem:[%s14831_s1 + $0x648] sm:$0xf]  ;;  %v6575_v2 = vor.u32 %v9233_v58, %v6574_v57  ;;  %3021 = vmatpush.bf16.msra.mxu3 %v7375_v60  ;;  %v6704_v56 = vld [vmem:[%s14831_s1 + $0x568] sm:$0xf0]  ;;  %v6195_v58 = vor.u32 %v9133_v50, %v6192_v52 }
  0xd3   :  { %v9297_v61 = vld [vmem:[%s14831_s1 + $0x664] sm:$0xf0]  ;;  %v9101_v44 = vld [vmem:[%s14831_s1 + $0x4c] sm:$0xf] }
  0xd4   :  { %v7086_v62 = vld [vmem:[%s14831_s1 + $0x848] sm:$0xf]  ;;  %v6831_v5 = vor.u32 %v9297_v61, %v6830_v59  ;;  %2983 = vmatpush.bf16.msra.mxu0 %v6575_v2  ;;  %v6451_v59 = vor.u32 %v9197_v53, %v6448_v54  ;;  %v6416_v2 = vld [vmem:[%s14831_s1 + $0x328] sm:$0xf0] }
  0xd5   :  { %v9361_v63 = vld [vmem:[%s14831_s1 + $0x864] sm:$0xf0]  ;;  %v6320_v50 = vld [vmem:[%s14831_s1 + $0x268] sm:$0xf0] }
  0xd6   :  { %v7342_v0 = vld [vmem:[%s14831_s1 + $0xa48] sm:$0xf]  ;;  %v7087_v6 = vor.u32 %v9361_v63, %v7086_v62  ;;  %2996 = vmatpush.bf16.msra.mxu1 %v6831_v5  ;;  %v9125_v62 = vld [vmem:[%s14831_s1 + $0x10c] sm:$0xf]  ;;  %v6707_v63 = vor.u32 %v9261_v55, %v6704_v56 }
  0xd7   :  { %v9425_v1 = vld [vmem:[%s14831_s1 + $0xa64] sm:$0xf0]  ;;  %v6576_v52 = vld [vmem:[%s14831_s1 + $0x468] sm:$0xf0] }
  0xd8   :  { %v6542_v3 = vld [vmem:[%s14831_s1 + $0x408] sm:$0xf]  ;;  %v7343_v10 = vor.u32 %v9425_v1, %v7342_v0  ;;  %3009 = vmatpush.bf16.msra.mxu2 %v7087_v6  ;;  %v6160_v0 = vld [vmem:[%s14831_s1 + $0x128] sm:$0xf0] }
  0xd9   :  { %v9225_v4 = vld [vmem:[%s14831_s1 + $0x424] sm:$0xf0]  ;;  %v9189_v1 = vld [vmem:[%s14831_s1 + $0x30c] sm:$0xf] }
  0xda   :  { %v6798_v7 = vld [vmem:[%s14831_s1 + $0x608] sm:$0xf]  ;;  %v6543_v17 = vor.u32 %v9225_v4, %v6542_v3  ;;  %3022 = vmatpush.bf16.msra.mxu3 %v7343_v10  ;;  %v9253_v3 = vld [vmem:[%s14831_s1 + $0x50c] sm:$0xf] }
  0xdb   :  { %v9289_v8 = vld [vmem:[%s14831_s1 + $0x624] sm:$0xf0]  ;;  %v6672_v4 = vld [vmem:[%s14831_s1 + $0x528] sm:$0xf0] }
  0xdc   :  { %v7054_v9 = vld [vmem:[%s14831_s1 + $0x808] sm:$0xf]  ;;  %v6799_v25 = vor.u32 %v9289_v8, %v6798_v7  ;;  %2984 = vmatpush.bf16.msra.mxu0 %v6543_v17  ;;  %v6163_v7 = vor.u32 %v9125_v62, %v6160_v0  ;;  %v6419_v8 = vor.u32 %v9189_v1, %v6416_v2  ;;  %v9117_v10 = vld [vmem:[%s14831_s1 + $0xcc] sm:$0xf]  ;;  %v2804_v62 = vpop.f32.mrf.mxu2 }
  0xdd   :  { %v9353_v11 = vld [vmem:[%s14831_s1 + $0x824] sm:$0xf0]  ;;  %v6640_v17 = vld [vmem:[%s14831_s1 + $0x4e8] sm:$0xf0] }
  0xde   :  { %v7310_v12 = vld [vmem:[%s14831_s1 + $0xa08] sm:$0xf]  ;;  %v7055_v26 = vor.u32 %v9353_v11, %v7054_v9  ;;  %2997 = vmatpush.bf16.msra.mxu1 %v6799_v25  ;;  %v6128_v11 = vld [vmem:[%s14831_s1 + $0xe8] sm:$0xf0] }
  0xdf   :  { %v9417_v13 = vld [vmem:[%s14831_s1 + $0xa24] sm:$0xf0]  ;;  %2985 = vmatmul.bf16.vlgmr.msra.gmra.mxu0 %v10212_v18  ;;  %v6131_v24 = vor.u32 %v9117_v10, %v6128_v11  ;;  %v6288_v0 = vld [vmem:[%s14831_s1 + $0x228] sm:$0xf0] }
  0xe0   :  { %v7790_v14 = vld [vmem:[%s14831_s1 + $0xdc8] sm:$0xf]  ;;  %v7311_v29 = vor.u32 %v9417_v13, %v7310_v12  ;;  %3010 = vmatpush.bf16.msra.mxu2 %v7055_v26  ;;  %v6675_v12 = vor.u32 %v9253_v3, %v6672_v4  ;;  %v9181_v13 = vld [vmem:[%s14831_s1 + $0x2cc] sm:$0xf]  ;;  %v2817_v4 = vpop.f32.mrf.mxu3 }
  0xe1   :  { %v9537_v15 = vld [vmem:[%s14831_s1 + $0xde4] sm:$0xf0]  ;;  %2998 = vmatmul.bf16.vlgmr.msra.gmra.mxu1 %v10216_v20  ;;  %v9221_v1 = vld [vmem:[%s14831_s1 + $0x40c] sm:$0xf] }
  0xe2   :  { %v7791_v30 = vor.u32 %v9537_v15, %v7790_v14  ;;  %v7758_v33 = vld [vmem:[%s14831_s1 + $0xd88] sm:$0xf]  ;;  %3023 = vmatpush.bf16.msra.mxu3 %v7311_v29  ;;  %3042 = vmatpush.bf16.msrb.mxu1 %v6259_v31  ;;  %v6384_v14 = vld [vmem:[%s14831_s1 + $0x2e8] sm:$0xf0]  ;;  %v11041_v15 = vld [vmem:[%s14833_s2] sm:$0xff]  ;;  %v6643_v29 = vor.u32 %v9245_v16, %v6640_v17 }
  0xe3   :  { %v9529_v34 = vld [vmem:[%s14831_s1 + $0xda4] sm:$0xf0]  ;;  %3011 = vmatmul.bf16.vlgmr.msra.gmra.mxu2 %v10376_v40  ;;  %v6387_v25 = vor.u32 %v9181_v13, %v6384_v14  ;;  %v488_v28 = vperm.slane %v11041_v15, 0  ;;  %v9173_v31 = vld [vmem:[%s14831_s1 + $0x28c] sm:$0xf] }
  0xe4   :  { %3029 = vmatpush.bf16.msrb.mxu0 %v7791_v30  ;;  %v7759_v45 = vor.u32 %v9529_v34, %v7758_v33  ;;  %3055 = vmatpush.bf16.msrb.mxu2 %v6515_v32  ;;  %v7726_v48 = vld [vmem:[%s14831_s1 + $0xd48] sm:$0xf]  ;;  %v6096_v30 = vld [vmem:[%s14831_s1 + $0xa8] sm:$0xf0] }
  0xe5   :  { %v9521_v49 = vld [vmem:[%s14831_s1 + $0xd64] sm:$0xf0]  ;;  %3024 = vmatmul.bf16.vlgmr.msra.gmra.mxu3 %v10378_v41  ;;  %v6352_v32 = vld [vmem:[%s14831_s1 + $0x2a8] sm:$0xf0]  ;;  %v6099_v38 = vor.u32 %v9109_v27, %v6096_v30 }
  0xe6   :  { %3068 = vmatpush.bf16.msrb.mxu3 %v6771_v36  ;;  %v7727_v57 = vor.u32 %v9521_v49, %v7726_v48  ;;  %3043 = vmatpush.bf16.msrb.mxu1 %v6227_v46  ;;  %v7694_v60 = vld [vmem:[%s14831_s1 + $0xd08] sm:$0xf]  ;;  %v9237_v33 = vld [vmem:[%s14831_s1 + $0x48c] sm:$0xf]  ;;  %v2778_v36 = vpop.f32.mrf.mxu0  ;;  %v6355_v39 = vor.u32 %v9173_v31, %v6352_v32  ;;  %v2791_v46 = vpop.f32.mrf.mxu1 }
  0xe7   :  { %v9513_v61 = vld [vmem:[%s14831_s1 + $0xd24] sm:$0xf0]  ;;  %v6608_v34 = vld [vmem:[%s14831_s1 + $0x4a8] sm:$0xf0] }
  0xe8   :  { %3030 = vmatpush.bf16.msrb.mxu0 %v7759_v45  ;;  %3056 = vmatpush.bf16.msrb.mxu2 %v6483_v47  ;;  %v7695_v5 = vor.u32 %v9513_v61, %v7694_v60  ;;  %v7662_v6 = vld [vmem:[%s14831_s1 + $0xcc8] sm:$0xf]  ;;  %v2779_v45 = vadd.f32 %v2778_v36, %v488_v28  ;;  %v6611_v47 = vor.u32 %v9237_v33, %v6608_v34  ;;  %v6064_v48 = vld [vmem:[%s14831_s1 + $0x68] sm:$0xf0] }
  0xe9   :  { %v9505_v9 = vld [vmem:[%s14831_s1 + $0xce4] sm:$0xf0]  ;;  %v9165_v49 = vld [vmem:[%s14831_s1 + $0x24c] sm:$0xf] }
  0xea   :  { %3069 = vmatpush.bf16.msrb.mxu3 %v6739_v51  ;;  %3044 = vmatpush.bf16.msrb.mxu1 %v6195_v58  ;;  %v7663_v21 = vor.u32 %v9505_v9, %v7662_v6  ;;  %v7630_v23 = vld [vmem:[%s14831_s1 + $0xc88] sm:$0xf]  ;;  %v9229_v51 = vld [vmem:[%s14831_s1 + $0x44c] sm:$0xf]  ;;  %v2792_v53 = vadd.f32 %v2791_v46, %v2779_v45  ;;  %v6323_v58 = vor.u32 %v9165_v49, %v6320_v50 }
  0xeb   :  { %v9497_v26 = vld [vmem:[%s14831_s1 + $0xca4] sm:$0xf0]  ;;  %v6032_v60 = vld [vmem:[%s14831_s1 + $0x28] sm:$0xf0] }
  0xec   :  { %3031 = vmatpush.bf16.msrb.mxu0 %v7727_v57  ;;  %3057 = vmatpush.bf16.msrb.mxu2 %v6451_v59  ;;  %v7631_v35 = vor.u32 %v9497_v26, %v7630_v23  ;;  %v7598_v42 = vld [vmem:[%s14831_s1 + $0xc48] sm:$0xf]  ;;  %v6067_v57 = vor.u32 %v9101_v44, %v6064_v48  ;;  %v9093_v59 = vld [vmem:[%s14831_s1 + $0xc] sm:$0xf]  ;;  %v2805_v3 = vadd.f32 %v2804_v62, %v2792_v53 }
  0xed   :  { %v9489_v43 = vld [vmem:[%s14831_s1 + $0xc64] sm:$0xf0]  ;;  %v9157_v61 = vld [vmem:[%s14831_s1 + $0x20c] sm:$0xf]  ;;  %v6035_v14 = vor.u32 %v9093_v59, %v6032_v60 }
  0xee   :  { %3070 = vmatpush.bf16.msrb.mxu3 %v6707_v63  ;;  %3045 = vmatpush.bf16.msrb.mxu1 %v6163_v7  ;;  %v7599_v54 = vor.u32 %v9489_v43, %v7598_v42  ;;  %v7566_v55 = vld [vmem:[%s14831_s1 + $0xc08] sm:$0xf]  ;;  %v6579_v63 = vor.u32 %v9229_v51, %v6576_v52  ;;  %v6544_v2 = vld [vmem:[%s14831_s1 + $0x428] sm:$0xf0]  ;;  %v2780_v13 = vpop.f32.mrf.mxu0  ;;  %v6291_v16 = vor.u32 %v9157_v61, %v6288_v0  ;;  %v2793_v23 = vpop.f32.mrf.mxu1 }
  0xef   :  { %v9481_v56 = vld [vmem:[%s14831_s1 + $0xc24] sm:$0xf0]  ;;  %v7024_v6 = vld [vmem:[%s14831_s1 + $0x7e8] sm:$0xf0]  ;;  %v2819_v42 = vpop.f32.mrf.mxu3 }
  0xf0   :  { %3032 = vmatpush.bf16.msrb.mxu0 %v7695_v5  ;;  %3058 = vmatpush.bf16.msrb.mxu2 %v6419_v8  ;;  %v9341_v5 = vld [vmem:[%s14831_s1 + $0x7cc] sm:$0xf]  ;;  %v7567_v8 = vor.u32 %v9481_v56, %v7566_v55 }
  0xf1   :  { %v9405_v7 = vld [vmem:[%s14831_s1 + $0x9cc] sm:$0xf] }
  0xf2   :  { %3071 = vmatpush.bf16.msrb.mxu3 %v6675_v12  ;;  %3046 = vmatpush.bf16.msrb.mxu1 %v6131_v24  ;;  %v7280_v9 = vld [vmem:[%s14831_s1 + $0x9e8] sm:$0xf0]  ;;  %v11140_v12 = vadd.f32 %v2817_v4, %v2805_v3  ;;  %v6547_v24 = vor.u32 %v9221_v1, %v6544_v2 }
  0xf3   :  { %v9469_v10 = vld [vmem:[%s14831_s1 + $0xbcc] sm:$0xf]  ;;  %v7283_v26 = vor.u32 %v9405_v7, %v7280_v9 }
  0xf4   :  { %3033 = vmatpush.bf16.msrb.mxu0 %v7663_v21  ;;  %3059 = vmatpush.bf16.msrb.mxu2 %v6387_v25  ;;  %v7536_v11 = vld [vmem:[%s14831_s1 + $0xbe8] sm:$0xf0]  ;;  %v7027_v25 = vor.u32 %v9341_v5, %v7024_v6 }
  0xf5   :  { %v9533_v17 = vld [vmem:[%s14831_s1 + $0xdcc] sm:$0xf]  ;;  %v7539_v27 = vor.u32 %v9469_v10, %v7536_v11 }
  0xf6   :  { %3072 = vmatpush.bf16.msrb.mxu3 %v6643_v29  ;;  %3047 = vmatpush.bf16.msrb.mxu1 %v6099_v38  ;;  %v7792_v21 = vld [vmem:[%s14831_s1 + $0xde8] sm:$0xf0]  ;;  %v2806_v38 = vpop.f32.mrf.mxu2  ;;  %v2830_v3 = vpop.f32.mrf.mxu0 }
  0xf7   :  { %v9333_v28 = vld [vmem:[%s14831_s1 + $0x78c] sm:$0xf]  ;;  %v7795_v31 = vor.u32 %v9533_v17, %v7792_v21  ;;  %v2843_v4 = vpop.f32.mrf.mxu1  ;;  %v2831_v10 = vadd.f32 %v2830_v3, %v11140_v12  ;;  %v11275_v38 = vpop.f32.mrf.mxu3 }
  0xf8   :  { %3034 = vmatpush.bf16.msrb.mxu0 %v7631_v35  ;;  %3060 = vmatpush.bf16.msrb.mxu2 %v6355_v39  ;;  %v6992_v29 = vld [vmem:[%s14831_s1 + $0x7a8] sm:$0xf0] }
  0xf9   :  { %v9397_v30 = vld [vmem:[%s14831_s1 + $0x98c] sm:$0xf]  ;;  %v6995_v39 = vor.u32 %v9333_v28, %v6992_v29  ;;  %v2844_v21 = vadd.f32 %v2843_v4, %v2831_v10  ;;  %v6262_v4 = vld [vmem:[%s14831_s1 + $0x1d0] sm:$0xf] }
  0xfa   :  { %3073 = vmatpush.bf16.msrb.mxu3 %v6611_v47  ;;  %3048 = vmatpush.bf16.msrb.mxu1 %v6067_v57  ;;  %v7248_v32 = vld [vmem:[%s14831_s1 + $0x9a8] sm:$0xf0]  ;;  %v6774_v10 = vld [vmem:[%s14831_s1 + $0x5d0] sm:$0xf] }
  0xfb   :  { %v9461_v33 = vld [vmem:[%s14831_s1 + $0xb8c] sm:$0xf]  ;;  %v7251_v43 = vor.u32 %v9397_v30, %v7248_v32 }
  0xfc   :  { %3035 = vmatpush.bf16.msrb.mxu0 %v7599_v54  ;;  %3061 = vmatpush.bf16.msrb.mxu2 %v6323_v58  ;;  %v7504_v34 = vld [vmem:[%s14831_s1 + $0xba8] sm:$0xf0] }
  0xfd   :  { %v9525_v35 = vld [vmem:[%s14831_s1 + $0xd8c] sm:$0xf]  ;;  %v7507_v44 = vor.u32 %v9461_v33, %v7504_v34 }
  0xfe   :  { %3074 = vmatpush.bf16.msrb.mxu3 %v6579_v63  ;;  %3049 = vmatpush.bf16.msrb.mxu1 %v6035_v14  ;;  %v7760_v36 = vld [vmem:[%s14831_s1 + $0xda8] sm:$0xf0]  ;;  %v2856_v29 = vpop.f32.mrf.mxu2  ;;  %v2832_v42 = vpop.f32.mrf.mxu0 }
  0xff   :  { %v9325_v45 = vld [vmem:[%s14831_s1 + $0x74c] sm:$0xf]  ;;  %v7763_v48 = vor.u32 %v9525_v35, %v7760_v36  ;;  %v11267_v34 = vadd.f32 %v2856_v29, %v2844_v21  ;;  %v9210_v29 = vld [vmem:[%s14831_s1 + $0x3ac] sm:$0xf0] }
 0x100   :  { %3036 = vmatpush.bf16.msrb.mxu0 %v7567_v8  ;;  %3062 = vmatpush.bf16.msrb.mxu2 %v6291_v16  ;;  %v6960_v46 = vld [vmem:[%s14831_s1 + $0x768] sm:$0xf0] }
 0x101   :  { %v9389_v47 = vld [vmem:[%s14831_s1 + $0x94c] sm:$0xf]  ;;  %v6963_v54 = vor.u32 %v9325_v45, %v6960_v46  ;;  %3050 = vmatmul.bf16.vlgmr.msrb.gmra.mxu1 %v10214_v19 }
 0x102   :  { %3075 = vmatpush.bf16.msrb.mxu3 %v6547_v24  ;;  %3094 = vmatpush.bf16.msra.mxu1 %v7283_v26  ;;  %v7216_v49 = vld [vmem:[%s14831_s1 + $0x968] sm:$0xf0] }
 0x103   :  { %3037 = vmatmul.bf16.vlgmr.msrb.gmra.mxu0 %v10368_v37  ;;  %v9453_v50 = vld [vmem:[%s14831_s1 + $0xb4c] sm:$0xf]  ;;  %3063 = vmatmul.bf16.vlgmr.msrb.gmra.mxu2 %v10218_v22  ;;  %v7219_v55 = vor.u32 %v9389_v47, %v7216_v49 }
 0x104   :  { %3081 = vmatpush.bf16.msra.mxu0 %v7027_v25  ;;  %3107 = vmatpush.bf16.msra.mxu2 %v7539_v27  ;;  %v7472_v51 = vld [vmem:[%s14831_s1 + $0xb68] sm:$0xf0] }
 0x105   :  { %v9517_v52 = vld [vmem:[%s14831_s1 + $0xd4c] sm:$0xf]  ;;  %3076 = vmatmul.bf16.vlgmr.msrb.gmra.mxu3 %v10212_v18  ;;  %v7475_v56 = vor.u32 %v9453_v50, %v7472_v51 }
 0x106   :  { %3120 = vmatpush.bf16.msra.mxu3 %v7795_v31  ;;  %v7728_v53 = vld [vmem:[%s14831_s1 + $0xd68] sm:$0xf0]  ;;  %3095 = vmatpush.bf16.msra.mxu1 %v7251_v43  ;;  %v2845_v43 = vpop.f32.mrf.mxu1 }
 0x107   :  { %v9317_v57 = vld [vmem:[%s14831_s1 + $0x70c] sm:$0xf]  ;;  %v7731_v60 = vor.u32 %v9517_v52, %v7728_v53  ;;  %v9138_v43 = vld [vmem:[%s14831_s1 + $0x16c] sm:$0xf0] }
 0x108   :  { %3082 = vmatpush.bf16.msra.mxu0 %v6995_v39  ;;  %3108 = vmatpush.bf16.msra.mxu2 %v7507_v44  ;;  %v6928_v58 = vld [vmem:[%s14831_s1 + $0x728] sm:$0xf0] }
 0x109   :  { %v9381_v59 = vld [vmem:[%s14831_s1 + $0x90c] sm:$0xf]  ;;  %v6931_v2 = vor.u32 %v9317_v57, %v6928_v58 }
 0x10a   :  { %3121 = vmatpush.bf16.msra.mxu3 %v7763_v48  ;;  %v7184_v61 = vld [vmem:[%s14831_s1 + $0x928] sm:$0xf0]  ;;  %3096 = vmatpush.bf16.msra.mxu1 %v7219_v55 }
 0x10b   :  { %v9445_v62 = vld [vmem:[%s14831_s1 + $0xb0c] sm:$0xf]  ;;  %v7187_v5 = vor.u32 %v9381_v59, %v7184_v61 }
 0x10c   :  { %v7440_v63 = vld [vmem:[%s14831_s1 + $0xb28] sm:$0xf0]  ;;  %3083 = vmatpush.bf16.msra.mxu0 %v6963_v54  ;;  %3109 = vmatpush.bf16.msra.mxu2 %v7475_v56 }
 0x10d   :  { %v9509_v0 = vld [vmem:[%s14831_s1 + $0xd0c] sm:$0xf]  ;;  %v7443_v6 = vor.u32 %v9445_v62, %v7440_v63  ;;  %v2858_v63 = vpop.f32.mrf.mxu2 }
 0x10e   :  { %v7696_v1 = vld [vmem:[%s14831_s1 + $0xd28] sm:$0xf0]  ;;  %3122 = vmatpush.bf16.msra.mxu3 %v7731_v60  ;;  %3097 = vmatpush.bf16.msra.mxu1 %v7187_v5  ;;  %v9154_v5 = vld [vmem:[%s14831_s1 + $0x1ec] sm:$0xf0] }
 0x10f   :  { %v9309_v7 = vld [vmem:[%s14831_s1 + $0x6cc] sm:$0xf]  ;;  %v7699_v11 = vor.u32 %v9509_v0, %v7696_v1  ;;  %v6263_v21 = vor.u32 %v9154_v5, %v6262_v4  ;;  %v9322_v63 = vld [vmem:[%s14831_s1 + $0x72c] sm:$0xf0] }
 0x110   :  { %v6896_v8 = vld [vmem:[%s14831_s1 + $0x6e8] sm:$0xf0]  ;;  %3084 = vmatpush.bf16.msra.mxu0 %v6931_v2  ;;  %3110 = vmatpush.bf16.msra.mxu2 %v7443_v6  ;;  %v6518_v6 = vld [vmem:[%s14831_s1 + $0x3d0] sm:$0xf] }
 0x111   :  { %v9373_v9 = vld [vmem:[%s14831_s1 + $0x8cc] sm:$0xf]  ;;  %v6899_v23 = vor.u32 %v9309_v7, %v6896_v8  ;;  %v2871_v7 = vpop.f32.mrf.mxu3  ;;  %v6134_v4 = vld [vmem:[%s14831_s1 + $0xd0] sm:$0xf] }
 0x112   :  { %v7152_v13 = vld [vmem:[%s14831_s1 + $0x8e8] sm:$0xf0]  ;;  %3123 = vmatpush.bf16.msra.mxu3 %v7699_v11  ;;  %v9282_v11 = vld [vmem:[%s14831_s1 + $0x5ec] sm:$0xf0] }
 0x113   :  { %v9437_v14 = vld [vmem:[%s14831_s1 + $0xacc] sm:$0xf]  ;;  %v7155_v24 = vor.u32 %v9373_v9, %v7152_v13  ;;  %v9218_v9 = vld [vmem:[%s14831_s1 + $0x3ec] sm:$0xf0] }
 0x114   :  { %v7408_v16 = vld [vmem:[%s14831_s1 + $0xae8] sm:$0xf0]  ;;  %3085 = vmatpush.bf16.msra.mxu0 %v6899_v23  ;;  %v6519_v23 = vor.u32 %v9218_v9, %v6518_v6  ;;  %v9122_v5 = vld [vmem:[%s14831_s1 + $0xec] sm:$0xf0] }
 0x115   :  { %v9501_v17 = vld [vmem:[%s14831_s1 + $0xccc] sm:$0xf]  ;;  %v7411_v25 = vor.u32 %v9437_v14, %v7408_v16  ;;  %3098 = vmatpush.bf16.msra.mxu1 %v7155_v24  ;;  %v7030_v16 = vld [vmem:[%s14831_s1 + $0x7d0] sm:$0xf]  ;;  %v6775_v24 = vor.u32 %v9282_v11, %v6774_v10 }
 0x116   :  { %v7664_v12 = vld [vmem:[%s14831_s1 + $0xce8] sm:$0xf0]  ;;  %v6390_v6 = vld [vmem:[%s14831_s1 + $0x2d0] sm:$0xf] }
 0x117   :  { %v9301_v26 = vld [vmem:[%s14831_s1 + $0x68c] sm:$0xf]  ;;  %v7667_v30 = vor.u32 %v9501_v17, %v7664_v12  ;;  %3111 = vmatpush.bf16.msra.mxu2 %v7411_v25  ;;  %v9346_v17 = vld [vmem:[%s14831_s1 + $0x7ec] sm:$0xf0] }
 0x118   :  { %v6864_v27 = vld [vmem:[%s14831_s1 + $0x6a8] sm:$0xf0]  ;;  %v6230_v25 = vld [vmem:[%s14831_s1 + $0x190] sm:$0xf] }
 0x119   :  { %v9365_v28 = vld [vmem:[%s14831_s1 + $0x88c] sm:$0xf]  ;;  %v6867_v39 = vor.u32 %v9301_v26, %v6864_v27  ;;  %3124 = vmatpush.bf16.msra.mxu3 %v7667_v30  ;;  %v9146_v26 = vld [vmem:[%s14831_s1 + $0x1ac] sm:$0xf0] }
 0x11a   :  { %v7120_v31 = vld [vmem:[%s14831_s1 + $0x8a8] sm:$0xf0]  ;;  %v6486_v27 = vld [vmem:[%s14831_s1 + $0x390] sm:$0xf] }
 0x11b   :  { %v9429_v32 = vld [vmem:[%s14831_s1 + $0xa8c] sm:$0xf]  ;;  %v7123_v44 = vor.u32 %v9365_v28, %v7120_v31  ;;  %3086 = vmatpush.bf16.msra.mxu0 %v6867_v39  ;;  %v7031_v28 = vor.u32 %v9346_v17, %v7030_v16  ;;  %v6742_v30 = vld [vmem:[%s14831_s1 + $0x590] sm:$0xf]  ;;  %v6487_v39 = vor.u32 %v9210_v29, %v6486_v27  ;;  %v2908_v27 = vpop.f32.mrf.mxu2 }
 0x11c   :  { %v7376_v33 = vld [vmem:[%s14831_s1 + $0xaa8] sm:$0xf0]  ;;  %v9274_v31 = vld [vmem:[%s14831_s1 + $0x5ac] sm:$0xf0] }
 0x11d   :  { %v9493_v35 = vld [vmem:[%s14831_s1 + $0xc8c] sm:$0xf]  ;;  %v7379_v45 = vor.u32 %v9429_v32, %v7376_v33  ;;  %3099 = vmatpush.bf16.msra.mxu1 %v7123_v44  ;;  %v6998_v32 = vld [vmem:[%s14831_s1 + $0x790] sm:$0xf]  ;;  %v6743_v42 = vor.u32 %v9274_v31, %v6742_v30 }
 0x11e   :  { %v7632_v36 = vld [vmem:[%s14831_s1 + $0xca8] sm:$0xf0]  ;;  %v9338_v33 = vld [vmem:[%s14831_s1 + $0x7ac] sm:$0xf0] }
 0x11f   :  { %v9293_v46 = vld [vmem:[%s14831_s1 + $0x64c] sm:$0xf]  ;;  %v7635_v49 = vor.u32 %v9493_v35, %v7632_v36  ;;  %3112 = vmatpush.bf16.msra.mxu2 %v7379_v45  ;;  %v6231_v35 = vor.u32 %v9146_v26, %v6230_v25  ;;  %v6198_v36 = vld [vmem:[%s14831_s1 + $0x150] sm:$0xf]  ;;  %v489_v45 = vperm.slane %v11041_v15, 1 }
 0x120   :  { %v6832_v47 = vld [vmem:[%s14831_s1 + $0x668] sm:$0xf0]  ;;  %v6454_v44 = vld [vmem:[%s14831_s1 + $0x350] sm:$0xf] }
 0x121   :  { %v9357_v48 = vld [vmem:[%s14831_s1 + $0x84c] sm:$0xf]  ;;  %v6835_v55 = vor.u32 %v9293_v46, %v6832_v47  ;;  %3125 = vmatpush.bf16.msra.mxu3 %v7635_v49  ;;  %v6999_v46 = vor.u32 %v9338_v33, %v6998_v32  ;;  %v9202_v47 = vld [vmem:[%s14831_s1 + $0x36c] sm:$0xf0]  ;;  %v2921_v33 = vpop.f32.mrf.mxu3 }
 0x122   :  { %v7088_v50 = vld [vmem:[%s14831_s1 + $0x868] sm:$0xf0]  ;;  %v9266_v49 = vld [vmem:[%s14831_s1 + $0x56c] sm:$0xf0] }
 0x123   :  { %v9421_v51 = vld [vmem:[%s14831_s1 + $0xa4c] sm:$0xf]  ;;  %v7091_v58 = vor.u32 %v9357_v48, %v7088_v50  ;;  %3087 = vmatpush.bf16.msra.mxu0 %v6835_v55  ;;  %v6710_v48 = vld [vmem:[%s14831_s1 + $0x550] sm:$0xf]  ;;  %v2870_v55 = vadd.f32 %v11275_v38, %v489_v45 }
 0x124   :  { %v7344_v52 = vld [vmem:[%s14831_s1 + $0xa68] sm:$0xf0]  ;;  %v6966_v50 = vld [vmem:[%s14831_s1 + $0x750] sm:$0xf] }
 0x125   :  { %v9485_v53 = vld [vmem:[%s14831_s1 + $0xc4c] sm:$0xf]  ;;  %v7347_v59 = vor.u32 %v9421_v51, %v7344_v52  ;;  %3100 = vmatpush.bf16.msra.mxu1 %v7091_v58  ;;  %v9330_v51 = vld [vmem:[%s14831_s1 + $0x76c] sm:$0xf0]  ;;  %v6199_v52 = vor.u32 %v9138_v43, %v6198_v36 }
 0x126   :  { %v7600_v54 = vld [vmem:[%s14831_s1 + $0xc68] sm:$0xf0]  ;;  %v6422_v58 = vld [vmem:[%s14831_s1 + $0x310] sm:$0xf] }
 0x127   :  { %v9285_v56 = vld [vmem:[%s14831_s1 + $0x60c] sm:$0xf]  ;;  %v7603_v0 = vor.u32 %v9485_v53, %v7600_v54  ;;  %3113 = vmatpush.bf16.msra.mxu2 %v7347_v59  ;;  %v6455_v53 = vor.u32 %v9202_v47, %v6454_v44  ;;  %v6711_v54 = vor.u32 %v9266_v49, %v6710_v48  ;;  %v6967_v59 = vor.u32 %v9330_v51, %v6966_v50  ;;  %v6678_v38 = vld [vmem:[%s14831_s1 + $0x510] sm:$0xf] }
 0x128   :  { %v6800_v57 = vld [vmem:[%s14831_s1 + $0x628] sm:$0xf0]  ;;  %v9186_v10 = vld [vmem:[%s14831_s1 + $0x2ec] sm:$0xf0] }
 0x129   :  { %v9349_v60 = vld [vmem:[%s14831_s1 + $0x80c] sm:$0xf]  ;;  %v6803_v8 = vor.u32 %v9285_v56, %v6800_v57  ;;  %3126 = vmatpush.bf16.msra.mxu3 %v7603_v0  ;;  %v6166_v56 = vld [vmem:[%s14831_s1 + $0x110] sm:$0xf] }
 0x12a   :  { %v7056_v61 = vld [vmem:[%s14831_s1 + $0x828] sm:$0xf0]  ;;  %v9130_v57 = vld [vmem:[%s14831_s1 + $0x12c] sm:$0xf0] }
 0x12b   :  { %v9413_v62 = vld [vmem:[%s14831_s1 + $0xa0c] sm:$0xf]  ;;  %v7059_v13 = vor.u32 %v9349_v60, %v7056_v61  ;;  %3088 = vmatpush.bf16.msra.mxu0 %v6803_v8  ;;  %v9194_v60 = vld [vmem:[%s14831_s1 + $0x32c] sm:$0xf0]  ;;  %v6167_v0 = vor.u32 %v9130_v57, %v6166_v56  ;;  %v2895_v8 = vpop.f32.mrf.mxu1 }
 0x12c   :  { %v7312_v1 = vld [vmem:[%s14831_s1 + $0xa28] sm:$0xf0]  ;;  %v9258_v61 = vld [vmem:[%s14831_s1 + $0x52c] sm:$0xf0] }
 0x12d   :  { %v9477_v2 = vld [vmem:[%s14831_s1 + $0xc0c] sm:$0xf]  ;;  %v7315_v14 = vor.u32 %v9413_v62, %v7312_v1  ;;  %3101 = vmatpush.bf16.msra.mxu1 %v7059_v13  ;;  %v6934_v62 = vld [vmem:[%s14831_s1 + $0x710] sm:$0xf]  ;;  %v2882_v1 = vpop.f32.mrf.mxu0 }
 0x12e   :  { %v7568_v3 = vld [vmem:[%s14831_s1 + $0xc28] sm:$0xf0]  ;;  %3089 = vmatmul.bf16.vlgmr.msra.gmra.mxu0 %v10216_v20  ;;  %v2883_v7 = vadd.f32 %v2882_v1, %v2870_v55  ;;  %v6935_v9 = vor.u32 %v9322_v63, %v6934_v62  ;;  %v6646_v11 = vld [vmem:[%s14831_s1 + $0x4d0] sm:$0xf]  ;;  %v2910_v63 = vpop.f32.mrf.mxu2 }
 0x12f   :  { %v7571_v12 = vor.u32 %v9477_v2, %v7568_v3  ;;  %3114 = vmatpush.bf16.msra.mxu2 %v7315_v14  ;;  %3133 = vmatpush.bf16.msrb.mxu0 %v6263_v21  ;;  %v6423_v2 = vor.u32 %v9194_v60, %v6422_v58  ;;  %v6679_v3 = vor.u32 %v9258_v61, %v6678_v38  ;;  %v9250_v13 = vld [vmem:[%s14831_s1 + $0x4ec] sm:$0xf0]  ;;  %v6168_v63 = vld [vmem:[%s14831_s1 + $0x130] sm:$0xf0] }
 0x130   :  { %3102 = vmatmul.bf16.vlgmr.msra.gmra.mxu1 %v10376_v40  ;;  %v6902_v14 = vld [vmem:[%s14831_s1 + $0x6d0] sm:$0xf]  ;;  %v2896_v17 = vadd.f32 %v2895_v8, %v2883_v7  ;;  %v6391_v21 = vor.u32 %v9186_v10, %v6390_v6 }
 0x131   :  { %3127 = vmatpush.bf16.msra.mxu3 %v7571_v12  ;;  %3146 = vmatpush.bf16.msrb.mxu1 %v6519_v23  ;;  %v9314_v16 = vld [vmem:[%s14831_s1 + $0x6ec] sm:$0xf0]  ;;  %v6135_v12 = vor.u32 %v9122_v5, %v6134_v4  ;;  %v6647_v23 = vor.u32 %v9250_v13, %v6646_v11  ;;  %v2923_v4 = vpop.f32.mrf.mxu3 }
 0x132   :  { %3115 = vmatmul.bf16.vlgmr.msra.gmra.mxu2 %v10378_v41  ;;  %v9114_v25 = vld [vmem:[%s14831_s1 + $0xac] sm:$0xf0]  ;;  %v2909_v32 = vadd.f32 %v2908_v27, %v2896_v17  ;;  %v6264_v17 = vld [vmem:[%s14831_s1 + $0x1f0] sm:$0xf0] }
 0x133   :  { %3159 = vmatpush.bf16.msrb.mxu2 %v6775_v24  ;;  %3134 = vmatpush.bf16.msrb.mxu0 %v6231_v35  ;;  %v6102_v24 = vld [vmem:[%s14831_s1 + $0x90] sm:$0xf]  ;;  %v2897_v49 = vpop.f32.mrf.mxu1 }
 0x134   :  { %3128 = vmatmul.bf16.vlgmr.msra.gmra.mxu3 %v10368_v37  ;;  %v6358_v26 = vld [vmem:[%s14831_s1 + $0x290] sm:$0xf] }
 0x135   :  { %3172 = vmatpush.bf16.msrb.mxu3 %v7031_v28  ;;  %3147 = vmatpush.bf16.msrb.mxu1 %v6487_v39  ;;  %v6903_v28 = vor.u32 %v9314_v16, %v6902_v14  ;;  %v9178_v29 = vld [vmem:[%s14831_s1 + $0x2ac] sm:$0xf0]  ;;  %v6103_v39 = vor.u32 %v9114_v25, %v6102_v24  ;;  %v2884_v43 = vpop.f32.mrf.mxu0  ;;  %v9150_v16 = vld [vmem:[%s14831_s1 + $0x1d4] sm:$0xf] }
 0x136   :  { %v6614_v30 = vld [vmem:[%s14831_s1 + $0x490] sm:$0xf]  ;;  %v6359_v44 = vor.u32 %v9178_v29, %v6358_v26 }
 0x137   :  { %3160 = vmatpush.bf16.msrb.mxu2 %v6743_v42  ;;  %3135 = vmatpush.bf16.msrb.mxu0 %v6199_v52  ;;  %v9242_v31 = vld [vmem:[%s14831_s1 + $0x4ac] sm:$0xf0]  ;;  %v11475_v42 = vadd.f32 %v2921_v33, %v2909_v32  ;;  %v9142_v32 = vld [vmem:[%s14831_s1 + $0x194] sm:$0xf] }
 0x138   :  { %v6870_v35 = vld [vmem:[%s14831_s1 + $0x690] sm:$0xf]  ;;  %v6615_v45 = vor.u32 %v9242_v31, %v6614_v30  ;;  %v6232_v33 = vld [vmem:[%s14831_s1 + $0x1b0] sm:$0xf0] }
 0x139   :  { %3173 = vmatpush.bf16.msrb.mxu3 %v6999_v46  ;;  %3148 = vmatpush.bf16.msrb.mxu1 %v6455_v53  ;;  %v9306_v36 = vld [vmem:[%s14831_s1 + $0x6ac] sm:$0xf0] }
 0x13a   :  { %v6070_v46 = vld [vmem:[%s14831_s1 + $0x50] sm:$0xf]  ;;  %v6871_v50 = vor.u32 %v9306_v36, %v6870_v35 }
 0x13b   :  { %3161 = vmatpush.bf16.msrb.mxu2 %v6711_v54  ;;  %3136 = vmatpush.bf16.msrb.mxu0 %v6167_v0  ;;  %v9106_v47 = vld [vmem:[%s14831_s1 + $0x6c] sm:$0xf0] }
 0x13c   :  { %v6326_v48 = vld [vmem:[%s14831_s1 + $0x250] sm:$0xf]  ;;  %v6071_v56 = vor.u32 %v9106_v47, %v6070_v46  ;;  %v6235_v46 = vor.u32 %v9142_v32, %v6232_v33 }
 0x13d   :  { %3174 = vmatpush.bf16.msrb.mxu3 %v6967_v59  ;;  %3149 = vmatpush.bf16.msrb.mxu1 %v6423_v2  ;;  %v9170_v51 = vld [vmem:[%s14831_s1 + $0x26c] sm:$0xf0]  ;;  %v2973_v33 = vpop.f32.mrf.mxu3 }
 0x13e   :  { %v6582_v52 = vld [vmem:[%s14831_s1 + $0x450] sm:$0xf]  ;;  %v6327_v59 = vor.u32 %v9170_v51, %v6326_v48  ;;  %v6200_v51 = vld [vmem:[%s14831_s1 + $0x170] sm:$0xf0] }
 0x13f   :  { %3162 = vmatpush.bf16.msrb.mxu2 %v6679_v3  ;;  %3137 = vmatpush.bf16.msrb.mxu0 %v6135_v12  ;;  %v9234_v53 = vld [vmem:[%s14831_s1 + $0x46c] sm:$0xf0] }
 0x140   :  { %v6838_v54 = vld [vmem:[%s14831_s1 + $0x650] sm:$0xf]  ;;  %v6583_v60 = vor.u32 %v9234_v53, %v6582_v52 }
 0x141   :  { %3175 = vmatpush.bf16.msrb.mxu3 %v6935_v9  ;;  %3150 = vmatpush.bf16.msrb.mxu1 %v6391_v21  ;;  %v9298_v55 = vld [vmem:[%s14831_s1 + $0x66c] sm:$0xf0] }
 0x142   :  { %v6038_v57 = vld [vmem:[%s14831_s1 + $0x10] sm:$0xf]  ;;  %v6839_v0 = vor.u32 %v9298_v55, %v6838_v54 }
 0x143   :  { %3163 = vmatpush.bf16.msrb.mxu2 %v6647_v23  ;;  %3138 = vmatpush.bf16.msrb.mxu0 %v6103_v39  ;;  %v9098_v58 = vld [vmem:[%s14831_s1 + $0x2c] sm:$0xf0] }
 0x144   :  { %v6294_v38 = vld [vmem:[%s14831_s1 + $0x210] sm:$0xf]  ;;  %v6039_v8 = vor.u32 %v9098_v58, %v6038_v57 }
 0x145   :  { %3176 = vmatpush.bf16.msrb.mxu3 %v6903_v28  ;;  %3151 = vmatpush.bf16.msrb.mxu1 %v6359_v44  ;;  %v9162_v61 = vld [vmem:[%s14831_s1 + $0x22c] sm:$0xf0]  ;;  %v6267_v28 = vor.u32 %v9150_v16, %v6264_v17  ;;  %v490_v16 = vperm.slane %v11041_v15, 2 }
 0x146   :  { %v6550_v62 = vld [vmem:[%s14831_s1 + $0x410] sm:$0xf]  ;;  %v6295_v13 = vor.u32 %v9162_v61, %v6294_v38  ;;  %v2934_v61 = vpop.f32.mrf.mxu0 }
 0x147   :  { %3164 = vmatpush.bf16.msrb.mxu2 %v6615_v45  ;;  %v9226_v1 = vld [vmem:[%s14831_s1 + $0x42c] sm:$0xf0]  ;;  %3139 = vmatpush.bf16.msrb.mxu0 %v6071_v56 }
 0x148   :  { %v6806_v2 = vld [vmem:[%s14831_s1 + $0x610] sm:$0xf]  ;;  %v6551_v14 = vor.u32 %v9226_v1, %v6550_v62  ;;  %v9126_v62 = vld [vmem:[%s14831_s1 + $0x114] sm:$0xf] }
 0x149   :  { %3177 = vmatpush.bf16.msrb.mxu3 %v6871_v50  ;;  %v9290_v3 = vld [vmem:[%s14831_s1 + $0x62c] sm:$0xf0]  ;;  %3152 = vmatpush.bf16.msrb.mxu1 %v6327_v59  ;;  %v9134_v50 = vld [vmem:[%s14831_s1 + $0x154] sm:$0xf] }
 0x14a   :  { %v7286_v5 = vld [vmem:[%s14831_s1 + $0x9d0] sm:$0xf]  ;;  %v6807_v12 = vor.u32 %v9290_v3, %v6806_v2  ;;  %v6203_v58 = vor.u32 %v9134_v50, %v6200_v51  ;;  %v2947_v2 = vpop.f32.mrf.mxu1 }
 0x14b   :  { %v9410_v6 = vld [vmem:[%s14831_s1 + $0x9ec] sm:$0xf0]  ;;  %3165 = vmatpush.bf16.msrb.mxu2 %v6583_v60  ;;  %3140 = vmatpush.bf16.msrb.mxu0 %v6039_v8 }
 0x14c   :  { %v7542_v7 = vld [vmem:[%s14831_s1 + $0xbd0] sm:$0xf]  ;;  %v7287_v21 = vor.u32 %v9410_v6, %v7286_v5 }
 0x14d   :  { %v9474_v9 = vld [vmem:[%s14831_s1 + $0xbec] sm:$0xf0]  ;;  %3178 = vmatpush.bf16.msrb.mxu3 %v6839_v0  ;;  %3153 = vmatpush.bf16.msrb.mxu1 %v6295_v13  ;;  %v2935_v0 = vadd.f32 %v2934_v61, %v11475_v42  ;;  %v6171_v42 = vor.u32 %v9126_v62, %v6168_v63  ;;  %v9118_v13 = vld [vmem:[%s14831_s1 + $0xd4] sm:$0xf] }
 0x14e   :  { %v7798_v10 = vld [vmem:[%s14831_s1 + $0xdd0] sm:$0xf]  ;;  %v7543_v23 = vor.u32 %v9474_v9, %v7542_v7  ;;  %3141 = vmatmul.bf16.vlgmr.msrb.gmra.mxu0 %v10214_v19 }
 0x14f   :  { %v9538_v11 = vld [vmem:[%s14831_s1 + $0xdec] sm:$0xf0]  ;;  %3166 = vmatpush.bf16.msrb.mxu2 %v6551_v14  ;;  %3185 = vmatpush.bf16.msra.mxu0 %v7287_v21  ;;  %v11635_v8 = vadd.f32 %v2947_v2, %v2935_v0  ;;  %v6136_v14 = vld [vmem:[%s14831_s1 + $0xf0] sm:$0xf0] }
 0x150   :  { %v7799_v24 = vor.u32 %v9538_v11, %v7798_v10  ;;  %v7254_v25 = vld [vmem:[%s14831_s1 + $0x990] sm:$0xf]  ;;  %3154 = vmatmul.bf16.vlgmr.msrb.gmra.mxu1 %v10218_v22  ;;  %v6139_v15 = vor.u32 %v9118_v13, %v6136_v14  ;;  %v9094_v0 = vld [vmem:[%s14831_s1 + $0x14] sm:$0xf] }
 0x151   :  { %v9402_v26 = vld [vmem:[%s14831_s1 + $0x9ac] sm:$0xf0]  ;;  %3179 = vmatpush.bf16.msrb.mxu3 %v6807_v12  ;;  %3198 = vmatpush.bf16.msra.mxu1 %v7543_v23  ;;  %v9406_v14 = vld [vmem:[%s14831_s1 + $0x9d4] sm:$0xf] }
 0x152   :  { %v7510_v27 = vld [vmem:[%s14831_s1 + $0xb90] sm:$0xf]  ;;  %v7255_v35 = vor.u32 %v9402_v26, %v7254_v25  ;;  %3167 = vmatmul.bf16.vlgmr.msrb.gmra.mxu2 %v10212_v18 }
 0x153   :  { %v9466_v29 = vld [vmem:[%s14831_s1 + $0xbac] sm:$0xf0]  ;;  %3211 = vmatpush.bf16.msra.mxu2 %v7799_v24 }
 0x154   :  { %v7766_v30 = vld [vmem:[%s14831_s1 + $0xd90] sm:$0xf]  ;;  %v7511_v36 = vor.u32 %v9466_v29, %v7510_v27  ;;  %3180 = vmatmul.bf16.vlgmr.msrb.gmra.mxu3 %v10216_v20  ;;  %3186 = vmatpush.bf16.msra.mxu0 %v7255_v35  ;;  %v2960_v29 = vpop.f32.mrf.mxu2  ;;  %v2936_v35 = vpop.f32.mrf.mxu0 }
 0x155   :  { %v9530_v31 = vld [vmem:[%s14831_s1 + $0xdac] sm:$0xf0]  ;;  %3224 = vmatpush.bf16.msra.mxu3 %v6267_v28  ;;  %v2961_v32 = vadd.f32 %v2960_v29, %v490_v16  ;;  %v7288_v16 = vld [vmem:[%s14831_s1 + $0x9f0] sm:$0xf0] }
 0x156   :  { %v7767_v39 = vor.u32 %v9530_v31, %v7766_v30  ;;  %v7222_v43 = vld [vmem:[%s14831_s1 + $0x950] sm:$0xf]  ;;  %3199 = vmatpush.bf16.msra.mxu1 %v7511_v36  ;;  %v9110_v30 = vld [vmem:[%s14831_s1 + $0x94] sm:$0xf] }
 0x157   :  { %v9394_v44 = vld [vmem:[%s14831_s1 + $0x96c] sm:$0xf0]  ;;  %v6104_v31 = vld [vmem:[%s14831_s1 + $0xb0] sm:$0xf0] }
 0x158   :  { %v7478_v45 = vld [vmem:[%s14831_s1 + $0xb50] sm:$0xf]  ;;  %v7223_v52 = vor.u32 %v9394_v44, %v7222_v43  ;;  %3212 = vmatpush.bf16.msra.mxu2 %v7767_v39  ;;  %v2949_v39 = vpop.f32.mrf.mxu1  ;;  %v7000_v29 = vld [vmem:[%s14831_s1 + $0x7b0] sm:$0xf0] }
 0x159   :  { %v9458_v47 = vld [vmem:[%s14831_s1 + $0xb6c] sm:$0xf0]  ;;  %3225 = vmatpush.bf16.msra.mxu3 %v6235_v46  ;;  %v6456_v39 = vld [vmem:[%s14831_s1 + $0x370] sm:$0xf0] }
 0x15a   :  { %v7734_v48 = vld [vmem:[%s14831_s1 + $0xd50] sm:$0xf]  ;;  %v7479_v53 = vor.u32 %v9458_v47, %v7478_v45  ;;  %3187 = vmatpush.bf16.msra.mxu0 %v7223_v52 }
 0x15b   :  { %v9522_v49 = vld [vmem:[%s14831_s1 + $0xd6c] sm:$0xf0] }
 0x15c   :  { %v7735_v54 = vor.u32 %v9522_v49, %v7734_v48  ;;  %v7190_v55 = vld [vmem:[%s14831_s1 + $0x910] sm:$0xf]  ;;  %3200 = vmatpush.bf16.msra.mxu1 %v7479_v53  ;;  %v11686_v48 = vadd.f32 %v2973_v33, %v2961_v32  ;;  %v6107_v49 = vor.u32 %v9110_v30, %v6104_v31  ;;  %v9102_v53 = vld [vmem:[%s14831_s1 + $0x54] sm:$0xf]  ;;  %v2962_v2 = vpop.f32.mrf.mxu2 }
 0x15d   :  { %v9386_v56 = vld [vmem:[%s14831_s1 + $0x92c] sm:$0xf0]  ;;  %3226 = vmatpush.bf16.msra.mxu3 %v6203_v58  ;;  %v9398_v30 = vld [vmem:[%s14831_s1 + $0x994] sm:$0xf] }
 0x15e   :  { %v7446_v57 = vld [vmem:[%s14831_s1 + $0xb10] sm:$0xf]  ;;  %v7191_v1 = vor.u32 %v9386_v56, %v7190_v55  ;;  %3213 = vmatpush.bf16.msra.mxu2 %v7735_v54  ;;  %v6072_v54 = vld [vmem:[%s14831_s1 + $0x70] sm:$0xf0] }
 0x15f   :  { %v9450_v59 = vld [vmem:[%s14831_s1 + $0xb2c] sm:$0xf0]  ;;  %v6075_v62 = vor.u32 %v9102_v53, %v6072_v54  ;;  %v7256_v31 = vld [vmem:[%s14831_s1 + $0x9b0] sm:$0xf0] }
 0x160   :  { %v7702_v60 = vld [vmem:[%s14831_s1 + $0xd10] sm:$0xf]  ;;  %v7447_v3 = vor.u32 %v9450_v59, %v7446_v57  ;;  %3188 = vmatpush.bf16.msra.mxu0 %v7191_v1  ;;  %v6040_v1 = vld [vmem:[%s14831_s1 + $0x30] sm:$0xf0] }
 0x161   :  { %v9514_v38 = vld [vmem:[%s14831_s1 + $0xd2c] sm:$0xf0]  ;;  %3227 = vmatpush.bf16.msra.mxu3 %v6171_v42  ;;  %v6776_v42 = vld [vmem:[%s14831_s1 + $0x5f0] sm:$0xf0] }
 0x162   :  { %v7703_v4 = vor.u32 %v9514_v38, %v7702_v60  ;;  %v7158_v5 = vld [vmem:[%s14831_s1 + $0x8d0] sm:$0xf]  ;;  %3201 = vmatpush.bf16.msra.mxu1 %v7447_v3  ;;  %v9214_v3 = vld [vmem:[%s14831_s1 + $0x3d4] sm:$0xf] }
 0x163   :  { %v9378_v6 = vld [vmem:[%s14831_s1 + $0x8ec] sm:$0xf0]  ;;  %v9190_v54 = vld [vmem:[%s14831_s1 + $0x314] sm:$0xf] }
 0x164   :  { %v7414_v7 = vld [vmem:[%s14831_s1 + $0xad0] sm:$0xf]  ;;  %v7159_v17 = vor.u32 %v9378_v6, %v7158_v5  ;;  %3214 = vmatpush.bf16.msra.mxu2 %v7703_v4  ;;  %v6520_v4 = vld [vmem:[%s14831_s1 + $0x3f0] sm:$0xf0]  ;;  %v2975_v6 = vpop.f32.mrf.mxu3 }
 0x165   :  { %v9442_v9 = vld [vmem:[%s14831_s1 + $0xaec] sm:$0xf0]  ;;  %3228 = vmatpush.bf16.msra.mxu3 %v6139_v15  ;;  %v9278_v5 = vld [vmem:[%s14831_s1 + $0x5d4] sm:$0xf]  ;;  %v2999_v6 = vpop.f32.mrf.mxu1 }
 0x166   :  { %v7670_v10 = vld [vmem:[%s14831_s1 + $0xcd0] sm:$0xf]  ;;  %v7415_v12 = vor.u32 %v9442_v9, %v7414_v7  ;;  %3189 = vmatpush.bf16.msra.mxu0 %v7159_v17  ;;  %v9342_v9 = vld [vmem:[%s14831_s1 + $0x7d4] sm:$0xf]  ;;  %v6043_v17 = vor.u32 %v9094_v0, %v6040_v1 }
 0x167   :  { %v9506_v11 = vld [vmem:[%s14831_s1 + $0xcec] sm:$0xf0]  ;;  %v9270_v15 = vld [vmem:[%s14831_s1 + $0x594] sm:$0xf] }
 0x168   :  { %v7671_v21 = vor.u32 %v9506_v11, %v7670_v10  ;;  %v7126_v23 = vld [vmem:[%s14831_s1 + $0x890] sm:$0xf]  ;;  %3202 = vmatpush.bf16.msra.mxu1 %v7415_v12  ;;  %v7032_v10 = vld [vmem:[%s14831_s1 + $0x7f0] sm:$0xf0]  ;;  %v6523_v12 = vor.u32 %v9214_v3, %v6520_v4 }
 0x169   :  { %v9370_v24 = vld [vmem:[%s14831_s1 + $0x8ac] sm:$0xf0]  ;;  %3229 = vmatpush.bf16.msra.mxu3 %v6107_v49  ;;  %v9390_v49 = vld [vmem:[%s14831_s1 + $0x954] sm:$0xf] }
 0x16a   :  { %v7382_v25 = vld [vmem:[%s14831_s1 + $0xa90] sm:$0xf]  ;;  %v7127_v36 = vor.u32 %v9370_v24, %v7126_v23  ;;  %3215 = vmatpush.bf16.msra.mxu2 %v7671_v21  ;;  %v6779_v21 = vor.u32 %v9278_v5, %v6776_v42  ;;  %v7035_v23 = vor.u32 %v9342_v9, %v7032_v10  ;;  %v9206_v24 = vld [vmem:[%s14831_s1 + $0x394] sm:$0xf] }
 0x16b   :  { %v9434_v26 = vld [vmem:[%s14831_s1 + $0xaac] sm:$0xf0]  ;;  %v9182_v2 = vld [vmem:[%s14831_s1 + $0x2d4] sm:$0xf] }
 0x16c   :  { %v7638_v27 = vld [vmem:[%s14831_s1 + $0xc90] sm:$0xf]  ;;  %v7383_v43 = vor.u32 %v9434_v26, %v7382_v25  ;;  %3190 = vmatpush.bf16.msra.mxu0 %v7127_v36  ;;  %v6488_v25 = vld [vmem:[%s14831_s1 + $0x3b0] sm:$0xf0]  ;;  %v7291_v26 = vor.u32 %v9406_v14, %v7288_v16 }
 0x16d   :  { %v9498_v28 = vld [vmem:[%s14831_s1 + $0xcac] sm:$0xf0]  ;;  %3230 = vmatpush.bf16.msra.mxu3 %v6075_v62  ;;  %v6491_v32 = vor.u32 %v9206_v24, %v6488_v25  ;;  %v9198_v36 = vld [vmem:[%s14831_s1 + $0x354] sm:$0xf]  ;;  %v3012_v24 = vpop.f32.mrf.mxu2 }
 0x16e   :  { %v7639_v44 = vor.u32 %v9498_v28, %v7638_v27  ;;  %v7094_v45 = vld [vmem:[%s14831_s1 + $0x850] sm:$0xf]  ;;  %3203 = vmatpush.bf16.msra.mxu1 %v7383_v43  ;;  %v6744_v27 = vld [vmem:[%s14831_s1 + $0x5b0] sm:$0xf0] }
 0x16f   :  { %v9362_v46 = vld [vmem:[%s14831_s1 + $0x86c] sm:$0xf0]  ;;  %v9334_v28 = vld [vmem:[%s14831_s1 + $0x794] sm:$0xf]  ;;  %v6747_v33 = vor.u32 %v9270_v15, %v6744_v27 }
 0x170   :  { %v7350_v47 = vld [vmem:[%s14831_s1 + $0xa50] sm:$0xf]  ;;  %v7095_v55 = vor.u32 %v9362_v46, %v7094_v45  ;;  %3216 = vmatpush.bf16.msra.mxu2 %v7639_v44  ;;  %v7003_v35 = vor.u32 %v9334_v28, %v7000_v29  ;;  %v9262_v43 = vld [vmem:[%s14831_s1 + $0x554] sm:$0xf]  ;;  %v7259_v44 = vor.u32 %v9398_v30, %v7256_v31  ;;  %v3025_v29 = vpop.f32.mrf.mxu3 }
 0x171   :  { %v9426_v50 = vld [vmem:[%s14831_s1 + $0xa6c] sm:$0xf0]  ;;  %3231 = vmatpush.bf16.msra.mxu3 %v6043_v17  ;;  %v6712_v45 = vld [vmem:[%s14831_s1 + $0x570] sm:$0xf0] }
 0x172   :  { %v7606_v51 = vld [vmem:[%s14831_s1 + $0xc50] sm:$0xf]  ;;  %v7351_v58 = vor.u32 %v9426_v50, %v7350_v47  ;;  %3191 = vmatpush.bf16.msra.mxu0 %v7095_v55  ;;  %v9326_v46 = vld [vmem:[%s14831_s1 + $0x754] sm:$0xf] }
 0x173   :  { %v9490_v52 = vld [vmem:[%s14831_s1 + $0xc6c] sm:$0xf0]  ;;  %v6968_v47 = vld [vmem:[%s14831_s1 + $0x770] sm:$0xf0] }
 0x174   :  { %v7062_v56 = vld [vmem:[%s14831_s1 + $0x810] sm:$0xf]  ;;  %v7607_v59 = vor.u32 %v9490_v52, %v7606_v51  ;;  %3204 = vmatpush.bf16.msra.mxu1 %v7351_v58  ;;  %v7224_v50 = vld [vmem:[%s14831_s1 + $0x970] sm:$0xf0]  ;;  %v6459_v51 = vor.u32 %v9198_v36, %v6456_v39  ;;  %3232 = vmatmul.bf16.vlgmr.msra.gmra.mxu3 %v10214_v19  ;;  %v6715_v52 = vor.u32 %v9262_v43, %v6712_v45 }
 0x175   :  { %v9354_v57 = vld [vmem:[%s14831_s1 + $0x82c] sm:$0xf0]  ;;  %3276 = vmatpush.bf16.msrb.mxu3 %v7291_v26  ;;  %v6971_v53 = vor.u32 %v9326_v46, %v6968_v47  ;;  %v6424_v55 = vld [vmem:[%s14831_s1 + $0x330] sm:$0xf0]  ;;  %v3001_v46 = vpop.f32.mrf.mxu1 }
 0x176   :  { %v7318_v60 = vld [vmem:[%s14831_s1 + $0xa10] sm:$0xf]  ;;  %v7063_v7 = vor.u32 %v9354_v57, %v7062_v56  ;;  %3217 = vmatpush.bf16.msra.mxu2 %v7607_v59  ;;  %v9254_v56 = vld [vmem:[%s14831_s1 + $0x514] sm:$0xf]  ;;  %v7227_v57 = vor.u32 %v9390_v49, %v7224_v50  ;;  %v6427_v62 = vor.u32 %v9190_v54, %v6424_v55  ;;  %v9139_v46 = vld [vmem:[%s14831_s1 + $0x174] sm:$0xf0] }
 0x177   :  { %v9418_v38 = vld [vmem:[%s14831_s1 + $0xa2c] sm:$0xf0]  ;;  %v6680_v58 = vld [vmem:[%s14831_s1 + $0x530] sm:$0xf0] }
 0x178   :  { %v7574_v61 = vld [vmem:[%s14831_s1 + $0xc10] sm:$0xf]  ;;  %v7319_v11 = vor.u32 %v9418_v38, %v7318_v60  ;;  %3192 = vmatpush.bf16.msra.mxu0 %v7063_v7  ;;  %v9318_v59 = vld [vmem:[%s14831_s1 + $0x714] sm:$0xf]  ;;  %v6683_v0 = vor.u32 %v9254_v56, %v6680_v58 }
 0x179   :  { %v9482_v63 = vld [vmem:[%s14831_s1 + $0xc2c] sm:$0xf0]  ;;  %3277 = vmatpush.bf16.msrb.mxu3 %v7259_v44  ;;  %v6936_v60 = vld [vmem:[%s14831_s1 + $0x730] sm:$0xf0] }
 0x17a   :  { %v7575_v13 = vor.u32 %v9482_v63, %v7574_v61  ;;  %3205 = vmatpush.bf16.msra.mxu1 %v7319_v11  ;;  %v9382_v38 = vld [vmem:[%s14831_s1 + $0x914] sm:$0xf]  ;;  %v2986_v63 = vpop.f32.mrf.mxu0  ;;  %v6939_v1 = vor.u32 %v9318_v59, %v6936_v60 }
 0x17b   :  { %3193 = vmatmul.bf16.vlgmr.msra.gmra.mxu0 %v10376_v40  ;;  %v7192_v61 = vld [vmem:[%s14831_s1 + $0x930] sm:$0xf0]  ;;  %v2987_v5 = vadd.f32 %v2986_v63, %v11686_v48 }
 0x17c   :  { %3218 = vmatpush.bf16.msra.mxu2 %v7575_v13  ;;  %3237 = vmatpush.bf16.msrb.mxu0 %v6523_v12  ;;  %v6392_v3 = vld [vmem:[%s14831_s1 + $0x2f0] sm:$0xf0]  ;;  %v7195_v7 = vor.u32 %v9382_v38, %v7192_v61  ;;  %v3014_v61 = vpop.f32.mrf.mxu2 }
 0x17d   :  { %3206 = vmatmul.bf16.vlgmr.msra.gmra.mxu1 %v10378_v41  ;;  %v9246_v4 = vld [vmem:[%s14831_s1 + $0x4d4] sm:$0xf]  ;;  %3278 = vmatpush.bf16.msrb.mxu3 %v7227_v57  ;;  %v3000_v13 = vadd.f32 %v2999_v6, %v2987_v5  ;;  %v6395_v14 = vor.u32 %v9182_v2, %v6392_v3  ;;  %v3027_v2 = vpop.f32.mrf.mxu3  ;;  %v9195_v61 = vld [vmem:[%s14831_s1 + $0x334] sm:$0xf0] }
 0x17e   :  { %3250 = vmatpush.bf16.msrb.mxu1 %v6779_v21  ;;  %v6648_v42 = vld [vmem:[%s14831_s1 + $0x4f0] sm:$0xf0] }
 0x17f   :  { %3219 = vmatmul.bf16.vlgmr.msra.gmra.mxu2 %v10368_v37  ;;  %v9310_v9 = vld [vmem:[%s14831_s1 + $0x6d4] sm:$0xf]  ;;  %v6651_v16 = vor.u32 %v9246_v4, %v6648_v42  ;;  %v3013_v28 = vadd.f32 %v3012_v24, %v3000_v13  ;;  %v6270_v42 = vld [vmem:[%s14831_s1 + $0x1d8] sm:$0xf] }
 0x180   :  { %3263 = vmatpush.bf16.msrb.mxu2 %v7035_v23  ;;  %3238 = vmatpush.bf16.msrb.mxu0 %v6491_v32  ;;  %v6904_v10 = vld [vmem:[%s14831_s1 + $0x6f0] sm:$0xf0]  ;;  %v9219_v13 = vld [vmem:[%s14831_s1 + $0x3f4] sm:$0xf0] }
 0x181   :  { %v9374_v11 = vld [vmem:[%s14831_s1 + $0x8d4] sm:$0xf]  ;;  %v6907_v17 = vor.u32 %v9310_v9, %v6904_v10  ;;  %3279 = vmatpush.bf16.msrb.mxu3 %v7195_v7  ;;  %v9155_v9 = vld [vmem:[%s14831_s1 + $0x1f4] sm:$0xf0] }
 0x182   :  { %3251 = vmatpush.bf16.msrb.mxu1 %v6747_v33  ;;  %v7160_v48 = vld [vmem:[%s14831_s1 + $0x8f0] sm:$0xf0]  ;;  %v11876_v33 = vadd.f32 %v3025_v29, %v3013_v28  ;;  %v6494_v28 = vld [vmem:[%s14831_s1 + $0x398] sm:$0xf] }
 0x183   :  { %v9174_v12 = vld [vmem:[%s14831_s1 + $0x294] sm:$0xf]  ;;  %v7163_v25 = vor.u32 %v9374_v11, %v7160_v48  ;;  %v6526_v48 = vld [vmem:[%s14831_s1 + $0x3d8] sm:$0xf] }
 0x184   :  { %3264 = vmatpush.bf16.msrb.mxu2 %v7003_v35  ;;  %3239 = vmatpush.bf16.msrb.mxu0 %v6459_v51  ;;  %v6360_v21 = vld [vmem:[%s14831_s1 + $0x2b0] sm:$0xf0]  ;;  %v2988_v35 = vpop.f32.mrf.mxu0  ;;  %v9211_v29 = vld [vmem:[%s14831_s1 + $0x3b4] sm:$0xf0] }
 0x185   :  { %v9238_v23 = vld [vmem:[%s14831_s1 + $0x494] sm:$0xf]  ;;  %v6363_v32 = vor.u32 %v9174_v12, %v6360_v21  ;;  %3280 = vmatpush.bf16.msrb.mxu3 %v7163_v25  ;;  %v6271_v12 = vor.u32 %v9155_v9, %v6270_v42  ;;  %v6527_v25 = vor.u32 %v9219_v13, %v6526_v48  ;;  %v6142_v9 = vld [vmem:[%s14831_s1 + $0xd8] sm:$0xf] }
 0x186   :  { %3252 = vmatpush.bf16.msrb.mxu1 %v6715_v52  ;;  %v6616_v15 = vld [vmem:[%s14831_s1 + $0x4b0] sm:$0xf0]  ;;  %v9187_v48 = vld [vmem:[%s14831_s1 + $0x2f4] sm:$0xf0] }
 0x187   :  { %v9302_v26 = vld [vmem:[%s14831_s1 + $0x694] sm:$0xf]  ;;  %v6619_v36 = vor.u32 %v9238_v23, %v6616_v15 }
 0x188   :  { %3265 = vmatpush.bf16.msrb.mxu2 %v6971_v53  ;;  %3240 = vmatpush.bf16.msrb.mxu0 %v6427_v62  ;;  %v6872_v27 = vld [vmem:[%s14831_s1 + $0x6b0] sm:$0xf0] }
 0x189   :  { %v9366_v30 = vld [vmem:[%s14831_s1 + $0x894] sm:$0xf]  ;;  %v6875_v39 = vor.u32 %v9302_v26, %v6872_v27  ;;  %v6238_v26 = vld [vmem:[%s14831_s1 + $0x198] sm:$0xf] }
 0x18a   :  { %3253 = vmatpush.bf16.msrb.mxu1 %v6683_v0  ;;  %v7128_v31 = vld [vmem:[%s14831_s1 + $0x8b0] sm:$0xf0]  ;;  %v9147_v27 = vld [vmem:[%s14831_s1 + $0x1b4] sm:$0xf0] }
 0x18b   :  { %v9166_v43 = vld [vmem:[%s14831_s1 + $0x254] sm:$0xf]  ;;  %v7131_v47 = vor.u32 %v9366_v30, %v7128_v31 }
 0x18c   :  { %3266 = vmatpush.bf16.msrb.mxu2 %v6939_v1  ;;  %3241 = vmatpush.bf16.msrb.mxu0 %v6395_v14  ;;  %v6328_v44 = vld [vmem:[%s14831_s1 + $0x270] sm:$0xf0] }
 0x18d   :  { %v9230_v45 = vld [vmem:[%s14831_s1 + $0x454] sm:$0xf]  ;;  %v6331_v54 = vor.u32 %v9166_v43, %v6328_v44  ;;  %3281 = vmatpush.bf16.msrb.mxu3 %v7131_v47  ;;  %v6495_v43 = vor.u32 %v9211_v29, %v6494_v28  ;;  %v6462_v47 = vld [vmem:[%s14831_s1 + $0x358] sm:$0xf]  ;;  %v3077_v28 = vpop.f32.mrf.mxu3 }
 0x18e   :  { %3254 = vmatpush.bf16.msrb.mxu1 %v6651_v16  ;;  %v6584_v49 = vld [vmem:[%s14831_s1 + $0x470] sm:$0xf0]  ;;  %v6366_v29 = vld [vmem:[%s14831_s1 + $0x298] sm:$0xf] }
 0x18f   :  { %v9294_v50 = vld [vmem:[%s14831_s1 + $0x654] sm:$0xf]  ;;  %v6587_v57 = vor.u32 %v9230_v45, %v6584_v49  ;;  %v6206_v45 = vld [vmem:[%s14831_s1 + $0x158] sm:$0xf] }
 0x190   :  { %3267 = vmatpush.bf16.msrb.mxu2 %v6907_v17  ;;  %v6840_v51 = vld [vmem:[%s14831_s1 + $0x670] sm:$0xf0]  ;;  %3242 = vmatpush.bf16.msrb.mxu0 %v6363_v32  ;;  %v6239_v32 = vor.u32 %v9147_v27, %v6238_v26  ;;  %v9203_v49 = vld [vmem:[%s14831_s1 + $0x374] sm:$0xf0]  ;;  %v3064_v27 = vpop.f32.mrf.mxu2 }
 0x191   :  { %v9358_v52 = vld [vmem:[%s14831_s1 + $0x854] sm:$0xf]  ;;  %v6843_v58 = vor.u32 %v9294_v50, %v6840_v51  ;;  %v9115_v26 = vld [vmem:[%s14831_s1 + $0xb4] sm:$0xf0] }
 0x192   :  { %v7096_v53 = vld [vmem:[%s14831_s1 + $0x870] sm:$0xf0]  ;;  %3255 = vmatpush.bf16.msrb.mxu1 %v6619_v36 }
 0x193   :  { %v9158_v55 = vld [vmem:[%s14831_s1 + $0x214] sm:$0xf]  ;;  %v7099_v62 = vor.u32 %v9358_v52, %v7096_v53  ;;  %v6207_v52 = vor.u32 %v9139_v46, %v6206_v45 }
 0x194   :  { %v6296_v56 = vld [vmem:[%s14831_s1 + $0x230] sm:$0xf0]  ;;  %3268 = vmatpush.bf16.msrb.mxu2 %v6875_v39  ;;  %3243 = vmatpush.bf16.msrb.mxu0 %v6331_v54 }
 0x195   :  { %v9222_v59 = vld [vmem:[%s14831_s1 + $0x414] sm:$0xf]  ;;  %v6299_v6 = vor.u32 %v9158_v55, %v6296_v56  ;;  %3282 = vmatpush.bf16.msrb.mxu3 %v7099_v62  ;;  %v6463_v56 = vor.u32 %v9203_v49, %v6462_v47  ;;  %v12029_v62 = vld [vmem:[%s14833_s2] sm:$0xff] }
 0x196   :  { %v6552_v60 = vld [vmem:[%s14831_s1 + $0x430] sm:$0xf0]  ;;  %3256 = vmatpush.bf16.msrb.mxu1 %v6587_v57 }
 0x197   :  { %v9286_v38 = vld [vmem:[%s14831_s1 + $0x614] sm:$0xf]  ;;  %v6555_v10 = vor.u32 %v9222_v59, %v6552_v60  ;;  %v9131_v59 = vld [vmem:[%s14831_s1 + $0x134] sm:$0xf0]  ;;  %v3038_v60 = vpop.f32.mrf.mxu0 }
 0x198   :  { %v6808_v63 = vld [vmem:[%s14831_s1 + $0x630] sm:$0xf0]  ;;  %3269 = vmatpush.bf16.msrb.mxu2 %v6843_v58  ;;  %3244 = vmatpush.bf16.msrb.mxu0 %v6299_v6  ;;  %v6174_v58 = vld [vmem:[%s14831_s1 + $0x118] sm:$0xf] }
 0x199   :  { %v9350_v0 = vld [vmem:[%s14831_s1 + $0x814] sm:$0xf]  ;;  %v6811_v11 = vor.u32 %v9286_v38, %v6808_v63  ;;  %v6430_v38 = vld [vmem:[%s14831_s1 + $0x318] sm:$0xf]  ;;  %v491_v63 = vperm.slane %v12029_v62, 3 }
 0x19a   :  { %v7064_v1 = vld [vmem:[%s14831_s1 + $0x830] sm:$0xf0]  ;;  %3257 = vmatpush.bf16.msrb.mxu1 %v6555_v10  ;;  %v9123_v10 = vld [vmem:[%s14831_s1 + $0xf4] sm:$0xf0] }
 0x19b   :  { %v9470_v3 = vld [vmem:[%s14831_s1 + $0xbd4] sm:$0xf]  ;;  %v7067_v14 = vor.u32 %v9350_v0, %v7064_v1  ;;  %3245 = vmatmul.bf16.vlgmr.msrb.gmra.mxu0 %v10218_v22  ;;  %v12033_v0 = vadd.f32 %v3038_v60, %v11876_v33  ;;  %v6431_v33 = vor.u32 %v9195_v61, %v6430_v38  ;;  %v6046_v61 = vld [vmem:[%s14831_s1 + $0x18] sm:$0xf] }
 0x19c   :  { %v7544_v4 = vld [vmem:[%s14831_s1 + $0xbf0] sm:$0xf0]  ;;  %3270 = vmatpush.bf16.msrb.mxu2 %v6811_v11  ;;  %v6398_v11 = vld [vmem:[%s14831_s1 + $0x2d8] sm:$0xf] }
 0x19d   :  { %v9534_v5 = vld [vmem:[%s14831_s1 + $0xdd4] sm:$0xf]  ;;  %v7547_v16 = vor.u32 %v9470_v3, %v7544_v4  ;;  %3283 = vmatpush.bf16.msrb.mxu3 %v7067_v14  ;;  %3258 = vmatmul.bf16.vlgmr.msrb.gmra.mxu1 %v10212_v18  ;;  %v6175_v3 = vor.u32 %v9131_v59, %v6174_v58 }
 0x19e   :  { %v7800_v7 = vld [vmem:[%s14831_s1 + $0xdf0] sm:$0xf0] }
 0x19f   :  { %v7803_v17 = vor.u32 %v9534_v5, %v7800_v7  ;;  %v9462_v21 = vld [vmem:[%s14831_s1 + $0xb94] sm:$0xf]  ;;  %3289 = vmatpush.bf16.msra.mxu0 %v7547_v16  ;;  %3271 = vmatmul.bf16.vlgmr.msrb.gmra.mxu2 %v10216_v20  ;;  %v3051_v7 = vpop.f32.mrf.mxu1 }
 0x1a0   :  { %v7512_v23 = vld [vmem:[%s14831_s1 + $0xbb0] sm:$0xf0]  ;;  %3315 = vmatpush.bf16.msra.mxu2 %v6271_v12  ;;  %3284 = vmatmul.bf16.vlgmr.msrb.gmra.mxu3 %v10376_v40  ;;  %v3052_v13 = vadd.f32 %v3051_v7, %v491_v63  ;;  %v9283_v7 = vld [vmem:[%s14831_s1 + $0x5f4] sm:$0xf0] }
 0x1a1   :  { %v9526_v24 = vld [vmem:[%s14831_s1 + $0xd94] sm:$0xf]  ;;  %v7515_v30 = vor.u32 %v9462_v21, %v7512_v23  ;;  %3302 = vmatpush.bf16.msra.mxu1 %v7803_v17  ;;  %3328 = vmatpush.bf16.msra.mxu3 %v6527_v25  ;;  %v6143_v17 = vor.u32 %v9123_v10, %v6142_v9  ;;  %v9347_v9 = vld [vmem:[%s14831_s1 + $0x7f4] sm:$0xf0] }
 0x1a2   :  { %v7768_v15 = vld [vmem:[%s14831_s1 + $0xdb0] sm:$0xf0]  ;;  %v7294_v10 = vld [vmem:[%s14831_s1 + $0x9d8] sm:$0xf] }
 0x1a3   :  { %v7771_v31 = vor.u32 %v9526_v24, %v7768_v15  ;;  %v9454_v35 = vld [vmem:[%s14831_s1 + $0xb54] sm:$0xf]  ;;  %3290 = vmatpush.bf16.msra.mxu0 %v7515_v30  ;;  %v6399_v24 = vor.u32 %v9187_v48, %v6398_v11  ;;  %v6110_v15 = vld [vmem:[%s14831_s1 + $0x98] sm:$0xf] }
 0x1a4   :  { %v7480_v36 = vld [vmem:[%s14831_s1 + $0xb70] sm:$0xf0]  ;;  %3316 = vmatpush.bf16.msra.mxu2 %v6239_v32  ;;  %v9179_v30 = vld [vmem:[%s14831_s1 + $0x2b4] sm:$0xf0]  ;;  %v3040_v32 = vpop.f32.mrf.mxu0 }
 0x1a5   :  { %v9518_v39 = vld [vmem:[%s14831_s1 + $0xd54] sm:$0xf]  ;;  %v7483_v50 = vor.u32 %v9454_v35, %v7480_v36  ;;  %3303 = vmatpush.bf16.msra.mxu1 %v7771_v31  ;;  %3329 = vmatpush.bf16.msra.mxu3 %v6495_v43  ;;  %v3065_v31 = vadd.f32 %v3064_v27, %v3052_v13  ;;  %v6367_v49 = vor.u32 %v9179_v30, %v6366_v29  ;;  %v9411_v11 = vld [vmem:[%s14831_s1 + $0x9f4] sm:$0xf0] }
 0x1a6   :  { %v7736_v44 = vld [vmem:[%s14831_s1 + $0xd70] sm:$0xf0]  ;;  %v9339_v27 = vld [vmem:[%s14831_s1 + $0x7b4] sm:$0xf0] }
 0x1a7   :  { %v7739_v51 = vor.u32 %v9518_v39, %v7736_v44  ;;  %v9446_v53 = vld [vmem:[%s14831_s1 + $0xb14] sm:$0xf]  ;;  %3291 = vmatpush.bf16.msra.mxu0 %v7483_v50  ;;  %v6111_v39 = vor.u32 %v9115_v26, %v6110_v15  ;;  %v12092_v46 = vadd.f32 %v3077_v28, %v3065_v31  ;;  %v3053_v47 = vpop.f32.mrf.mxu1  ;;  %v7006_v15 = vld [vmem:[%s14831_s1 + $0x798] sm:$0xf] }
 0x1a8   :  { %v7448_v54 = vld [vmem:[%s14831_s1 + $0xb30] sm:$0xf0]  ;;  %3317 = vmatpush.bf16.msra.mxu2 %v6207_v52  ;;  %v9107_v52 = vld [vmem:[%s14831_s1 + $0x74] sm:$0xf0] }
 0x1a9   :  { %v9510_v55 = vld [vmem:[%s14831_s1 + $0xd14] sm:$0xf]  ;;  %v7451_v1 = vor.u32 %v9446_v53, %v7448_v54  ;;  %3304 = vmatpush.bf16.msra.mxu1 %v7739_v51  ;;  %3330 = vmatpush.bf16.msra.mxu3 %v6463_v56  ;;  %v6078_v51 = vld [vmem:[%s14831_s1 + $0x58] sm:$0xf] }
 0x1aa   :  { %v7704_v57 = vld [vmem:[%s14831_s1 + $0xd30] sm:$0xf0]  ;;  %v6334_v53 = vld [vmem:[%s14831_s1 + $0x258] sm:$0xf]  ;;  %v6079_v59 = vor.u32 %v9107_v52, %v6078_v51 }
 0x1ab   :  { %v7707_v2 = vor.u32 %v9510_v55, %v7704_v57  ;;  %v9438_v4 = vld [vmem:[%s14831_s1 + $0xad4] sm:$0xf]  ;;  %3292 = vmatpush.bf16.msra.mxu0 %v7451_v1  ;;  %v9171_v54 = vld [vmem:[%s14831_s1 + $0x274] sm:$0xf0] }
 0x1ac   :  { %v7416_v5 = vld [vmem:[%s14831_s1 + $0xaf0] sm:$0xf0]  ;;  %3318 = vmatpush.bf16.msra.mxu2 %v6175_v3  ;;  %v6335_v63 = vor.u32 %v9171_v54, %v6334_v53  ;;  %v9099_v1 = vld [vmem:[%s14831_s1 + $0x34] sm:$0xf0] }
 0x1ad   :  { %v9502_v6 = vld [vmem:[%s14831_s1 + $0xcd4] sm:$0xf]  ;;  %v7419_v14 = vor.u32 %v9438_v4, %v7416_v5  ;;  %3305 = vmatpush.bf16.msra.mxu1 %v7707_v2  ;;  %3331 = vmatpush.bf16.msra.mxu3 %v6431_v33  ;;  %v6302_v2 = vld [vmem:[%s14831_s1 + $0x218] sm:$0xf]  ;;  %v3066_v4 = vpop.f32.mrf.mxu2  ;;  %v3079_v5 = vpop.f32.mrf.mxu3  ;;  %v6047_v13 = vor.u32 %v9099_v1, %v6046_v61 }
 0x1ae   :  { %v7672_v42 = vld [vmem:[%s14831_s1 + $0xcf0] sm:$0xf0]  ;;  %v9163_v3 = vld [vmem:[%s14831_s1 + $0x234] sm:$0xf0] }
 0x1af   :  { %v7675_v16 = vor.u32 %v9502_v6, %v7672_v42  ;;  %v9430_v12 = vld [vmem:[%s14831_s1 + $0xa94] sm:$0xf]  ;;  %3293 = vmatpush.bf16.msra.mxu0 %v7419_v14  ;;  %v6782_v6 = vld [vmem:[%s14831_s1 + $0x5d8] sm:$0xf] }
 0x1b0   :  { %v7384_v21 = vld [vmem:[%s14831_s1 + $0xab0] sm:$0xf0]  ;;  %3319 = vmatpush.bf16.msra.mxu2 %v6143_v17  ;;  %v7038_v33 = vld [vmem:[%s14831_s1 + $0x7d8] sm:$0xf]  ;;  %v6303_v17 = vor.u32 %v9163_v3, %v6302_v2  ;;  %v3090_v3 = vpop.f32.mrf.mxu0 }
 0x1b1   :  { %v9494_v23 = vld [vmem:[%s14831_s1 + $0xc94] sm:$0xf]  ;;  %v7387_v35 = vor.u32 %v9430_v12, %v7384_v21  ;;  %3306 = vmatpush.bf16.msra.mxu1 %v7675_v16  ;;  %3332 = vmatpush.bf16.msra.mxu3 %v6399_v24  ;;  %v7550_v14 = vld [vmem:[%s14831_s1 + $0xbd8] sm:$0xf]  ;;  %v6783_v12 = vor.u32 %v9283_v7, %v6782_v6  ;;  %v7039_v21 = vor.u32 %v9347_v9, %v7038_v33  ;;  %v3103_v9 = vpop.f32.mrf.mxu1 }
 0x1b2   :  { %v7640_v25 = vld [vmem:[%s14831_s1 + $0xcb0] sm:$0xf0]  ;;  %v9475_v16 = vld [vmem:[%s14831_s1 + $0xbf4] sm:$0xf0] }
 0x1b3   :  { %v7643_v36 = vor.u32 %v9494_v23, %v7640_v25  ;;  %v9422_v43 = vld [vmem:[%s14831_s1 + $0xa54] sm:$0xf]  ;;  %3294 = vmatpush.bf16.msra.mxu0 %v7387_v35  ;;  %v7295_v23 = vor.u32 %v9411_v11, %v7294_v10  ;;  %v6750_v24 = vld [vmem:[%s14831_s1 + $0x598] sm:$0xf]  ;;  %v7551_v26 = vor.u32 %v9475_v16, %v7550_v14  ;;  %v7007_v35 = vor.u32 %v9339_v27, %v7006_v15 }
 0x1b4   :  { %v7352_v44 = vld [vmem:[%s14831_s1 + $0xa70] sm:$0xf0]  ;;  %3320 = vmatpush.bf16.msra.mxu2 %v6111_v39  ;;  %v9275_v25 = vld [vmem:[%s14831_s1 + $0x5b4] sm:$0xf0] }
 0x1b5   :  { %v9486_v45 = vld [vmem:[%s14831_s1 + $0xc54] sm:$0xf]  ;;  %v7355_v55 = vor.u32 %v9422_v43, %v7352_v44  ;;  %3307 = vmatpush.bf16.msra.mxu1 %v7643_v36  ;;  %3333 = vmatpush.bf16.msra.mxu3 %v6367_v49  ;;  %v7262_v28 = vld [vmem:[%s14831_s1 + $0x998] sm:$0xf]  ;;  %v6751_v32 = vor.u32 %v9275_v25, %v6750_v24  ;;  %v3116_v15 = vpop.f32.mrf.mxu2 }
 0x1b6   :  { %v7608_v50 = vld [vmem:[%s14831_s1 + $0xc70] sm:$0xf0]  ;;  %v9403_v29 = vld [vmem:[%s14831_s1 + $0x9b4] sm:$0xf0] }
 0x1b7   :  { %v9414_v56 = vld [vmem:[%s14831_s1 + $0xa14] sm:$0xf]  ;;  %v7611_v58 = vor.u32 %v9486_v45, %v7608_v50  ;;  %3295 = vmatpush.bf16.msra.mxu0 %v7355_v55  ;;  %v7518_v30 = vld [vmem:[%s14831_s1 + $0xb98] sm:$0xf]  ;;  %v7263_v36 = vor.u32 %v9403_v29, %v7262_v28 }
 0x1b8   :  { %v7320_v57 = vld [vmem:[%s14831_s1 + $0xa30] sm:$0xf0]  ;;  %3321 = vmatpush.bf16.msra.mxu2 %v6079_v59  ;;  %v9467_v31 = vld [vmem:[%s14831_s1 + $0xbb4] sm:$0xf0] }
 0x1b9   :  { %v9478_v60 = vld [vmem:[%s14831_s1 + $0xc14] sm:$0xf]  ;;  %v7323_v42 = vor.u32 %v9414_v56, %v7320_v57  ;;  %3308 = vmatpush.bf16.msra.mxu1 %v7611_v58  ;;  %3334 = vmatpush.bf16.msra.mxu3 %v6335_v63  ;;  %v6718_v39 = vld [vmem:[%s14831_s1 + $0x558] sm:$0xf]  ;;  %v7519_v45 = vor.u32 %v9467_v31, %v7518_v30  ;;  %v3129_v31 = vpop.f32.mrf.mxu3 }
 0x1ba   :  { %v7576_v38 = vld [vmem:[%s14831_s1 + $0xc30] sm:$0xf0]  ;;  %v9267_v43 = vld [vmem:[%s14831_s1 + $0x574] sm:$0xf0] }
 0x1bb   :  { %v7579_v48 = vor.u32 %v9478_v60, %v7576_v38  ;;  %3296 = vmatpush.bf16.msra.mxu0 %v7323_v42  ;;  %v6974_v44 = vld [vmem:[%s14831_s1 + $0x758] sm:$0xf]  ;;  %v6719_v53 = vor.u32 %v9267_v43, %v6718_v39  ;;  %v3091_v42 = vadd.f32 %v3090_v3, %v12092_v46  ;;  %v3092_v43 = vpop.f32.mrf.mxu0 }
 0x1bc   :  { %3322 = vmatpush.bf16.msra.mxu2 %v6047_v13  ;;  %v9331_v47 = vld [vmem:[%s14831_s1 + $0x774] sm:$0xf0] }
 0x1bd   :  { %3309 = vmatpush.bf16.msra.mxu1 %v7579_v48  ;;  %3335 = vmatpush.bf16.msra.mxu3 %v6303_v17  ;;  %v7230_v49 = vld [vmem:[%s14831_s1 + $0x958] sm:$0xf]  ;;  %v6975_v54 = vor.u32 %v9331_v47, %v6974_v44  ;;  %v3104_v16 = vadd.f32 %v3103_v9, %v3091_v42  ;;  %v3118_v3 = vpop.f32.mrf.mxu2 }
 0x1be   :  { %3297 = vmatmul.bf16.vlgmr.msra.gmra.mxu0 %v10378_v41  ;;  %v9395_v50 = vld [vmem:[%s14831_s1 + $0x974] sm:$0xf0]  ;;  %v6432_v3 = vld [vmem:[%s14831_s1 + $0x338] sm:$0xf0] }
 0x1bf   :  { %3341 = vmatpush.bf16.msrb.mxu0 %v6783_v12  ;;  %v7486_v51 = vld [vmem:[%s14831_s1 + $0xb58] sm:$0xf]  ;;  %3323 = vmatmul.bf16.vlgmr.msra.gmra.mxu2 %v10214_v19  ;;  %v7231_v55 = vor.u32 %v9395_v50, %v7230_v49  ;;  %v3117_v30 = vadd.f32 %v3116_v15, %v3104_v16 }
 0x1c0   :  { %3367 = vmatpush.bf16.msrb.mxu2 %v7295_v23  ;;  %3310 = vmatmul.bf16.vlgmr.msra.gmra.mxu1 %v10368_v37  ;;  %v9459_v52 = vld [vmem:[%s14831_s1 + $0xb74] sm:$0xf0] }
 0x1c1   :  { %3354 = vmatpush.bf16.msrb.mxu1 %v7039_v21  ;;  %3380 = vmatpush.bf16.msrb.mxu3 %v7551_v26  ;;  %v6686_v56 = vld [vmem:[%s14831_s1 + $0x518] sm:$0xf]  ;;  %v7487_v59 = vor.u32 %v9459_v52, %v7486_v51  ;;  %v12282_v39 = vadd.f32 %v3129_v31, %v3117_v30  ;;  %v3105_v51 = vpop.f32.mrf.mxu1  ;;  %v9207_v30 = vld [vmem:[%s14831_s1 + $0x39c] sm:$0xf] }
 0x1c2   :  { %3336 = vmatmul.bf16.vlgmr.msra.gmra.mxu3 %v10218_v22  ;;  %v9259_v57 = vld [vmem:[%s14831_s1 + $0x534] sm:$0xf0]  ;;  %v6496_v31 = vld [vmem:[%s14831_s1 + $0x3b8] sm:$0xf0] }
 0x1c3   :  { %3342 = vmatpush.bf16.msrb.mxu0 %v6751_v32  ;;  %v6942_v58 = vld [vmem:[%s14831_s1 + $0x718] sm:$0xf]  ;;  %v6687_v2 = vor.u32 %v9259_v57, %v6686_v56  ;;  %v6208_v51 = vld [vmem:[%s14831_s1 + $0x178] sm:$0xf0] }
 0x1c4   :  { %3368 = vmatpush.bf16.msrb.mxu2 %v7263_v36  ;;  %v9323_v60 = vld [vmem:[%s14831_s1 + $0x734] sm:$0xf0] }
 0x1c5   :  { %3355 = vmatpush.bf16.msrb.mxu1 %v7007_v35  ;;  %3381 = vmatpush.bf16.msrb.mxu3 %v7519_v45  ;;  %v7198_v38 = vld [vmem:[%s14831_s1 + $0x918] sm:$0xf]  ;;  %v6943_v4 = vor.u32 %v9323_v60, %v6942_v58 }
 0x1c6   :  { %v9387_v61 = vld [vmem:[%s14831_s1 + $0x934] sm:$0xf0] }
 0x1c7   :  { %v7454_v63 = vld [vmem:[%s14831_s1 + $0xb18] sm:$0xf]  ;;  %3343 = vmatpush.bf16.msrb.mxu0 %v6719_v53  ;;  %v7199_v5 = vor.u32 %v9387_v61, %v7198_v38 }
 0x1c8   :  { %v9451_v1 = vld [vmem:[%s14831_s1 + $0xb34] sm:$0xf0]  ;;  %3369 = vmatpush.bf16.msrb.mxu2 %v7231_v55 }
 0x1c9   :  { %3356 = vmatpush.bf16.msrb.mxu1 %v6975_v54  ;;  %v6654_v6 = vld [vmem:[%s14831_s1 + $0x4d8] sm:$0xf]  ;;  %3382 = vmatpush.bf16.msrb.mxu3 %v7487_v59  ;;  %v7455_v10 = vor.u32 %v9451_v1, %v7454_v63 }
 0x1ca   :  { %v9251_v7 = vld [vmem:[%s14831_s1 + $0x4f4] sm:$0xf0] }
 0x1cb   :  { %v6910_v33 = vld [vmem:[%s14831_s1 + $0x6d8] sm:$0xf]  ;;  %3344 = vmatpush.bf16.msrb.mxu0 %v6687_v2  ;;  %v6655_v17 = vor.u32 %v9251_v7, %v6654_v6 }
 0x1cc   :  { %v9315_v11 = vld [vmem:[%s14831_s1 + $0x6f4] sm:$0xf0]  ;;  %3370 = vmatpush.bf16.msrb.mxu2 %v7199_v5 }
 0x1cd   :  { %v7166_v48 = vld [vmem:[%s14831_s1 + $0x8d8] sm:$0xf]  ;;  %3357 = vmatpush.bf16.msrb.mxu1 %v6943_v4  ;;  %v6911_v12 = vor.u32 %v9315_v11, %v6910_v33  ;;  %3383 = vmatpush.bf16.msrb.mxu3 %v7455_v10  ;;  %v3131_v33 = vpop.f32.mrf.mxu3  ;;  %v9151_v10 = vld [vmem:[%s14831_s1 + $0x1dc] sm:$0xf] }
 0x1ce   :  { %v9379_v13 = vld [vmem:[%s14831_s1 + $0x8f4] sm:$0xf0] }
 0x1cf   :  { %v7422_v14 = vld [vmem:[%s14831_s1 + $0xad8] sm:$0xf]  ;;  %v7167_v21 = vor.u32 %v9379_v13, %v7166_v48  ;;  %3345 = vmatpush.bf16.msrb.mxu0 %v6655_v17  ;;  %v6272_v48 = vld [vmem:[%s14831_s1 + $0x1f8] sm:$0xf0] }
 0x1d0   :  { %v9443_v46 = vld [vmem:[%s14831_s1 + $0xaf4] sm:$0xf0]  ;;  %v9215_v13 = vld [vmem:[%s14831_s1 + $0x3dc] sm:$0xf] }
 0x1d1   :  { %v6622_v23 = vld [vmem:[%s14831_s1 + $0x498] sm:$0xf]  ;;  %v7423_v26 = vor.u32 %v9443_v46, %v7422_v14  ;;  %3358 = vmatpush.bf16.msrb.mxu1 %v6911_v12  ;;  %3371 = vmatpush.bf16.msrb.mxu2 %v7167_v21  ;;  %v6528_v14 = vld [vmem:[%s14831_s1 + $0x3f8] sm:$0xf0] }
 0x1d2   :  { %v9243_v24 = vld [vmem:[%s14831_s1 + $0x4b4] sm:$0xf0]  ;;  %v9279_v17 = vld [vmem:[%s14831_s1 + $0x5dc] sm:$0xf] }
 0x1d3   :  { %v6878_v25 = vld [vmem:[%s14831_s1 + $0x698] sm:$0xf]  ;;  %v6623_v36 = vor.u32 %v9243_v24, %v6622_v23  ;;  %3384 = vmatpush.bf16.msrb.mxu3 %v7423_v26  ;;  %v6784_v12 = vld [vmem:[%s14831_s1 + $0x5f8] sm:$0xf0]  ;;  %v6275_v24 = vor.u32 %v9151_v10, %v6272_v48  ;;  %v3155_v48 = vpop.f32.mrf.mxu1 }
 0x1d4   :  { %v9307_v27 = vld [vmem:[%s14831_s1 + $0x6b4] sm:$0xf0]  ;;  %v9119_v10 = vld [vmem:[%s14831_s1 + $0xdc] sm:$0xf] }
 0x1d5   :  { %v7134_v28 = vld [vmem:[%s14831_s1 + $0x898] sm:$0xf]  ;;  %v6879_v44 = vor.u32 %v9307_v27, %v6878_v25  ;;  %3346 = vmatpush.bf16.msrb.mxu0 %v6623_v36  ;;  %v6531_v25 = vor.u32 %v9215_v13, %v6528_v14  ;;  %v9143_v27 = vld [vmem:[%s14831_s1 + $0x19c] sm:$0xf] }
 0x1d6   :  { %v9371_v29 = vld [vmem:[%s14831_s1 + $0x8b4] sm:$0xf0]  ;;  %v6144_v14 = vld [vmem:[%s14831_s1 + $0xf8] sm:$0xf0] }
 0x1d7   :  { %v7390_v32 = vld [vmem:[%s14831_s1 + $0xa98] sm:$0xf]  ;;  %v7135_v45 = vor.u32 %v9371_v29, %v7134_v28  ;;  %3359 = vmatpush.bf16.msrb.mxu1 %v6879_v44  ;;  %v6787_v28 = vor.u32 %v9279_v17, %v6784_v12  ;;  %v6240_v29 = vld [vmem:[%s14831_s1 + $0x1b8] sm:$0xf0]  ;;  %v6499_v44 = vor.u32 %v9207_v30, %v6496_v31 }
 0x1d8   :  { %v9435_v35 = vld [vmem:[%s14831_s1 + $0xab4] sm:$0xf0]  ;;  %v6243_v43 = vor.u32 %v9143_v27, %v6240_v29  ;;  %v9247_v17 = vld [vmem:[%s14831_s1 + $0x4dc] sm:$0xf] }
 0x1d9   :  { %v6590_v47 = vld [vmem:[%s14831_s1 + $0x458] sm:$0xf]  ;;  %v7391_v52 = vor.u32 %v9435_v35, %v7390_v32  ;;  %3372 = vmatpush.bf16.msrb.mxu2 %v7135_v45  ;;  %v9271_v32 = vld [vmem:[%s14831_s1 + $0x59c] sm:$0xf] }
 0x1da   :  { %v9235_v49 = vld [vmem:[%s14831_s1 + $0x474] sm:$0xf0]  ;;  %v6752_v35 = vld [vmem:[%s14831_s1 + $0x5b8] sm:$0xf0] }
 0x1db   :  { %v6846_v50 = vld [vmem:[%s14831_s1 + $0x658] sm:$0xf]  ;;  %v6591_v58 = vor.u32 %v9235_v49, %v6590_v47  ;;  %3385 = vmatpush.bf16.msrb.mxu3 %v7391_v52  ;;  %v9135_v49 = vld [vmem:[%s14831_s1 + $0x15c] sm:$0xf] }
 0x1dc   :  { %v9299_v53 = vld [vmem:[%s14831_s1 + $0x674] sm:$0xf0]  ;;  %v9199_v52 = vld [vmem:[%s14831_s1 + $0x35c] sm:$0xf] }
 0x1dd   :  { %v7102_v54 = vld [vmem:[%s14831_s1 + $0x858] sm:$0xf]  ;;  %v6847_v38 = vor.u32 %v9299_v53, %v6846_v50  ;;  %3347 = vmatpush.bf16.msrb.mxu0 %v6591_v58  ;;  %v6755_v50 = vor.u32 %v9271_v32, %v6752_v35  ;;  %v6464_v53 = vld [vmem:[%s14831_s1 + $0x378] sm:$0xf0]  ;;  %v6211_v58 = vor.u32 %v9135_v49, %v6208_v51 }
 0x1de   :  { %v9363_v55 = vld [vmem:[%s14831_s1 + $0x874] sm:$0xf0]  ;;  %v6656_v12 = vld [vmem:[%s14831_s1 + $0x4f8] sm:$0xf0] }
 0x1df   :  { %v7358_v56 = vld [vmem:[%s14831_s1 + $0xa58] sm:$0xf]  ;;  %v7103_v61 = vor.u32 %v9363_v55, %v7102_v54  ;;  %3360 = vmatpush.bf16.msrb.mxu1 %v6847_v38  ;;  %v9263_v54 = vld [vmem:[%s14831_s1 + $0x55c] sm:$0xf]  ;;  %v6659_v29 = vor.u32 %v9247_v17, %v6656_v12 }
 0x1e0   :  { %v9427_v57 = vld [vmem:[%s14831_s1 + $0xa74] sm:$0xf0]  ;;  %v6720_v55 = vld [vmem:[%s14831_s1 + $0x578] sm:$0xf0] }
 0x1e1   :  { %v6558_v59 = vld [vmem:[%s14831_s1 + $0x418] sm:$0xf]  ;;  %v7359_v4 = vor.u32 %v9427_v57, %v7358_v56  ;;  %3373 = vmatpush.bf16.msrb.mxu2 %v7103_v61  ;;  %v9127_v38 = vld [vmem:[%s14831_s1 + $0x11c] sm:$0xf]  ;;  %v492_v61 = vperm.slane %v12029_v62, 4 }
 0x1e2   :  { %v9227_v60 = vld [vmem:[%s14831_s1 + $0x434] sm:$0xf0]  ;;  %v6688_v62 = vld [vmem:[%s14831_s1 + $0x538] sm:$0xf0] }
 0x1e3   :  { %v6814_v63 = vld [vmem:[%s14831_s1 + $0x618] sm:$0xf]  ;;  %v6559_v11 = vor.u32 %v9227_v60, %v6558_v59  ;;  %3386 = vmatpush.bf16.msrb.mxu3 %v7359_v4  ;;  %v6467_v59 = vor.u32 %v9199_v52, %v6464_v53  ;;  %v9255_v4 = vld [vmem:[%s14831_s1 + $0x51c] sm:$0xf] }
 0x1e4   :  { %v9291_v1 = vld [vmem:[%s14831_s1 + $0x634] sm:$0xf0]  ;;  %v6691_v13 = vor.u32 %v9255_v4, %v6688_v62  ;;  %v9111_v27 = vld [vmem:[%s14831_s1 + $0x9c] sm:$0xf] }
 0x1e5   :  { %v7070_v2 = vld [vmem:[%s14831_s1 + $0x818] sm:$0xf]  ;;  %v6815_v46 = vor.u32 %v9291_v1, %v6814_v63  ;;  %3348 = vmatpush.bf16.msrb.mxu0 %v6559_v11  ;;  %v6723_v63 = vor.u32 %v9263_v54, %v6720_v55  ;;  %v6176_v1 = vld [vmem:[%s14831_s1 + $0x138] sm:$0xf0]  ;;  %v3157_v55 = vpop.f32.mrf.mxu1 }
 0x1e6   :  { %v9355_v5 = vld [vmem:[%s14831_s1 + $0x834] sm:$0xf0]  ;;  %v6112_v30 = vld [vmem:[%s14831_s1 + $0xb8] sm:$0xf0] }
 0x1e7   :  { %v7326_v6 = vld [vmem:[%s14831_s1 + $0xa18] sm:$0xf]  ;;  %v7071_v16 = vor.u32 %v9355_v5, %v7070_v2  ;;  %3361 = vmatpush.bf16.msrb.mxu1 %v6815_v46  ;;  %v9191_v2 = vld [vmem:[%s14831_s1 + $0x31c] sm:$0xf] }
 0x1e8   :  { %v9419_v7 = vld [vmem:[%s14831_s1 + $0xa34] sm:$0xf0]  ;;  %3349 = vmatmul.bf16.vlgmr.msrb.gmra.mxu0 %v10212_v18  ;;  %v6435_v33 = vor.u32 %v9191_v2, %v6432_v3  ;;  %v9183_v46 = vld [vmem:[%s14831_s1 + $0x2dc] sm:$0xf] }
 0x1e9   :  { %v7806_v42 = vld [vmem:[%s14831_s1 + $0xdd8] sm:$0xf]  ;;  %v7327_v21 = vor.u32 %v9419_v7, %v7326_v6  ;;  %3374 = vmatpush.bf16.msrb.mxu2 %v7071_v16  ;;  %v3142_v6 = vpop.f32.mrf.mxu0  ;;  %v6179_v7 = vor.u32 %v9127_v38, %v6176_v1  ;;  %v6400_v16 = vld [vmem:[%s14831_s1 + $0x2f8] sm:$0xf0] }
 0x1ea   :  { %v9539_v9 = vld [vmem:[%s14831_s1 + $0xdf4] sm:$0xf0]  ;;  %3362 = vmatmul.bf16.vlgmr.msrb.gmra.mxu1 %v10216_v20  ;;  %v3143_v11 = vadd.f32 %v3142_v6, %v492_v61  ;;  %v9175_v31 = vld [vmem:[%s14831_s1 + $0x29c] sm:$0xf] }
 0x1eb   :  { %v7807_v23 = vor.u32 %v9539_v9, %v7806_v42  ;;  %v7774_v15 = vld [vmem:[%s14831_s1 + $0xd98] sm:$0xf]  ;;  %3387 = vmatpush.bf16.msrb.mxu3 %v7327_v21  ;;  %3406 = vmatpush.bf16.msra.mxu1 %v6275_v24  ;;  %v6147_v24 = vor.u32 %v9119_v10, %v6144_v14  ;;  %v6368_v32 = vld [vmem:[%s14831_s1 + $0x2b8] sm:$0xf0] }
 0x1ec   :  { %v9531_v26 = vld [vmem:[%s14831_s1 + $0xdb4] sm:$0xf0]  ;;  %3375 = vmatmul.bf16.vlgmr.msrb.gmra.mxu2 %v10376_v40  ;;  %v3156_v21 = vadd.f32 %v3155_v48, %v3143_v11  ;;  %v6371_v51 = vor.u32 %v9175_v31, %v6368_v32  ;;  %v9103_v54 = vld [vmem:[%s14831_s1 + $0x5c] sm:$0xf] }
 0x1ed   :  { %3393 = vmatpush.bf16.msra.mxu0 %v7807_v23  ;;  %v7775_v36 = vor.u32 %v9531_v26, %v7774_v15  ;;  %3419 = vmatpush.bf16.msra.mxu2 %v6531_v25  ;;  %v7742_v45 = vld [vmem:[%s14831_s1 + $0xd58] sm:$0xf]  ;;  %v6403_v25 = vor.u32 %v9183_v46, %v6400_v16  ;;  %v6592_v38 = vld [vmem:[%s14831_s1 + $0x478] sm:$0xf0] }
 0x1ee   :  { %v9523_v47 = vld [vmem:[%s14831_s1 + $0xd74] sm:$0xf0]  ;;  %3388 = vmatmul.bf16.vlgmr.msrb.gmra.mxu3 %v10378_v41  ;;  %v9095_v4 = vld [vmem:[%s14831_s1 + $0x1c] sm:$0xf] }
 0x1ef   :  { %3432 = vmatpush.bf16.msra.mxu3 %v6787_v28  ;;  %v7743_v56 = vor.u32 %v9523_v47, %v7742_v45  ;;  %v7710_v57 = vld [vmem:[%s14831_s1 + $0xd18] sm:$0xf]  ;;  %3407 = vmatpush.bf16.msra.mxu1 %v6243_v43  ;;  %v3168_v28 = vpop.f32.mrf.mxu2  ;;  %v9239_v43 = vld [vmem:[%s14831_s1 + $0x49c] sm:$0xf] }
 0x1f0   :  { %v9515_v60 = vld [vmem:[%s14831_s1 + $0xd34] sm:$0xf0]  ;;  %v3169_v35 = vadd.f32 %v3168_v28, %v3156_v21  ;;  %v6048_v62 = vld [vmem:[%s14831_s1 + $0x38] sm:$0xf0] }
 0x1f1   :  { %3394 = vmatpush.bf16.msra.mxu0 %v7775_v36  ;;  %3420 = vmatpush.bf16.msra.mxu2 %v6499_v44  ;;  %v7711_v5 = vor.u32 %v9515_v60, %v7710_v57  ;;  %v7678_v42 = vld [vmem:[%s14831_s1 + $0xcd8] sm:$0xf]  ;;  %v3181_v36 = vpop.f32.mrf.mxu3  ;;  %v6624_v44 = vld [vmem:[%s14831_s1 + $0x4b8] sm:$0xf0]  ;;  %v3144_v49 = vpop.f32.mrf.mxu0  ;;  %v6051_v12 = vor.u32 %v9095_v4, %v6048_v62 }
 0x1f2   :  { %v9507_v9 = vld [vmem:[%s14831_s1 + $0xcf4] sm:$0xf0]  ;;  %v12481_v47 = vadd.f32 %v3181_v36, %v3169_v35  ;;  %v6080_v57 = vld [vmem:[%s14831_s1 + $0x78] sm:$0xf0] }
 0x1f3   :  { %3433 = vmatpush.bf16.msra.mxu3 %v6755_v50  ;;  %3408 = vmatpush.bf16.msra.mxu1 %v6211_v58  ;;  %v7679_v23 = vor.u32 %v9507_v9, %v7678_v42  ;;  %v7646_v15 = vld [vmem:[%s14831_s1 + $0xc98] sm:$0xf]  ;;  %v6115_v50 = vor.u32 %v9111_v27, %v6112_v30  ;;  %v9167_v58 = vld [vmem:[%s14831_s1 + $0x25c] sm:$0xf]  ;;  %v6083_v2 = vor.u32 %v9103_v54, %v6080_v57 }
 0x1f4   :  { %v9499_v26 = vld [vmem:[%s14831_s1 + $0xcb4] sm:$0xf0]  ;;  %v9231_v60 = vld [vmem:[%s14831_s1 + $0x45c] sm:$0xf] }
 0x1f5   :  { %3395 = vmatpush.bf16.msra.mxu0 %v7743_v56  ;;  %3421 = vmatpush.bf16.msra.mxu2 %v6467_v59  ;;  %v7647_v45 = vor.u32 %v9499_v26, %v7646_v15  ;;  %v7614_v52 = vld [vmem:[%s14831_s1 + $0xc58] sm:$0xf]  ;;  %v6627_v56 = vor.u32 %v9239_v43, %v6624_v44  ;;  %v6336_v59 = vld [vmem:[%s14831_s1 + $0x278] sm:$0xf0] }
 0x1f6   :  { %v9491_v53 = vld [vmem:[%s14831_s1 + $0xc74] sm:$0xf0]  ;;  %v6339_v3 = vor.u32 %v9167_v58, %v6336_v59  ;;  %v9223_v42 = vld [vmem:[%s14831_s1 + $0x41c] sm:$0xf] }
 0x1f7   :  { %3434 = vmatpush.bf16.msra.mxu3 %v6723_v63  ;;  %3409 = vmatpush.bf16.msra.mxu1 %v6179_v7  ;;  %v7615_v61 = vor.u32 %v9491_v53, %v7614_v52  ;;  %v7582_v63 = vld [vmem:[%s14831_s1 + $0xc18] sm:$0xf]  ;;  %v3170_v6 = vpop.f32.mrf.mxu2  ;;  %v6595_v7 = vor.u32 %v9231_v60, %v6592_v38  ;;  %v6560_v9 = vld [vmem:[%s14831_s1 + $0x438] sm:$0xf0] }
 0x1f8   :  { %v9483_v1 = vld [vmem:[%s14831_s1 + $0xc34] sm:$0xf0]  ;;  %v9343_v11 = vld [vmem:[%s14831_s1 + $0x7dc] sm:$0xf] }
 0x1f9   :  { %3396 = vmatpush.bf16.msra.mxu0 %v7711_v5  ;;  %3422 = vmatpush.bf16.msra.mxu2 %v6435_v33  ;;  %v9159_v5 = vld [vmem:[%s14831_s1 + $0x21c] sm:$0xf]  ;;  %v3183_v10 = vpop.f32.mrf.mxu3  ;;  %v7583_v14 = vor.u32 %v9483_v1, %v7582_v63  ;;  %v3194_v6 = vpop.f32.mrf.mxu0 }
 0x1fa   :  { %v6304_v33 = vld [vmem:[%s14831_s1 + $0x238] sm:$0xf0] }
 0x1fb   :  { %3435 = vmatpush.bf16.msra.mxu3 %v6691_v13  ;;  %3410 = vmatpush.bf16.msra.mxu1 %v6147_v24  ;;  %v7040_v48 = vld [vmem:[%s14831_s1 + $0x7f8] sm:$0xf0]  ;;  %v6307_v21 = vor.u32 %v9159_v5, %v6304_v33 }
 0x1fc   :  { %v9407_v13 = vld [vmem:[%s14831_s1 + $0x9dc] sm:$0xf]  ;;  %v7043_v15 = vor.u32 %v9343_v11, %v7040_v48  ;;  %v3195_v48 = vadd.f32 %v3194_v6, %v12481_v47 }
 0x1fd   :  { %3397 = vmatpush.bf16.msra.mxu0 %v7679_v23  ;;  %3423 = vmatpush.bf16.msra.mxu2 %v6403_v25  ;;  %v7296_v46 = vld [vmem:[%s14831_s1 + $0x9f8] sm:$0xf0]  ;;  %v6563_v25 = vor.u32 %v9223_v42, %v6560_v9 }
 0x1fe   :  { %v9471_v16 = vld [vmem:[%s14831_s1 + $0xbdc] sm:$0xf]  ;;  %v7299_v26 = vor.u32 %v9407_v13, %v7296_v46 }
 0x1ff   :  { %3436 = vmatpush.bf16.msra.mxu3 %v6659_v29  ;;  %3411 = vmatpush.bf16.msra.mxu1 %v6115_v50  ;;  %v7552_v17 = vld [vmem:[%s14831_s1 + $0xbf8] sm:$0xf0] }
 0x200   :  { %v9535_v23 = vld [vmem:[%s14831_s1 + $0xddc] sm:$0xf]  ;;  %v7555_v27 = vor.u32 %v9471_v16, %v7552_v17 }
 0x201   :  { %3398 = vmatpush.bf16.msra.mxu0 %v7647_v45  ;;  %3424 = vmatpush.bf16.msra.mxu2 %v6371_v51  ;;  %v7808_v24 = vld [vmem:[%s14831_s1 + $0xdf8] sm:$0xf0] }
 0x202   :  { %v9335_v28 = vld [vmem:[%s14831_s1 + $0x79c] sm:$0xf]  ;;  %v7811_v31 = vor.u32 %v9535_v23, %v7808_v24 }
 0x203   :  { %3437 = vmatpush.bf16.msra.mxu3 %v6627_v56  ;;  %3412 = vmatpush.bf16.msra.mxu1 %v6083_v2  ;;  %v7008_v29 = vld [vmem:[%s14831_s1 + $0x7b8] sm:$0xf0] }
 0x204   :  { %v9399_v30 = vld [vmem:[%s14831_s1 + $0x99c] sm:$0xf]  ;;  %v7011_v45 = vor.u32 %v9335_v28, %v7008_v29 }
 0x205   :  { %3399 = vmatpush.bf16.msra.mxu0 %v7615_v61  ;;  %3425 = vmatpush.bf16.msra.mxu2 %v6339_v3  ;;  %v7264_v32 = vld [vmem:[%s14831_s1 + $0x9b8] sm:$0xf0] }
 0x206   :  { %v9463_v35 = vld [vmem:[%s14831_s1 + $0xb9c] sm:$0xf]  ;;  %v7267_v49 = vor.u32 %v9399_v30, %v7264_v32 }
 0x207   :  { %3438 = vmatpush.bf16.msra.mxu3 %v6595_v7  ;;  %v7520_v36 = vld [vmem:[%s14831_s1 + $0xbb8] sm:$0xf0]  ;;  %3413 = vmatpush.bf16.msra.mxu1 %v6051_v12  ;;  %v3207_v7 = vpop.f32.mrf.mxu1 }
 0x208   :  { %v9527_v43 = vld [vmem:[%s14831_s1 + $0xd9c] sm:$0xf]  ;;  %v7523_v50 = vor.u32 %v9463_v35, %v7520_v36  ;;  %v3208_v12 = vadd.f32 %v3207_v7, %v3195_v48  ;;  %v7926_v7 = vld [vmem:[%s14834_s3 + $0xe0] sm:$0xf] }
 0x209   :  { %3400 = vmatpush.bf16.msra.mxu0 %v7583_v14  ;;  %3426 = vmatpush.bf16.msra.mxu2 %v6307_v21  ;;  %v7776_v44 = vld [vmem:[%s14831_s1 + $0xdb8] sm:$0xf0]  ;;  %v8182_v48 = vld [vmem:[%s14834_s3 + $0x2e0] sm:$0xf] }
 0x20a   :  { %v9327_v51 = vld [vmem:[%s14831_s1 + $0x75c] sm:$0xf]  ;;  %v7779_v54 = vor.u32 %v9527_v43, %v7776_v44  ;;  %3414 = vmatmul.bf16.vlgmr.msra.gmra.mxu1 %v10214_v19  ;;  %v12682_v43 = vpop.f32.mrf.mxu3 }
 0x20b   :  { %3439 = vmatpush.bf16.msra.mxu3 %v6563_v25  ;;  %3458 = vmatpush.bf16.msrb.mxu1 %v7299_v26  ;;  %v6976_v52 = vld [vmem:[%s14831_s1 + $0x778] sm:$0xf0] }
 0x20c   :  { %v9391_v53 = vld [vmem:[%s14831_s1 + $0x95c] sm:$0xf]  ;;  %3401 = vmatmul.bf16.vlgmr.msra.gmra.mxu0 %v10368_v37  ;;  %3427 = vmatmul.bf16.vlgmr.msra.gmra.mxu2 %v10218_v22  ;;  %v6979_v60 = vor.u32 %v9327_v51, %v6976_v52 }
 0x20d   :  { %3445 = vmatpush.bf16.msrb.mxu0 %v7043_v15  ;;  %3471 = vmatpush.bf16.msrb.mxu2 %v7555_v27  ;;  %v7232_v55 = vld [vmem:[%s14831_s1 + $0x978] sm:$0xf0]  ;;  %v3220_v27 = vpop.f32.mrf.mxu2 }
 0x20e   :  { %v9455_v56 = vld [vmem:[%s14831_s1 + $0xb5c] sm:$0xf]  ;;  %3440 = vmatmul.bf16.vlgmr.msra.gmra.mxu3 %v10212_v18  ;;  %v7235_v38 = vor.u32 %v9391_v53, %v7232_v55  ;;  %v12674_v32 = vadd.f32 %v3220_v27, %v3208_v12  ;;  %v9598_v27 = vld [vmem:[%s14834_s3 + $0x1cc] sm:$0xf0] }
 0x20f   :  { %3484 = vmatpush.bf16.msrb.mxu3 %v7811_v31  ;;  %v7488_v57 = vld [vmem:[%s14831_s1 + $0xb78] sm:$0xf0]  ;;  %3459 = vmatpush.bf16.msrb.mxu1 %v7267_v49  ;;  %v3209_v49 = vpop.f32.mrf.mxu1 }
 0x210   :  { %v9519_v58 = vld [vmem:[%s14831_s1 + $0xd5c] sm:$0xf]  ;;  %v7491_v61 = vor.u32 %v9455_v56, %v7488_v57  ;;  %v9562_v49 = vld [vmem:[%s14834_s3 + $0xac] sm:$0xf0] }
 0x211   :  { %v7744_v59 = vld [vmem:[%s14831_s1 + $0xd78] sm:$0xf0]  ;;  %3446 = vmatpush.bf16.msrb.mxu0 %v7011_v45  ;;  %3472 = vmatpush.bf16.msrb.mxu2 %v7523_v50  ;;  %v3196_v45 = vpop.f32.mrf.mxu0 }
 0x212   :  { %v9319_v22 = vld [vmem:[%s14831_s1 + $0x71c] sm:$0xf]  ;;  %v7747_v1 = vor.u32 %v9519_v58, %v7744_v59  ;;  %v7894_v45 = vld [vmem:[%s14834_s3 + $0xa0] sm:$0xf] }
 0x213   :  { %v6944_v63 = vld [vmem:[%s14831_s1 + $0x738] sm:$0xf0]  ;;  %3485 = vmatpush.bf16.msrb.mxu3 %v7779_v54  ;;  %3460 = vmatpush.bf16.msrb.mxu1 %v7235_v38 }
 0x214   :  { %v9383_v18 = vld [vmem:[%s14831_s1 + $0x91c] sm:$0xf]  ;;  %v6947_v5 = vor.u32 %v9319_v22, %v6944_v63 }
 0x215   :  { %v7200_v19 = vld [vmem:[%s14831_s1 + $0x938] sm:$0xf0]  ;;  %3447 = vmatpush.bf16.msrb.mxu0 %v6979_v60  ;;  %3473 = vmatpush.bf16.msrb.mxu2 %v7491_v61 }
 0x216   :  { %v9447_v2 = vld [vmem:[%s14831_s1 + $0xb1c] sm:$0xf]  ;;  %v7203_v33 = vor.u32 %v9383_v18, %v7200_v19 }
 0x217   :  { %v7456_v3 = vld [vmem:[%s14831_s1 + $0xb38] sm:$0xf0]  ;;  %3486 = vmatpush.bf16.msrb.mxu3 %v7747_v1 }
 0x218   :  { %v9511_v4 = vld [vmem:[%s14831_s1 + $0xd1c] sm:$0xf]  ;;  %v7459_v42 = vor.u32 %v9447_v2, %v7456_v3  ;;  %3461 = vmatpush.bf16.msrb.mxu1 %v7203_v33  ;;  %v3222_v3 = vpop.f32.mrf.mxu2  ;;  %v9570_v33 = vld [vmem:[%s14834_s3 + $0xec] sm:$0xf0] }
 0x219   :  { %v7712_v62 = vld [vmem:[%s14831_s1 + $0xd38] sm:$0xf0]  ;;  %3448 = vmatpush.bf16.msrb.mxu0 %v6947_v5  ;;  %v7927_v12 = vor.u32 %v9570_v33, %v7926_v7  ;;  %v7862_v3 = vld [vmem:[%s14834_s3 + $0x60] sm:$0xf]  ;;  %v9586_v7 = vld [vmem:[%s14834_s3 + $0x16c] sm:$0xf0] }
 0x21a   :  { %v9311_v9 = vld [vmem:[%s14831_s1 + $0x6dc] sm:$0xf]  ;;  %v7715_v13 = vor.u32 %v9511_v4, %v7712_v62  ;;  %3474 = vmatpush.bf16.msrb.mxu2 %v7459_v42  ;;  %v8054_v42 = vld [vmem:[%s14834_s3 + $0x1e0] sm:$0xf] }
 0x21b   :  { %v6912_v10 = vld [vmem:[%s14831_s1 + $0x6f8] sm:$0xf0]  ;;  %v8118_v33 = vld [vmem:[%s14834_s3 + $0x260] sm:$0xf] }
 0x21c   :  { %v9375_v11 = vld [vmem:[%s14831_s1 + $0x8dc] sm:$0xf]  ;;  %v6915_v21 = vor.u32 %v9311_v9, %v6912_v10  ;;  %3487 = vmatpush.bf16.msrb.mxu3 %v7715_v13  ;;  %v3235_v9 = vpop.f32.mrf.mxu3  ;;  %v9634_v13 = vld [vmem:[%s14834_s3 + $0x2ec] sm:$0xf0] }
 0x21d   :  { %v7168_v14 = vld [vmem:[%s14831_s1 + $0x8f8] sm:$0xf0]  ;;  %v8246_v9 = vld [vmem:[%s14834_s3 + $0x360] sm:$0xf] }
 0x21e   :  { %v9439_v46 = vld [vmem:[%s14831_s1 + $0xadc] sm:$0xf]  ;;  %v7171_v23 = vor.u32 %v9375_v11, %v7168_v14  ;;  %3449 = vmatpush.bf16.msrb.mxu0 %v6915_v21  ;;  %v9602_v11 = vld [vmem:[%s14834_s3 + $0x1ec] sm:$0xf0] }
 0x21f   :  { %v7424_v16 = vld [vmem:[%s14831_s1 + $0xaf8] sm:$0xf0]  ;;  %v8055_v21 = vor.u32 %v9602_v11, %v8054_v42  ;;  %v9618_v42 = vld [vmem:[%s14834_s3 + $0x26c] sm:$0xf0] }
 0x220   :  { %v9503_v17 = vld [vmem:[%s14831_s1 + $0xcdc] sm:$0xf]  ;;  %v7427_v24 = vor.u32 %v9439_v46, %v7424_v16  ;;  %3462 = vmatpush.bf16.msrb.mxu1 %v7171_v23  ;;  %v8310_v16 = vld [vmem:[%s14834_s3 + $0x3e0] sm:$0xf]  ;;  %v8183_v23 = vor.u32 %v9634_v13, %v8182_v48  ;;  %v8119_v13 = vor.u32 %v9618_v42, %v8118_v33 }
 0x221   :  { %v7680_v47 = vld [vmem:[%s14831_s1 + $0xcf8] sm:$0xf0]  ;;  %v12954_v33 = vld [vmem:[%s14833_s2] sm:$0xff] }
 0x222   :  { %v9303_v25 = vld [vmem:[%s14831_s1 + $0x69c] sm:$0xf]  ;;  %v7683_v28 = vor.u32 %v9503_v17, %v7680_v47  ;;  %3475 = vmatpush.bf16.msrb.mxu2 %v7427_v24  ;;  %v9666_v17 = vld [vmem:[%s14834_s3 + $0x3ec] sm:$0xf0]  ;;  %v7910_v24 = vld [vmem:[%s14834_s3 + $0xc0] sm:$0xf] }
 0x223   :  { %v6880_v15 = vld [vmem:[%s14831_s1 + $0x6b8] sm:$0xf0]  ;;  %v493_v42 = vperm.slane %v12954_v33, 5 }
 0x224   :  { %v9367_v26 = vld [vmem:[%s14831_s1 + $0x89c] sm:$0xf]  ;;  %v6883_v44 = vor.u32 %v9303_v25, %v6880_v15  ;;  %3488 = vmatpush.bf16.msrb.mxu3 %v7683_v28  ;;  %v9566_v25 = vld [vmem:[%s14834_s3 + $0xcc] sm:$0xf0]  ;;  %v8038_v15 = vld [vmem:[%s14834_s3 + $0x1c0] sm:$0xf] }
 0x225   :  { %v7136_v29 = vld [vmem:[%s14831_s1 + $0x8b8] sm:$0xf0]  ;;  %v8166_v28 = vld [vmem:[%s14834_s3 + $0x2c0] sm:$0xf] }
 0x226   :  { %v9431_v30 = vld [vmem:[%s14831_s1 + $0xa9c] sm:$0xf]  ;;  %v7139_v50 = vor.u32 %v9367_v26, %v7136_v29  ;;  %3450 = vmatpush.bf16.msrb.mxu0 %v6883_v44  ;;  %v8311_v26 = vor.u32 %v9666_v17, %v8310_v16  ;;  %v9630_v29 = vld [vmem:[%s14834_s3 + $0x2cc] sm:$0xf0]  ;;  %v7974_v16 = vld [vmem:[%s14834_s3 + $0x140] sm:$0xf]  ;;  %v12869_v17 = vpop.f32.mrf.mxu2 }
 0x227   :  { %v7392_v31 = vld [vmem:[%s14831_s1 + $0xab8] sm:$0xf0]  ;;  %v8167_v44 = vor.u32 %v9630_v29, %v8166_v28 }
 0x228   :  { %v9495_v35 = vld [vmem:[%s14831_s1 + $0xc9c] sm:$0xf]  ;;  %v7395_v51 = vor.u32 %v9431_v30, %v7392_v31  ;;  %3463 = vmatpush.bf16.msrb.mxu1 %v7139_v50  ;;  %v8294_v30 = vld [vmem:[%s14834_s3 + $0x3c0] sm:$0xf]  ;;  %v9662_v31 = vld [vmem:[%s14834_s3 + $0x3cc] sm:$0xf0] }
 0x229   :  { %v7648_v36 = vld [vmem:[%s14831_s1 + $0xcb8] sm:$0xf0]  ;;  %v8022_v50 = vld [vmem:[%s14834_s3 + $0x1a0] sm:$0xf] }
 0x22a   :  { %v9295_v52 = vld [vmem:[%s14831_s1 + $0x65c] sm:$0xf]  ;;  %v7651_v55 = vor.u32 %v9495_v35, %v7648_v36  ;;  %3476 = vmatpush.bf16.msrb.mxu2 %v7395_v51  ;;  %v7911_v35 = vor.u32 %v9566_v25, %v7910_v24  ;;  %v8039_v36 = vor.u32 %v9598_v27, %v8038_v15  ;;  %v8295_v51 = vor.u32 %v9662_v31, %v8294_v30  ;;  %v12880_v24 = vpop.f32.mrf.mxu3  ;;  %v8230_v25 = vld [vmem:[%s14834_s3 + $0x340] sm:$0xf]  ;;  %v9646_v15 = vld [vmem:[%s14834_s3 + $0x34c] sm:$0xf0] }
 0x22b   :  { %v6848_v53 = vld [vmem:[%s14831_s1 + $0x678] sm:$0xf0]  ;;  %v7830_v30 = vld [vmem:[%s14834_s3 + $0x20] sm:$0xf]  ;;  %v9546_v31 = vld [vmem:[%s14834_s3 + $0x2c] sm:$0xf0] }
 0x22c   :  { %v9359_v54 = vld [vmem:[%s14831_s1 + $0x85c] sm:$0xf]  ;;  %v6851_v38 = vor.u32 %v9295_v52, %v6848_v53  ;;  %3489 = vmatpush.bf16.msrb.mxu3 %v7651_v55  ;;  %v9594_v52 = vld [vmem:[%s14834_s3 + $0x1ac] sm:$0xf0]  ;;  %v8150_v53 = vld [vmem:[%s14834_s3 + $0x2a0] sm:$0xf] }
 0x22d   :  { %v7104_v56 = vld [vmem:[%s14831_s1 + $0x878] sm:$0xf0]  ;;  %v9658_v55 = vld [vmem:[%s14834_s3 + $0x3ac] sm:$0xf0] }
 0x22e   :  { %v9423_v57 = vld [vmem:[%s14831_s1 + $0xa5c] sm:$0xf]  ;;  %v7107_v63 = vor.u32 %v9359_v54, %v7104_v56  ;;  %3451 = vmatpush.bf16.msrb.mxu0 %v6851_v38  ;;  %v9626_v54 = vld [vmem:[%s14834_s3 + $0x2ac] sm:$0xf0]  ;;  %v7895_v56 = vor.u32 %v9562_v49, %v7894_v45  ;;  %v8134_v38 = vld [vmem:[%s14834_s3 + $0x280] sm:$0xf] }
 0x22f   :  { %v7360_v58 = vld [vmem:[%s14831_s1 + $0xa78] sm:$0xf0]  ;;  %v9578_v45 = vld [vmem:[%s14834_s3 + $0x12c] sm:$0xf0]  ;;  %v8086_v49 = vld [vmem:[%s14834_s3 + $0x220] sm:$0xf] }
 0x230   :  { %v9487_v59 = vld [vmem:[%s14831_s1 + $0xc5c] sm:$0xf]  ;;  %v7363_v18 = vor.u32 %v9423_v57, %v7360_v58  ;;  %3464 = vmatpush.bf16.msrb.mxu1 %v7107_v63  ;;  %v8023_v57 = vor.u32 %v9594_v52, %v8022_v50  ;;  %v8151_v58 = vor.u32 %v9626_v54, %v8150_v53  ;;  %v9654_v63 = vld [vmem:[%s14834_s3 + $0x38c] sm:$0xf0]  ;;  %v7831_v53 = vor.u32 %v9546_v31, %v7830_v30  ;;  %v7814_v54 = vld [vmem:[%s14834_s3] sm:$0xf] }
 0x231   :  { %v7616_v60 = vld [vmem:[%s14831_s1 + $0xc78] sm:$0xf0]  ;;  %v9610_v50 = vld [vmem:[%s14834_s3 + $0x22c] sm:$0xf0] }
 0x232   :  { %v9287_v61 = vld [vmem:[%s14831_s1 + $0x61c] sm:$0xf]  ;;  %v7619_v4 = vor.u32 %v9487_v59, %v7616_v60  ;;  %3477 = vmatpush.bf16.msrb.mxu2 %v7363_v18  ;;  %v8006_v59 = vld [vmem:[%s14834_s3 + $0x180] sm:$0xf]  ;;  %v9590_v60 = vld [vmem:[%s14834_s3 + $0x18c] sm:$0xf0] }
 0x233   :  { %v6816_v22 = vld [vmem:[%s14831_s1 + $0x638] sm:$0xf0]  ;;  %v9642_v52 = vld [vmem:[%s14834_s3 + $0x32c] sm:$0xf0] }
 0x234   :  { %v9351_v1 = vld [vmem:[%s14831_s1 + $0x81c] sm:$0xf]  ;;  %v6819_v10 = vor.u32 %v9287_v61, %v6816_v22  ;;  %3490 = vmatpush.bf16.msrb.mxu3 %v7619_v4  ;;  %v9622_v61 = vld [vmem:[%s14834_s3 + $0x28c] sm:$0xf0]  ;;  %v8262_v22 = vld [vmem:[%s14834_s3 + $0x380] sm:$0xf] }
 0x235   :  { %v7072_v19 = vld [vmem:[%s14831_s1 + $0x838] sm:$0xf0]  ;;  %v9554_v4 = vld [vmem:[%s14834_s3 + $0x6c] sm:$0xf0] }
 0x236   :  { %v9415_v2 = vld [vmem:[%s14831_s1 + $0xa1c] sm:$0xf]  ;;  %v7075_v14 = vor.u32 %v9351_v1, %v7072_v19  ;;  %3452 = vmatpush.bf16.msrb.mxu0 %v6819_v10  ;;  %v12832_v1 = vpop.f32.mrf.mxu0  ;;  %v8007_v19 = vor.u32 %v9590_v60, %v8006_v59  ;;  %v9650_v10 = vld [vmem:[%s14834_s3 + $0x36c] sm:$0xf0]  ;;  %v7863_v11 = vor.u32 %v9554_v4, %v7862_v3  ;;  %v8070_v59 = vld [vmem:[%s14834_s3 + $0x200] sm:$0xf] }
 0x237   :  { %v7328_v62 = vld [vmem:[%s14831_s1 + $0xa38] sm:$0xf0]  ;;  %v8198_v60 = vld [vmem:[%s14834_s3 + $0x300] sm:$0xf]  ;;  %v3497_v3 = vmax.f32 %v11267_v34, 0.0  ;;  %v3498_v4 = vmax.f32 %v11635_v8, 0.0 }
 0x238   :  { %v9479_v5 = vld [vmem:[%s14831_s1 + $0xc1c] sm:$0xf]  ;;  %v7331_v46 = vor.u32 %v9415_v2, %v7328_v62  ;;  %3465 = vmatpush.bf16.msrb.mxu1 %v7075_v14  ;;  %v8135_v2 = vor.u32 %v9622_v61, %v8134_v38  ;;  %v7990_v62 = vld [vmem:[%s14834_s3 + $0x160] sm:$0xf]  ;;  %v3287_v38 = vpop.f32.mrf.mxu3  ;;  %v9638_v61 = vld [vmem:[%s14834_s3 + $0x30c] sm:$0xf0] }
 0x239   :  { %v7584_v6 = vld [vmem:[%s14831_s1 + $0xc38] sm:$0xf0]  ;;  %3453 = vmatmul.bf16.vlgmr.msrb.gmra.mxu0 %v10216_v20  ;;  %v8278_v20 = vld [vmem:[%s14834_s3 + $0x3a0] sm:$0xf]  ;;  %v7991_v48 = vor.u32 %v9586_v7, %v7990_v62  ;;  %v3499_v7 = vmax.f32 %v12033_v0, 0.0  ;;  %v3500_v0 = vmax.f32 %v12282_v39, 0.0  ;;  %v12978_v39 = vpack.c.bf16 %v3498_v4, %v3498_v4 }
 0x23a   :  { %v7587_v47 = vor.u32 %v9479_v5, %v7584_v6  ;;  %3478 = vmatpush.bf16.msrb.mxu2 %v7331_v46  ;;  %5059 = vmatpush.bf16.msra.mxu0 %v7927_v12  ;;  %v12843_v5 = vpop.f32.mrf.mxu1  ;;  %v8263_v6 = vor.u32 %v9654_v63, %v8262_v22  ;;  %v7846_v14 = vld [vmem:[%s14834_s3 + $0x40] sm:$0xf]  ;;  %v9550_v46 = vld [vmem:[%s14834_s3 + $0x4c] sm:$0xf0] }
 0x23b   :  { %3466 = vmatmul.bf16.vlgmr.msrb.gmra.mxu1 %v10376_v40  ;;  %v7878_v40 = vld [vmem:[%s14834_s3 + $0x80] sm:$0xf]  ;;  %v9582_v12 = vld [vmem:[%s14834_s3 + $0x14c] sm:$0xf0] }
 0x23c   :  { %3491 = vmatpush.bf16.msrb.mxu3 %v7587_v47  ;;  %5072 = vmatpush.bf16.msra.mxu1 %v8055_v21  ;;  %v8247_v47 = vor.u32 %v9650_v10, %v8246_v9  ;;  %v8102_v21 = vld [vmem:[%s14834_s3 + $0x240] sm:$0xf]  ;;  %v7975_v28 = vor.u32 %v9582_v12, %v7974_v16  ;;  %v9698_v63 = vld [vmem:[%s14834_s3 + $0x4ec] sm:$0xf0]  ;;  %v8199_v9 = vor.u32 %v9638_v61, %v8198_v60 }
 0x23d   :  { %3479 = vmatmul.bf16.vlgmr.msrb.gmra.mxu2 %v10378_v41  ;;  %v9558_v41 = vld [vmem:[%s14834_s3 + $0x8c] sm:$0xf0]  ;;  %v8438_v22 = vld [vmem:[%s14834_s3 + $0x4e0] sm:$0xf]  ;;  %v12976_v16 = vpack.c.bf16 %v3497_v3, %v3497_v3  ;;  %v12980_v12 = vpack.c.bf16 %v3499_v7, %v3499_v7 }
 0x23e   :  { %5085 = vmatpush.bf16.msra.mxu2 %v8183_v23  ;;  %5060 = vmatpush.bf16.msra.mxu0 %v7911_v35  ;;  %v7879_v18 = vor.u32 %v9558_v41, %v7878_v40  ;;  %v9614_v23 = vld [vmem:[%s14834_s3 + $0x24c] sm:$0xf0]  ;;  %v3248_v27 = vpop.f32.mrf.mxu0  ;;  %v7958_v35 = vld [vmem:[%s14834_s3 + $0x120] sm:$0xf]  ;;  %v3274_v40 = vpop.f32.mrf.mxu2  ;;  %v8439_v10 = vor.u32 %v9698_v63, %v8438_v22 }
 0x23f   :  { %3492 = vmatmul.bf16.vlgmr.msrb.gmra.mxu3 %v10368_v37  ;;  %v8279_v37 = vor.u32 %v9658_v55, %v8278_v20  ;;  %v8103_v29 = vor.u32 %v9614_v23, %v8102_v21  ;;  %v7959_v20 = vor.u32 %v9578_v45, %v7958_v35  ;;  %v8087_v55 = vor.u32 %v9610_v50, %v8086_v49  ;;  %v8694_v34 = vld [vmem:[%s14834_s3 + $0x6e0] sm:$0xf]  ;;  %v9762_v8 = vld [vmem:[%s14834_s3 + $0x6ec] sm:$0xf0] }
 0x240   :  { %5098 = vmatpush.bf16.msra.mxu3 %v8311_v26  ;;  %5073 = vmatpush.bf16.msra.mxu1 %v8039_v36  ;;  %v7847_v26 = vor.u32 %v9550_v46, %v7846_v14  ;;  %v8550_v14 = vld [vmem:[%s14834_s3 + $0x5c0] sm:$0xf]  ;;  %v9726_v46 = vld [vmem:[%s14834_s3 + $0x5cc] sm:$0xf0]  ;;  %v3234_v21 = vadd.f32 %v12682_v43, %v493_v42 }
 0x241   :  { %v8551_v27 = vor.u32 %v9726_v46, %v8550_v14  ;;  %v8406_v43 = vld [vmem:[%s14834_s3 + $0x4a0] sm:$0xf]  ;;  %v9722_v30 = vld [vmem:[%s14834_s3 + $0x5ac] sm:$0xf0] }
 0x242   :  { %5086 = vmatpush.bf16.msra.mxu2 %v8167_v44  ;;  %5061 = vmatpush.bf16.msra.mxu0 %v7895_v56  ;;  %v3261_v36 = vpop.f32.mrf.mxu1  ;;  %v8231_v44 = vor.u32 %v9646_v15, %v8230_v25  ;;  %v9542_v56 = vld [vmem:[%s14834_s3 + $0xc] sm:$0xf0]  ;;  %v8678_v25 = vld [vmem:[%s14834_s3 + $0x6c0] sm:$0xf]  ;;  %v3247_v35 = vadd.f32 %v12832_v1, %v3234_v21 }
 0x243   :  { %v9758_v15 = vld [vmem:[%s14834_s3 + $0x6cc] sm:$0xf0]  ;;  %v8390_v50 = vld [vmem:[%s14834_s3 + $0x480] sm:$0xf] }
 0x244   :  { %5099 = vmatpush.bf16.msra.mxu3 %v8295_v51  ;;  %5074 = vmatpush.bf16.msra.mxu1 %v8023_v57  ;;  %v8214_v51 = vld [vmem:[%s14834_s3 + $0x320] sm:$0xf]  ;;  %v8679_v31 = vor.u32 %v9758_v15, %v8678_v25  ;;  %v9754_v45 = vld [vmem:[%s14834_s3 + $0x6ac] sm:$0xf0] }
 0x245   :  { %v7942_v57 = vld [vmem:[%s14834_s3 + $0x100] sm:$0xf]  ;;  %v8215_v41 = vor.u32 %v9642_v52, %v8214_v51  ;;  %v9686_v1 = vld [vmem:[%s14834_s3 + $0x48c] sm:$0xf0] }
 0x246   :  { %5087 = vmatpush.bf16.msra.mxu2 %v8151_v58  ;;  %5062 = vmatpush.bf16.msra.mxu0 %v7879_v18  ;;  %v9574_v58 = vld [vmem:[%s14834_s3 + $0x10c] sm:$0xf0]  ;;  %v7815_v18 = vor.u32 %v9542_v56, %v7814_v54  ;;  %v8518_v51 = vld [vmem:[%s14834_s3 + $0x580] sm:$0xf]  ;;  %v13064_v4 = vpop.f32.mrf.mxu2 }
 0x247   :  { %v7943_v62 = vor.u32 %v9574_v58, %v7942_v57  ;;  %v9718_v52 = vld [vmem:[%s14834_s3 + $0x58c] sm:$0xf0]  ;;  %v8646_v57 = vld [vmem:[%s14834_s3 + $0x680] sm:$0xf] }
 0x248   :  { %5100 = vmatpush.bf16.msra.mxu3 %v8279_v37  ;;  %5075 = vmatpush.bf16.msra.mxu1 %v8007_v19  ;;  %v9606_v37 = vld [vmem:[%s14834_s3 + $0x20c] sm:$0xf0]  ;;  %v8566_v19 = vld [vmem:[%s14834_s3 + $0x5e0] sm:$0xf]  ;;  %v8519_v40 = vor.u32 %v9718_v52, %v8518_v51 }
 0x249   :  { %v9750_v58 = vld [vmem:[%s14834_s3 + $0x68c] sm:$0xf0]  ;;  %v8630_v22 = vld [vmem:[%s14834_s3 + $0x660] sm:$0xf] }
 0x24a   :  { %5088 = vmatpush.bf16.msra.mxu2 %v8135_v2  ;;  %5063 = vmatpush.bf16.msra.mxu0 %v7863_v11  ;;  %v9730_v2 = vld [vmem:[%s14834_s3 + $0x5ec] sm:$0xf0]  ;;  %v3311_v56 = vpop.f32.mrf.mxu1  ;;  %v8647_v60 = vor.u32 %v9750_v58, %v8646_v57  ;;  %v8326_v46 = vld [vmem:[%s14834_s3 + $0x400] sm:$0xf]  ;;  %v8184_v57 = vld [vmem:[%s14834_s3 + $0x2f0] sm:$0xf0] }
 0x24b   :  { %v8567_v11 = vor.u32 %v9730_v2, %v8566_v19  ;;  %v9746_v63 = vld [vmem:[%s14834_s3 + $0x66c] sm:$0xf0]  ;;  %v8358_v19 = vld [vmem:[%s14834_s3 + $0x440] sm:$0xf] }
 0x24c   :  { %5101 = vmatpush.bf16.msra.mxu3 %v8263_v6  ;;  %5076 = vmatpush.bf16.msra.mxu1 %v7991_v48  ;;  %v8071_v6 = vor.u32 %v9606_v37, %v8070_v59  ;;  %v8422_v48 = vld [vmem:[%s14834_s3 + $0x4c0] sm:$0xf]  ;;  %v9714_v37 = vld [vmem:[%s14834_s3 + $0x56c] sm:$0xf0] }
 0x24d   :  { %v8502_v59 = vld [vmem:[%s14834_s3 + $0x560] sm:$0xf]  ;;  %v9710_v3 = vld [vmem:[%s14834_s3 + $0x54c] sm:$0xf0] }
 0x24e   :  { %5089 = vmatpush.bf16.msra.mxu2 %v8119_v13  ;;  %5064 = vmatpush.bf16.msra.mxu0 %v7847_v26  ;;  %v9694_v13 = vld [vmem:[%s14834_s3 + $0x4cc] sm:$0xf0]  ;;  %v12989_v26 = vpack.c.bf16 %v3500_v0, %v3500_v0  ;;  %v8486_v2 = vld [vmem:[%s14834_s3 + $0x540] sm:$0xf] }
 0x24f   :  { %v8423_v23 = vor.u32 %v9694_v13, %v8422_v48  ;;  %v8487_v0 = vor.u32 %v9710_v3, %v8486_v2  ;;  %v8470_v13 = vld [vmem:[%s14834_s3 + $0x520] sm:$0xf]  ;;  %v9706_v14 = vld [vmem:[%s14834_s3 + $0x52c] sm:$0xf0]  ;;  %v8168_v2 = vld [vmem:[%s14834_s3 + $0x2d0] sm:$0xf0] }
 0x250   :  { %5102 = vmatpush.bf16.msra.mxu3 %v8247_v47  ;;  %5077 = vmatpush.bf16.msra.mxu1 %v7975_v28  ;;  %v8695_v47 = vor.u32 %v9762_v8, %v8694_v34  ;;  %v9690_v28 = vld [vmem:[%s14834_s3 + $0x4ac] sm:$0xf0]  ;;  %v8598_v25 = vld [vmem:[%s14834_s3 + $0x620] sm:$0xf] }
 0x251   :  { %v8407_v36 = vor.u32 %v9690_v28, %v8406_v43  ;;  %v9742_v34 = vld [vmem:[%s14834_s3 + $0x64c] sm:$0xf0]  ;;  %v8454_v43 = vld [vmem:[%s14834_s3 + $0x500] sm:$0xf] }
 0x252   :  { %5090 = vmatpush.bf16.msra.mxu2 %v8103_v29  ;;  %5065 = vmatpush.bf16.msra.mxu0 %v7831_v53  ;;  %v8534_v29 = vld [vmem:[%s14834_s3 + $0x5a0] sm:$0xf]  ;;  %v3298_v53 = vpop.f32.mrf.mxu0  ;;  %v3313_v8 = vpop.f32.mrf.mxu1  ;;  %v9738_v15 = vld [vmem:[%s14834_s3 + $0x62c] sm:$0xf0] }
 0x253   :  { %v8535_v49 = vor.u32 %v9722_v30, %v8534_v29  ;;  %v8822_v28 = vld [vmem:[%s14834_s3 + $0x7e0] sm:$0xf]  ;;  %v9794_v29 = vld [vmem:[%s14834_s3 + $0x7ec] sm:$0xf0]  ;;  %v8599_v51 = vor.u32 %v9738_v15, %v8598_v25  ;;  %v9592_v8 = vld [vmem:[%s14834_s3 + $0x1a4] sm:$0xf] }
 0x254   :  { %5103 = vmatpush.bf16.msra.mxu3 %v8231_v44  ;;  %5078 = vmatpush.bf16.msra.mxu1 %v7959_v20  ;;  %v8662_v44 = vld [vmem:[%s14834_s3 + $0x6a0] sm:$0xf]  ;;  %v3260_v20 = vadd.f32 %v12843_v5, %v3247_v35  ;;  %v9682_v5 = vld [vmem:[%s14834_s3 + $0x46c] sm:$0xf0]  ;;  %v9568_v35 = vld [vmem:[%s14834_s3 + $0xe4] sm:$0xf] }
 0x255   :  { %v8663_v54 = vor.u32 %v9754_v45, %v8662_v44  ;;  %v3326_v44 = vpop.f32.mrf.mxu2  ;;  %v8823_v45 = vor.u32 %v9794_v29, %v8822_v28  ;;  %v8806_v58 = vld [vmem:[%s14834_s3 + $0x7c0] sm:$0xf]  ;;  %v9588_v15 = vld [vmem:[%s14834_s3 + $0x184] sm:$0xf] }
 0x256   :  { %5091 = vmatpush.bf16.msra.mxu2 %v8087_v55  ;;  %5066 = vmatpush.bf16.msra.mxu0 %v7815_v18  ;;  %v8391_v55 = vor.u32 %v9686_v1, %v8390_v50  ;;  %v3273_v38 = vadd.f32 %v12869_v17, %v3260_v20  ;;  %v8503_v18 = vor.u32 %v9714_v37, %v8502_v59  ;;  %v9678_v17 = vld [vmem:[%s14834_s3 + $0x44c] sm:$0xf0]  ;;  %v9600_v50 = vld [vmem:[%s14834_s3 + $0x1e4] sm:$0xf]  ;;  %v8056_v1 = vld [vmem:[%s14834_s3 + $0x1f0] sm:$0xf0] }
 0x257   :  { %v9632_v20 = vld [vmem:[%s14834_s3 + $0x2e4] sm:$0xf]  ;;  %v7912_v37 = vld [vmem:[%s14834_s3 + $0xd0] sm:$0xf0]  ;;  %v8790_v3 = vld [vmem:[%s14834_s3 + $0x7a0] sm:$0xf] }
 0x258   :  { %5104 = vmatpush.bf16.msra.mxu3 %v8215_v41  ;;  %5079 = vmatpush.bf16.msra.mxu1 %v7943_v62  ;;  %v8374_v41 = vld [vmem:[%s14834_s3 + $0x460] sm:$0xf]  ;;  %v8631_v62 = vor.u32 %v9746_v63, %v8630_v22  ;;  %v3286_v42 = vadd.f32 %v12880_v24, %v3273_v38  ;;  %v9674_v24 = vld [vmem:[%s14834_s3 + $0x42c] sm:$0xf0]  ;;  %v9564_v59 = vld [vmem:[%s14834_s3 + $0xc4] sm:$0xf]  ;;  %v8187_v63 = vor.u32 %v9632_v20, %v8184_v57 }
 0x259   :  { %5067 = vmatmul.bf16.vlgmr.msra.gmra.mxu0 %v12976_v16  ;;  %v8375_v61 = vor.u32 %v9682_v5, %v8374_v41  ;;  %v8059_v5 = vor.u32 %v9600_v50, %v8056_v1  ;;  %v9596_v38 = vld [vmem:[%s14834_s3 + $0x1c4] sm:$0xf]  ;;  %v8120_v20 = vld [vmem:[%s14834_s3 + $0x270] sm:$0xf0]  ;;  %v494_v57 = vperm.slane %v12954_v33, 6 }
 0x25a   :  { %5092 = vmatpush.bf16.msra.mxu2 %v8071_v6  ;;  %5111 = vmatpush.bf16.msrb.mxu0 %v8439_v10  ;;  %v13066_v6 = vpop.f32.mrf.mxu3  ;;  %v3300_v7 = vpop.f32.mrf.mxu0  ;;  %v8614_v10 = vld [vmem:[%s14834_s3 + $0x640] sm:$0xf]  ;;  %v3299_v48 = vadd.f32 %v3298_v53, %v3286_v42  ;;  %v9620_v28 = vld [vmem:[%s14834_s3 + $0x284] sm:$0xf] }
 0x25b   :  { %5080 = vmatmul.bf16.vlgmr.msra.gmra.mxu1 %v12978_v39  ;;  %v9552_v44 = vld [vmem:[%s14834_s3 + $0x64] sm:$0xf] }
 0x25c   :  { %5105 = vmatpush.bf16.msra.mxu3 %v8199_v9  ;;  %5124 = vmatpush.bf16.msrb.mxu1 %v8567_v11  ;;  %v8359_v9 = vor.u32 %v9678_v17, %v8358_v19  ;;  %v8342_v11 = vld [vmem:[%s14834_s3 + $0x420] sm:$0xf]  ;;  %v3312_v30 = vadd.f32 %v3311_v56, %v3299_v48  ;;  %v7915_v17 = vor.u32 %v9564_v59, %v7912_v37  ;;  %v9584_v1 = vld [vmem:[%s14834_s3 + $0x164] sm:$0xf]  ;;  %v7976_v37 = vld [vmem:[%s14834_s3 + $0x150] sm:$0xf0] }
 0x25d   :  { %5093 = vmatmul.bf16.vlgmr.msra.gmra.mxu2 %v12980_v12  ;;  %v8343_v21 = vor.u32 %v9674_v24, %v8342_v11  ;;  %v9624_v24 = vld [vmem:[%s14834_s3 + $0x2a4] sm:$0xf] }
 0x25e   :  { %5137 = vmatpush.bf16.msrb.mxu2 %v8695_v47  ;;  %5112 = vmatpush.bf16.msrb.mxu0 %v8423_v23  ;;  %v8615_v47 = vor.u32 %v9742_v34, %v8614_v10  ;;  %v9670_v23 = vld [vmem:[%s14834_s3 + $0x40c] sm:$0xf0]  ;;  %v3502_v41 = vmax.f32 %v3312_v30, 0.0  ;;  %v7896_v10 = vld [vmem:[%s14834_s3 + $0xb0] sm:$0xf0] }
 0x25f   :  { %5106 = vmatmul.bf16.vlgmr.msra.gmra.mxu3 %v12989_v26  ;;  %v8327_v53 = vor.u32 %v9670_v23, %v8326_v46  ;;  %v9782_v46 = vld [vmem:[%s14834_s3 + $0x78c] sm:$0xf0]  ;;  %v7880_v23 = vld [vmem:[%s14834_s3 + $0x90] sm:$0xf0]  ;;  %v9580_v59 = vld [vmem:[%s14834_s3 + $0x144] sm:$0xf] }
 0x260   :  { %5125 = vmatpush.bf16.msrb.mxu1 %v8551_v27  ;;  %v8471_v27 = vor.u32 %v9706_v14, %v8470_v13  ;;  %5150 = vmatpush.bf16.msrb.mxu3 %v8823_v45  ;;  %v13168_v7 = vpack.c.bf16 %v3502_v41, %v3502_v41  ;;  %v8152_v13 = vld [vmem:[%s14834_s3 + $0x2b0] sm:$0xf0]  ;;  %v8774_v14 = vld [vmem:[%s14834_s3 + $0x780] sm:$0xf] }
 0x261   :  { %v8775_v25 = vor.u32 %v9782_v46, %v8774_v14  ;;  %v8136_v30 = vld [vmem:[%s14834_s3 + $0x290] sm:$0xf0] }
 0x262   :  { %5138 = vmatpush.bf16.msrb.mxu2 %v8679_v31  ;;  %5113 = vmatpush.bf16.msrb.mxu0 %v8407_v36  ;;  %v9702_v31 = vld [vmem:[%s14834_s3 + $0x50c] sm:$0xf0]  ;;  %v7928_v36 = vld [vmem:[%s14834_s3 + $0xf0] sm:$0xf0]  ;;  %v3339_v52 = vpop.f32.mrf.mxu3 }
 0x263   :  { %v7931_v56 = vor.u32 %v9568_v35, %v7928_v36  ;;  %v9778_v35 = vld [vmem:[%s14834_s3 + $0x76c] sm:$0xf0]  ;;  %v7864_v45 = vld [vmem:[%s14834_s3 + $0x70] sm:$0xf0] }
 0x264   :  { %5126 = vmatpush.bf16.msrb.mxu1 %v8535_v49  ;;  %v3501_v49 = vmax.f32 %v12674_v32, 0.0  ;;  %v9734_v32 = vld [vmem:[%s14834_s3 + $0x60c] sm:$0xf0]  ;;  %v7848_v41 = vld [vmem:[%s14834_s3 + $0x50] sm:$0xf0] }
 0x265   :  { %v8088_v46 = vld [vmem:[%s14834_s3 + $0x230] sm:$0xf0] }
 0x266   :  { %5139 = vmatpush.bf16.msrb.mxu2 %v8663_v54  ;;  %5114 = vmatpush.bf16.msrb.mxu0 %v8391_v55  ;;  %v8582_v54 = vld [vmem:[%s14834_s3 + $0x600] sm:$0xf]  ;;  %v8455_v55 = vor.u32 %v9702_v31, %v8454_v43  ;;  %v13157_v19 = vpack.c.bf16 %v3501_v49, %v3501_v49  ;;  %v8155_v43 = vor.u32 %v9624_v24, %v8152_v13  ;;  %v13226_v49 = vpop.f32.mrf.mxu0  ;;  %v7816_v24 = vld [vmem:[%s14834_s3 + $0x10] sm:$0xf0]  ;;  %v9608_v13 = vld [vmem:[%s14834_s3 + $0x224] sm:$0xf] }
 0x267   :  { %v8583_v22 = vor.u32 %v9734_v32, %v8582_v54  ;;  %v8758_v31 = vld [vmem:[%s14834_s3 + $0x760] sm:$0xf]  ;;  %v13234_v52 = vpop.f32.mrf.mxu1  ;;  %v9616_v54 = vld [vmem:[%s14834_s3 + $0x264] sm:$0xf]  ;;  %v7867_v32 = vor.u32 %v9552_v44, %v7864_v45  ;;  %v8568_v44 = vld [vmem:[%s14834_s3 + $0x5f0] sm:$0xf0]  ;;  %v8091_v45 = vor.u32 %v9608_v13, %v8088_v46 }
 0x268   :  { %5127 = vmatpush.bf16.msrb.mxu1 %v8519_v40  ;;  %v9790_v40 = vld [vmem:[%s14834_s3 + $0x7cc] sm:$0xf0]  ;;  %v8759_v50 = vor.u32 %v9778_v35, %v8758_v31  ;;  %v8248_v46 = vld [vmem:[%s14834_s3 + $0x370] sm:$0xf0] }
 0x26a   :  { %5140 = vmatpush.bf16.msrb.mxu2 %v8647_v60  ;;  %5115 = vmatpush.bf16.msrb.mxu0 %v8375_v61  ;;  %v8807_v60 = vor.u32 %v9790_v40, %v8806_v58  ;;  %v8040_v61 = vld [vmem:[%s14834_s3 + $0x1d0] sm:$0xf0]  ;;  %v9548_v40 = vld [vmem:[%s14834_s3 + $0x44] sm:$0xf] }
 0x26b   :  { %v8043_v42 = vor.u32 %v9596_v38, %v8040_v61  ;;  %v8123_v61 = vor.u32 %v9616_v54, %v8120_v20 }
 0x26c   :  { %5128 = vmatpush.bf16.msrb.mxu1 %v8503_v18  ;;  %v9628_v18 = vld [vmem:[%s14834_s3 + $0x2c4] sm:$0xf]  ;;  %5151 = vmatpush.bf16.msrb.mxu3 %v8807_v60 }
 0x26d   :  { %v8171_v11 = vor.u32 %v9628_v18, %v8168_v2  ;;  %v8104_v18 = vld [vmem:[%s14834_s3 + $0x250] sm:$0xf0]  ;;  %v9770_v2 = vld [vmem:[%s14834_s3 + $0x72c] sm:$0xf0] }
 0x26e   :  { %5141 = vmatpush.bf16.msrb.mxu2 %v8631_v62  ;;  %5116 = vmatpush.bf16.msrb.mxu0 %v8359_v9  ;;  %v9786_v62 = vld [vmem:[%s14834_s3 + $0x7ac] sm:$0xf0]  ;;  %v9560_v9 = vld [vmem:[%s14834_s3 + $0xa4] sm:$0xf] }
 0x26f   :  { %v8791_v34 = vor.u32 %v9786_v62, %v8790_v3  ;;  %v7899_v48 = vor.u32 %v9560_v9, %v7896_v10  ;;  %v13261_v60 = vpop.f32.mrf.mxu2  ;;  %v3325_v3 = vadd.f32 %v13064_v4, %v494_v57  ;;  %v7979_v62 = vor.u32 %v9580_v59, %v7976_v37  ;;  %v7832_v9 = vld [vmem:[%s14834_s3 + $0x30] sm:$0xf0]  ;;  %v3352_v10 = vpop.f32.mrf.mxu0 }
 0x270   :  { %5129 = vmatpush.bf16.msrb.mxu1 %v8487_v0  ;;  %v8024_v0 = vld [vmem:[%s14834_s3 + $0x1b0] sm:$0xf0]  ;;  %v9652_v10 = vld [vmem:[%s14834_s3 + $0x384] sm:$0xf] }
 0x271   :  { %5152 = vmatpush.bf16.msrb.mxu3 %v8791_v34  ;;  %v13263_v38 = vpop.f32.mrf.mxu3  ;;  %v7960_v4 = vld [vmem:[%s14834_s3 + $0x130] sm:$0xf0] }
 0x272   :  { %5142 = vmatpush.bf16.msrb.mxu2 %v8615_v47  ;;  %5117 = vmatpush.bf16.msrb.mxu0 %v8343_v21  ;;  %v8027_v47 = vor.u32 %v9592_v8, %v8024_v0  ;;  %v9556_v21 = vld [vmem:[%s14834_s3 + $0x84] sm:$0xf]  ;;  %v3365_v0 = vpop.f32.mrf.mxu1 }
 0x273   :  { %v7883_v29 = vor.u32 %v9556_v21, %v7880_v23  ;;  %v9576_v8 = vld [vmem:[%s14834_s3 + $0x124] sm:$0xf]  ;;  %v9766_v21 = vld [vmem:[%s14834_s3 + $0x70c] sm:$0xf0]  ;;  %v3338_v23 = vadd.f32 %v13066_v6, %v3325_v3 }
 0x274   :  { %5130 = vmatpush.bf16.msrb.mxu1 %v8471_v27  ;;  %v8008_v27 = vld [vmem:[%s14834_s3 + $0x190] sm:$0xf0]  ;;  %v9696_v6 = vld [vmem:[%s14834_s3 + $0x4e4] sm:$0xf] }
 0x275   :  { %5153 = vmatpush.bf16.msrb.mxu3 %v8775_v25  ;;  %v8011_v36 = vor.u32 %v9588_v15, %v8008_v27  ;;  %v7963_v25 = vor.u32 %v9576_v8, %v7960_v4  ;;  %v9572_v15 = vld [vmem:[%s14834_s3 + $0x104] sm:$0xf]  ;;  %v3351_v54 = vadd.f32 %v13226_v49, %v3338_v23  ;;  %v8424_v49 = vld [vmem:[%s14834_s3 + $0x4d0] sm:$0xf0] }
 0x276   :  { %5143 = vmatpush.bf16.msrb.mxu2 %v8599_v51  ;;  %5118 = vmatpush.bf16.msrb.mxu0 %v8327_v53  ;;  %v7992_v51 = vld [vmem:[%s14834_s3 + $0x170] sm:$0xf0]  ;;  %v8139_v53 = vor.u32 %v9620_v28, %v8136_v30  ;;  %v9720_v3 = vld [vmem:[%s14834_s3 + $0x5a4] sm:$0xf] }
 0x277   :  { %v7995_v58 = vor.u32 %v9584_v1, %v7992_v51  ;;  %v8312_v28 = vld [vmem:[%s14834_s3 + $0x3f0] sm:$0xf0]  ;;  %v3378_v31 = vpop.f32.mrf.mxu2  ;;  %v9604_v51 = vld [vmem:[%s14834_s3 + $0x204] sm:$0xf]  ;;  %v3364_v37 = vadd.f32 %v13234_v52, %v3351_v54 }
 0x278   :  { %5131 = vmatpush.bf16.msrb.mxu1 %v8455_v55  ;;  %v8742_v55 = vld [vmem:[%s14834_s3 + $0x740] sm:$0xf]  ;;  %v8440_v30 = vld [vmem:[%s14834_s3 + $0x4f0] sm:$0xf0]  ;;  %v9684_v4 = vld [vmem:[%s14834_s3 + $0x484] sm:$0xf] }
 0x279   :  { %5119 = vmatmul.bf16.vlgmr.msrb.gmra.mxu0 %v13157_v19  ;;  %5154 = vmatpush.bf16.msrb.mxu3 %v8759_v50  ;;  %v3391_v50 = vpop.f32.mrf.mxu3  ;;  %v8443_v20 = vor.u32 %v9696_v6, %v8440_v30  ;;  %v8408_v52 = vld [vmem:[%s14834_s3 + $0x4b0] sm:$0xf0]  ;;  %v9680_v23 = vld [vmem:[%s14834_s3 + $0x464] sm:$0xf] }
 0x27a   :  { %5163 = vmatpush.bf16.msra.mxu0 %v7931_v56  ;;  %5144 = vmatpush.bf16.msrb.mxu2 %v8583_v22  ;;  %v9774_v56 = vld [vmem:[%s14834_s3 + $0x74c] sm:$0xf0]  ;;  %v9612_v22 = vld [vmem:[%s14834_s3 + $0x244] sm:$0xf]  ;;  %v8488_v54 = vld [vmem:[%s14834_s3 + $0x550] sm:$0xf0] }
 0x27b   :  { %5132 = vmatmul.bf16.vlgmr.msrb.gmra.mxu1 %v13168_v7  ;;  %v9676_v50 = vld [vmem:[%s14834_s3 + $0x444] sm:$0xf] }
 0x27c   :  { %5176 = vmatpush.bf16.msra.mxu1 %v8059_v5  ;;  %v8743_v5 = vor.u32 %v9774_v56, %v8742_v55  ;;  %v9660_v55 = vld [vmem:[%s14834_s3 + $0x3c4] sm:$0xf]  ;;  %v8296_v56 = vld [vmem:[%s14834_s3 + $0x3d0] sm:$0xf0] }
 0x27e   :  { %5189 = vmatpush.bf16.msra.mxu2 %v8187_v63  ;;  %5164 = vmatpush.bf16.msra.mxu0 %v7915_v17  ;;  %v7851_v63 = vor.u32 %v9548_v40, %v7848_v41  ;;  %v8726_v17 = vld [vmem:[%s14834_s3 + $0x720] sm:$0xf]  ;;  %v8299_v40 = vor.u32 %v9660_v55, %v8296_v56  ;;  %v9724_v41 = vld [vmem:[%s14834_s3 + $0x5c4] sm:$0xf] }
 0x27f   :  { %5155 = vmatpush.bf16.msrb.mxu3 %v8743_v5  ;;  %v8727_v34 = vor.u32 %v9770_v2, %v8726_v17  ;;  %v8552_v5 = vld [vmem:[%s14834_s3 + $0x5d0] sm:$0xf0]  ;;  %v9688_v17 = vld [vmem:[%s14834_s3 + $0x4a4] sm:$0xf] }
 0x280   :  { %5177 = vmatpush.bf16.msra.mxu1 %v8043_v42  ;;  %v9544_v42 = vld [vmem:[%s14834_s3 + $0x24] sm:$0xf] }
 0x281   :  { %v7835_v14 = vor.u32 %v9544_v42, %v7832_v9  ;;  %v3377_v42 = vadd.f32 %v13261_v60, %v3364_v37  ;;  %v8411_v9 = vor.u32 %v9688_v17, %v8408_v52  ;;  %v8392_v60 = vld [vmem:[%s14834_s3 + $0x490] sm:$0xf0] }
 0x282   :  { %5190 = vmatpush.bf16.msra.mxu2 %v8171_v11  ;;  %5165 = vmatpush.bf16.msra.mxu0 %v7899_v48  ;;  %v9540_v11 = vld [vmem:[%s14834_s3 + $0x4] sm:$0xf]  ;;  %v8107_v48 = vor.u32 %v9612_v22, %v8104_v18  ;;  %v8555_v18 = vor.u32 %v9724_v41, %v8552_v5  ;;  %v8395_v13 = vor.u32 %v9684_v4, %v8392_v60  ;;  %v8344_v37 = vld [vmem:[%s14834_s3 + $0x430] sm:$0xf0] }
 0x283   :  { %5156 = vmatpush.bf16.msrb.mxu3 %v8727_v34  ;;  %v7819_v1 = vor.u32 %v9540_v11, %v7816_v24  ;;  %v9656_v22 = vld [vmem:[%s14834_s3 + $0x3a4] sm:$0xf]  ;;  %v8264_v34 = vld [vmem:[%s14834_s3 + $0x390] sm:$0xf0] }
 0x284   :  { %5178 = vmatpush.bf16.msra.mxu1 %v8027_v47  ;;  %v8710_v47 = vld [vmem:[%s14834_s3 + $0x700] sm:$0xf]  ;;  %v8267_v0 = vor.u32 %v9652_v10, %v8264_v34  ;;  %v9716_v11 = vld [vmem:[%s14834_s3 + $0x584] sm:$0xf]  ;;  %v8520_v24 = vld [vmem:[%s14834_s3 + $0x590] sm:$0xf0] }
 0x285   :  { %v8711_v27 = vor.u32 %v9766_v21, %v8710_v47  ;;  %v8523_v21 = vor.u32 %v9716_v11, %v8520_v24  ;;  %v8664_v17 = vld [vmem:[%s14834_s3 + $0x6b0] sm:$0xf0]  ;;  %v9700_v4 = vld [vmem:[%s14834_s3 + $0x504] sm:$0xf]  ;;  %v9571_v11 = vld [vmem:[%s14834_s3 + $0xf4] sm:$0xf0] }
 0x286   :  { %5191 = vmatpush.bf16.msra.mxu2 %v8155_v43  ;;  %5166 = vmatpush.bf16.msra.mxu0 %v7883_v29  ;;  %v9664_v43 = vld [vmem:[%s14834_s3 + $0x3e4] sm:$0xf]  ;;  %v7944_v29 = vld [vmem:[%s14834_s3 + $0x110] sm:$0xf0]  ;;  %v8062_v24 = vld [vmem:[%s14834_s3 + $0x1e8] sm:$0xf] }
 0x287   :  { %v8315_v35 = vor.u32 %v9664_v43, %v8312_v28  ;;  %5157 = vmatpush.bf16.msrb.mxu3 %v8711_v27  ;;  %v8504_v43 = vld [vmem:[%s14834_s3 + $0x570] sm:$0xf0]  ;;  %v9760_v28 = vld [vmem:[%s14834_s3 + $0x6e4] sm:$0xf]  ;;  %v13423_v6 = vpop.f32.mrf.mxu1 }
 0x288   :  { %5179 = vmatpush.bf16.msra.mxu1 %v8011_v36  ;;  %v9728_v36 = vld [vmem:[%s14834_s3 + $0x5e4] sm:$0xf]  ;;  %v8456_v60 = vld [vmem:[%s14834_s3 + $0x510] sm:$0xf0] }
 0x289   :  { %v8571_v57 = vor.u32 %v9728_v36, %v8568_v44  ;;  %v3402_v47 = vpop.f32.mrf.mxu0  ;;  %v8232_v36 = vld [vmem:[%s14834_s3 + $0x350] sm:$0xf0] }
 0x28a   :  { %5192 = vmatpush.bf16.msra.mxu2 %v8139_v53  ;;  %5167 = vmatpush.bf16.msra.mxu0 %v7867_v32  ;;  %v8072_v53 = vld [vmem:[%s14834_s3 + $0x210] sm:$0xf0]  ;;  %v7947_v32 = vor.u32 %v9572_v15, %v7944_v29 }
 0x28b   :  { %5202 = vmatpush.bf16.msra.mxu3 %v8315_v35  ;;  %v8075_v59 = vor.u32 %v9604_v51, %v8072_v53  ;;  %v8696_v29 = vld [vmem:[%s14834_s3 + $0x6f0] sm:$0xf0]  ;;  %v9644_v35 = vld [vmem:[%s14834_s3 + $0x344] sm:$0xf] }
 0x28c   :  { %5180 = vmatpush.bf16.msra.mxu1 %v7995_v58  ;;  %v9692_v58 = vld [vmem:[%s14834_s3 + $0x4c4] sm:$0xf]  ;;  %v8235_v55 = vor.u32 %v9644_v35, %v8232_v36  ;;  %v8632_v35 = vld [vmem:[%s14834_s3 + $0x670] sm:$0xf0] }
 0x28d   :  { %v9708_v51 = vld [vmem:[%s14834_s3 + $0x544] sm:$0xf] }
 0x28e   :  { %5193 = vmatpush.bf16.msra.mxu2 %v8123_v61  ;;  %5168 = vmatpush.bf16.msra.mxu0 %v7851_v63  ;;  %v8427_v61 = vor.u32 %v9692_v58, %v8424_v49  ;;  %v8280_v63 = vld [vmem:[%s14834_s3 + $0x3b0] sm:$0xf0]  ;;  %v9640_v49 = vld [vmem:[%s14834_s3 + $0x324] sm:$0xf]  ;;  %v8491_v41 = vor.u32 %v9708_v51, %v8488_v54  ;;  %v8030_v51 = vld [vmem:[%s14834_s3 + $0x1a8] sm:$0xf] }
 0x28f   :  { %5203 = vmatpush.bf16.msra.mxu3 %v8299_v40  ;;  %v8283_v2 = vor.u32 %v9656_v22, %v8280_v63  ;;  %v8216_v40 = vld [vmem:[%s14834_s3 + $0x330] sm:$0xf0] }
 0x290   :  { %5181 = vmatpush.bf16.msra.mxu1 %v7979_v62  ;;  %v8536_v62 = vld [vmem:[%s14834_s3 + $0x5b0] sm:$0xf0]  ;;  %v8219_v52 = vor.u32 %v9640_v49, %v8216_v40  ;;  %v7886_v40 = vld [vmem:[%s14834_s3 + $0x88] sm:$0xf] }
 0x291   :  { %v8539_v8 = vor.u32 %v9720_v3, %v8536_v62  ;;  %v13454_v58 = vpop.f32.mrf.mxu3  ;;  %v3404_v22 = vpop.f32.mrf.mxu0  ;;  %v8472_v63 = vld [vmem:[%s14834_s3 + $0x530] sm:$0xf0]  ;;  %v9668_v62 = vld [vmem:[%s14834_s3 + $0x404] sm:$0xf] }
 0x292   :  { %5194 = vmatpush.bf16.msra.mxu2 %v8107_v48  ;;  %5169 = vmatpush.bf16.msra.mxu0 %v7835_v14  ;;  %v3390_v48 = vadd.f32 %v13263_v38, %v3377_v42  ;;  %v9648_v14 = vld [vmem:[%s14834_s3 + $0x364] sm:$0xf]  ;;  %v8376_v38 = vld [vmem:[%s14834_s3 + $0x470] sm:$0xf0] }
 0x293   :  { %5204 = vmatpush.bf16.msra.mxu3 %v8283_v2  ;;  %v8251_v15 = vor.u32 %v9648_v14, %v8248_v46  ;;  %v8379_v31 = vor.u32 %v9680_v23, %v8376_v38  ;;  %v3417_v2 = vpop.f32.mrf.mxu1  ;;  %v9636_v42 = vld [vmem:[%s14834_s3 + $0x304] sm:$0xf]  ;;  %v8648_v46 = vld [vmem:[%s14834_s3 + $0x690] sm:$0xf0]  ;;  %v495_v38 = vperm.slane %v12954_v33, 7 }
 0x294   :  { %5182 = vmatpush.bf16.msra.mxu1 %v7963_v25  ;;  %v9712_v25 = vld [vmem:[%s14834_s3 + $0x564] sm:$0xf]  ;;  %v3403_v27 = vadd.f32 %v3402_v47, %v3390_v48  ;;  %v9599_v33 = vld [vmem:[%s14834_s3 + $0x1d4] sm:$0xf0]  ;;  %v8600_v22 = vld [vmem:[%s14834_s3 + $0x630] sm:$0xf0] }
 0x295   :  { %v8507_v44 = vor.u32 %v9712_v25, %v8504_v43  ;;  %v9748_v14 = vld [vmem:[%s14834_s3 + $0x684] sm:$0xf]  ;;  %v8459_v25 = vor.u32 %v9700_v4, %v8456_v60  ;;  %v3416_v54 = vadd.f32 %v13423_v6, %v495_v38  ;;  %v7998_v2 = vld [vmem:[%s14834_s3 + $0x168] sm:$0xf] }
 0x296   :  { %5195 = vmatpush.bf16.msra.mxu2 %v8091_v45  ;;  %5170 = vmatpush.bf16.msra.mxu0 %v7819_v1  ;;  %v3503_v30 = vmax.f32 %v3403_v27, 0.0  ;;  %v8699_v45 = vor.u32 %v9760_v28, %v8696_v29  ;;  %v8360_v1 = vld [vmem:[%s14834_s3 + $0x450] sm:$0xf0]  ;;  %v8651_v43 = vor.u32 %v9748_v14, %v8648_v46  ;;  %v7918_v28 = vld [vmem:[%s14834_s3 + $0xc8] sm:$0xf] }
 0x297   :  { %5205 = vmatpush.bf16.msra.mxu3 %v8267_v0  ;;  %v8363_v56 = vor.u32 %v9676_v50, %v8360_v1  ;;  %v7934_v0 = vld [vmem:[%s14834_s3 + $0xe8] sm:$0xf]  ;;  %v9567_v29 = vld [vmem:[%s14834_s3 + $0xd4] sm:$0xf0] }
 0x298   :  { %5183 = vmatpush.bf16.msra.mxu1 %v7947_v32  ;;  %v13440_v53 = vpack.c.bf16 %v3503_v30, %v3503_v30  ;;  %v9756_v32 = vld [vmem:[%s14834_s3 + $0x6c4] sm:$0xf]  ;;  %v8046_v30 = vld [vmem:[%s14834_s3 + $0x1c8] sm:$0xf]  ;;  %v7919_v36 = vor.u32 %v9567_v29, %v7918_v28  ;;  %v9563_v1 = vld [vmem:[%s14834_s3 + $0xb4] sm:$0xf0] }
 0x299   :  { %5171 = vmatmul.bf16.vlgmr.msra.gmra.mxu0 %v12976_v16  ;;  %v3443_v23 = vpop.f32.mrf.mxu3  ;;  %v7902_v50 = vld [vmem:[%s14834_s3 + $0xa8] sm:$0xf]  ;;  %v9583_v46 = vld [vmem:[%s14834_s3 + $0x154] sm:$0xf0] }
 0x29a   :  { %5215 = vmatpush.bf16.msrb.mxu0 %v8443_v20  ;;  %5196 = vmatpush.bf16.msra.mxu2 %v8075_v59  ;;  %v8680_v20 = vld [vmem:[%s14834_s3 + $0x6d0] sm:$0xf0]  ;;  %v9672_v59 = vld [vmem:[%s14834_s3 + $0x424] sm:$0xf]  ;;  %v7903_v6 = vor.u32 %v9563_v1, %v7902_v50  ;;  %v7982_v14 = vld [vmem:[%s14834_s3 + $0x148] sm:$0xf] }
 0x29b   :  { %5184 = vmatmul.bf16.vlgmr.msra.gmra.mxu1 %v12978_v39  ;;  %5206 = vmatpush.bf16.msra.mxu3 %v8251_v15  ;;  %v8683_v5 = vor.u32 %v9756_v32, %v8680_v20  ;;  %v8347_v3 = vor.u32 %v9672_v59, %v8344_v37  ;;  %v7935_v15 = vor.u32 %v9571_v11, %v7934_v0  ;;  %v9595_v32 = vld [vmem:[%s14834_s3 + $0x1b4] sm:$0xf0]  ;;  %v9740_v20 = vld [vmem:[%s14834_s3 + $0x644] sm:$0xf] }
 0x29c   :  { %5228 = vmatpush.bf16.msrb.mxu1 %v8571_v57  ;;  %5145 = vmatmul.bf16.vlgmr.msrb.gmra.mxu2 %v13440_v53  ;;  %v13452_v57 = vpop.f32.mrf.mxu2  ;;  %v9591_v37 = vld [vmem:[%s14834_s3 + $0x194] sm:$0xf0] }
 0x29d   :  { %v3429_v59 = vadd.f32 %v13452_v57, %v3416_v54  ;;  %v7870_v57 = vld [vmem:[%s14834_s3 + $0x68] sm:$0xf]  ;;  %v9627_v50 = vld [vmem:[%s14834_s3 + $0x2b4] sm:$0xf0]  ;;  %v8824_v54 = vld [vmem:[%s14834_s3 + $0x7f0] sm:$0xf0] }
 0x29e   :  { %5216 = vmatpush.bf16.msrb.mxu0 %v8427_v61  ;;  %5241 = vmatpush.bf16.msrb.mxu2 %v8699_v45  ;;  %v9704_v61 = vld [vmem:[%s14834_s3 + $0x524] sm:$0xf] }
 0x29f   :  { %5207 = vmatpush.bf16.msra.mxu3 %v8235_v55  ;;  %v8475_v10 = vor.u32 %v9704_v61, %v8472_v63  ;;  %v8616_v55 = vld [vmem:[%s14834_s3 + $0x650] sm:$0xf0]  ;;  %v9736_v61 = vld [vmem:[%s14834_s3 + $0x624] sm:$0xf] }
 0x2a0   :  { %5229 = vmatpush.bf16.msrb.mxu1 %v8555_v18  ;;  %v9752_v18 = vld [vmem:[%s14834_s3 + $0x6a4] sm:$0xf]  ;;  %v8619_v49 = vor.u32 %v9740_v20, %v8616_v55  ;;  %v9543_v20 = vld [vmem:[%s14834_s3 + $0x14] sm:$0xf0] }
 0x2a1   :  { %v8667_v34 = vor.u32 %v9752_v18, %v8664_v17  ;;  %v8603_v17 = vor.u32 %v9736_v61, %v8600_v22  ;;  %v9731_v61 = vld [vmem:[%s14834_s3 + $0x5f4] sm:$0xf0]  ;;  %v8142_v22 = vld [vmem:[%s14834_s3 + $0x288] sm:$0xf] }
 0x2a2   :  { %5217 = vmatpush.bf16.msrb.mxu0 %v8411_v9  ;;  %v8200_v9 = vld [vmem:[%s14834_s3 + $0x310] sm:$0xf0]  ;;  %5242 = vmatpush.bf16.msrb.mxu2 %v8683_v5  ;;  %v8014_v5 = vld [vmem:[%s14834_s3 + $0x188] sm:$0xf] }
 0x2a3   :  { %5208 = vmatpush.bf16.msra.mxu3 %v8219_v52  ;;  %v8203_v48 = vor.u32 %v9636_v42, %v8200_v9  ;;  %v8015_v18 = vor.u32 %v9591_v37, %v8014_v5  ;;  %v9555_v52 = vld [vmem:[%s14834_s3 + $0x74] sm:$0xf0]  ;;  %v9732_v9 = vld [vmem:[%s14834_s3 + $0x604] sm:$0xf] }
 0x2a4   :  { %5230 = vmatpush.bf16.msrb.mxu1 %v8539_v8  ;;  %v8328_v8 = vld [vmem:[%s14834_s3 + $0x410] sm:$0xf0]  ;;  %v9587_v42 = vld [vmem:[%s14834_s3 + $0x174] sm:$0xf0]  ;;  %v7871_v60 = vor.u32 %v9555_v52, %v7870_v57  ;;  %v9788_v57 = vld [vmem:[%s14834_s3 + $0x7c4] sm:$0xf] }
 0x2a5   :  { %v8331_v47 = vor.u32 %v9668_v62, %v8328_v8  ;;  %v8190_v8 = vld [vmem:[%s14834_s3 + $0x2e8] sm:$0xf]  ;;  %v7999_v0 = vor.u32 %v9587_v42, %v7998_v2  ;;  %v9699_v5 = vld [vmem:[%s14834_s3 + $0x4f4] sm:$0xf0]  ;;  %v8808_v52 = vld [vmem:[%s14834_s3 + $0x7d0] sm:$0xf0] }
 0x2a6   :  { %5218 = vmatpush.bf16.msrb.mxu0 %v8395_v13  ;;  %v9603_v13 = vld [vmem:[%s14834_s3 + $0x1f4] sm:$0xf0]  ;;  %5243 = vmatpush.bf16.msrb.mxu2 %v8667_v34 }
 0x2a7   :  { %v8063_v27 = vor.u32 %v9603_v13, %v8062_v24  ;;  %5209 = vmatpush.bf16.msra.mxu3 %v8203_v48  ;;  %v7854_v24 = vld [vmem:[%s14834_s3 + $0x48] sm:$0xf]  ;;  %v9551_v48 = vld [vmem:[%s14834_s3 + $0x54] sm:$0xf0] }
 0x2a8   :  { %5231 = vmatpush.bf16.msrb.mxu1 %v8523_v21  ;;  %v3430_v21 = vpop.f32.mrf.mxu2  ;;  %v7855_v38 = vor.u32 %v9551_v48, %v7854_v24  ;;  %v9784_v24 = vld [vmem:[%s14834_s3 + $0x7a4] sm:$0xf]  ;;  %v8792_v48 = vld [vmem:[%s14834_s3 + $0x7b0] sm:$0xf0] }
 0x2a9   :  { %v9631_v21 = vld [vmem:[%s14834_s3 + $0x2d4] sm:$0xf0] }
 0x2aa   :  { %5219 = vmatpush.bf16.msrb.mxu0 %v8379_v31  ;;  %v9744_v31 = vld [vmem:[%s14834_s3 + $0x664] sm:$0xf]  ;;  %5244 = vmatpush.bf16.msrb.mxu2 %v8651_v43  ;;  %v9547_v43 = vld [vmem:[%s14834_s3 + $0x34] sm:$0xf0] }
 0x2ab   :  { %v8635_v45 = vor.u32 %v9744_v31, %v8632_v35  ;;  %v7966_v31 = vld [vmem:[%s14834_s3 + $0x128] sm:$0xf]  ;;  %v9579_v35 = vld [vmem:[%s14834_s3 + $0x134] sm:$0xf0] }
 0x2ac   :  { %5232 = vmatpush.bf16.msrb.mxu1 %v8507_v44  ;;  %v8047_v44 = vor.u32 %v9599_v33, %v8046_v30  ;;  %5197 = vmatmul.bf16.vlgmr.msra.gmra.mxu2 %v12980_v12  ;;  %v7967_v55 = vor.u32 %v9579_v35, %v7966_v31 }
 0x2ae   :  { %5220 = vmatpush.bf16.msrb.mxu0 %v8363_v56  ;;  %5245 = vmatpush.bf16.msrb.mxu2 %v8635_v45  ;;  %v8031_v56 = vor.u32 %v9595_v32, %v8030_v51  ;;  %v8158_v45 = vld [vmem:[%s14834_s3 + $0x2a8] sm:$0xf] }
 0x2af   :  { %v7822_v32 = vld [vmem:[%s14834_s3 + $0x8] sm:$0xf] }
 0x2b0   :  { %5233 = vmatpush.bf16.msrb.mxu1 %v8491_v41  ;;  %v9559_v41 = vld [vmem:[%s14834_s3 + $0x94] sm:$0xf0] }
 0x2b1   :  { %v7887_v63 = vor.u32 %v9559_v41, %v7886_v40  ;;  %v8159_v41 = vor.u32 %v9627_v50, %v8158_v45  ;;  %v8526_v50 = vld [vmem:[%s14834_s3 + $0x588] sm:$0xf] }
 0x2b2   :  { %5221 = vmatpush.bf16.msrb.mxu0 %v8347_v3  ;;  %5246 = vmatpush.bf16.msrb.mxu2 %v8619_v49  ;;  %v3442_v3 = vadd.f32 %v13454_v58, %v3429_v59  ;;  %v9635_v58 = vld [vmem:[%s14834_s3 + $0x2f4] sm:$0xf0]  ;;  %v8446_v49 = vld [vmem:[%s14834_s3 + $0x4e8] sm:$0xf] }
 0x2b3   :  { %v8191_v13 = vor.u32 %v9635_v58, %v8190_v8  ;;  %v8574_v59 = vld [vmem:[%s14834_s3 + $0x5e8] sm:$0xf]  ;;  %v9695_v8 = vld [vmem:[%s14834_s3 + $0x4d4] sm:$0xf0] }
 0x2b4   :  { %5234 = vmatpush.bf16.msrb.mxu1 %v8475_v10  ;;  %v8584_v10 = vld [vmem:[%s14834_s3 + $0x610] sm:$0xf0]  ;;  %v8558_v58 = vld [vmem:[%s14834_s3 + $0x5c8] sm:$0xf] }
 0x2b5   :  { %v8587_v11 = vor.u32 %v9732_v9, %v8584_v10  ;;  %v8575_v9 = vor.u32 %v9731_v61, %v8574_v59  ;;  %v8510_v59 = vld [vmem:[%s14834_s3 + $0x568] sm:$0xf]  ;;  %v9772_v61 = vld [vmem:[%s14834_s3 + $0x744] sm:$0xf] }
 0x2b6   :  { %5222 = vmatpush.bf16.msrb.mxu0 %v8331_v47  ;;  %v3454_v62 = vpop.f32.mrf.mxu0  ;;  %5247 = vmatpush.bf16.msrb.mxu2 %v8603_v17  ;;  %v8174_v47 = vld [vmem:[%s14834_s3 + $0x2c8] sm:$0xf]  ;;  %v7823_v17 = vor.u32 %v9543_v20, %v7822_v32  ;;  %v9611_v20 = vld [vmem:[%s14834_s3 + $0x234] sm:$0xf0] }
 0x2b7   :  { %v3455_v4 = vadd.f32 %v3454_v62, %v3442_v3  ;;  %v8175_v33 = vor.u32 %v9631_v21, %v8174_v47  ;;  %v8447_v62 = vor.u32 %v9699_v5, %v8446_v49  ;;  %v9691_v21 = vld [vmem:[%s14834_s3 + $0x4b4] sm:$0xf0]  ;;  %v8094_v32 = vld [vmem:[%s14834_s3 + $0x228] sm:$0xf] }
 0x2b8   :  { %5235 = vmatpush.bf16.msrb.mxu1 %v8459_v25  ;;  %v3467_v34 = vpop.f32.mrf.mxu1  ;;  %v9683_v49 = vld [vmem:[%s14834_s3 + $0x474] sm:$0xf0]  ;;  %v8095_v5 = vor.u32 %v9611_v20, %v8094_v32  ;;  %v8334_v32 = vld [vmem:[%s14834_s3 + $0x408] sm:$0xf] }
 0x2b9   :  { %5223 = vmatmul.bf16.vlgmr.msrb.gmra.mxu0 %v13157_v19  ;;  %v3468_v23 = vadd.f32 %v3467_v34, %v3455_v4  ;;  %v8430_v34 = vld [vmem:[%s14834_s3 + $0x4c8] sm:$0xf]  ;;  %v8811_v4 = vor.u32 %v9788_v57, %v8808_v52  ;;  %v9607_v52 = vld [vmem:[%s14834_s3 + $0x214] sm:$0xf0] }
 0x2ba   :  { %5267 = vmatpush.bf16.msra.mxu0 %v7935_v15  ;;  %5248 = vmatpush.bf16.msrb.mxu2 %v8587_v11  ;;  %v7983_v15 = vor.u32 %v9583_v46, %v7982_v14  ;;  %v9619_v11 = vld [vmem:[%s14834_s3 + $0x274] sm:$0xf0]  ;;  %v8414_v14 = vld [vmem:[%s14834_s3 + $0x4a8] sm:$0xf] }
 0x2bb   :  { %5236 = vmatmul.bf16.vlgmr.msrb.gmra.mxu1 %v13168_v7  ;;  %v8078_v57 = vld [vmem:[%s14834_s3 + $0x208] sm:$0xf]  ;;  %v9671_v20 = vld [vmem:[%s14834_s3 + $0x414] sm:$0xf0] }
 0x2bc   :  { %5280 = vmatpush.bf16.msra.mxu1 %v8063_v27  ;;  %v7838_v27 = vld [vmem:[%s14834_s3 + $0x28] sm:$0xf] }
 0x2bd   :  { %5249 = vmatmul.bf16.vlgmr.msrb.gmra.mxu2 %v13440_v53  ;;  %v7839_v51 = vor.u32 %v9547_v43, %v7838_v27  ;;  %v9615_v27 = vld [vmem:[%s14834_s3 + $0x254] sm:$0xf0]  ;;  %v13729_v43 = vld [vmem:[%s14835_s4] sm:$0xf] }
 0x2be   :  { %5268 = vmatpush.bf16.msra.mxu0 %v7919_v36  ;;  %5293 = vmatpush.bf16.msra.mxu2 %v8191_v13  ;;  %v3456_v30 = vpop.f32.mrf.mxu0  ;;  %v8431_v13 = vor.u32 %v9695_v8, %v8430_v34  ;;  %v3771_v35 = vperm.slane %v13729_v43, 0  ;;  %v9679_v34 = vld [vmem:[%s14834_s3 + $0x454] sm:$0xf0] }
 0x2bf   :  { %v8415_v30 = vor.u32 %v9691_v21, %v8414_v14  ;;  %v9759_v14 = vld [vmem:[%s14834_s3 + $0x6d4] sm:$0xf0]  ;;  %v8350_v21 = vld [vmem:[%s14834_s3 + $0x428] sm:$0xf] }
 0x2c0   :  { %5281 = vmatpush.bf16.msra.mxu1 %v8047_v44  ;;  %v3480_v25 = vpop.f32.mrf.mxu2  ;;  %v3469_v36 = vpop.f32.mrf.mxu1  ;;  %v9792_v44 = vld [vmem:[%s14834_s3 + $0x7e4] sm:$0xf] }
 0x2c1   :  { %v3481_v28 = vadd.f32 %v3480_v25, %v3468_v23  ;;  %v8827_v37 = vor.u32 %v9792_v44, %v8824_v54  ;;  %v8542_v23 = vld [vmem:[%s14834_s3 + $0x5a8] sm:$0xf]  ;;  %v8795_v25 = vor.u32 %v9784_v24, %v8792_v48  ;;  %v9687_v44 = vld [vmem:[%s14834_s3 + $0x494] sm:$0xf0]  ;;  %v8760_v54 = vld [vmem:[%s14834_s3 + $0x770] sm:$0xf0] }
 0x2c2   :  { %5269 = vmatpush.bf16.msra.mxu0 %v7903_v6  ;;  %v3493_v29 = vpop.f32.mrf.mxu3  ;;  %v7950_v6 = vld [vmem:[%s14834_s3 + $0x108] sm:$0xf]  ;;  %5294 = vmatpush.bf16.msra.mxu2 %v8175_v33  ;;  %v8728_v24 = vld [vmem:[%s14834_s3 + $0x730] sm:$0xf0] }
 0x2c3   :  { %v3494_v1 = vadd.f32 %v3493_v29, %v3481_v28  ;;  %v9780_v28 = vld [vmem:[%s14834_s3 + $0x784] sm:$0xf]  ;;  %v8776_v29 = vld [vmem:[%s14834_s3 + $0x790] sm:$0xf0]  ;;  %v8398_v36 = vld [vmem:[%s14834_s3 + $0x488] sm:$0xf] }
 0x2c4   :  { %5282 = vmatpush.bf16.msra.mxu1 %v8031_v56  ;;  %v9575_v56 = vld [vmem:[%s14834_s3 + $0x114] sm:$0xf0]  ;;  %v8779_v45 = vor.u32 %v9780_v28, %v8776_v29  ;;  %v8478_v28 = vld [vmem:[%s14834_s3 + $0x528] sm:$0xf] }
 0x2c5   :  { %v3504_v40 = vmax.f32 %v3494_v1, 0.0  ;;  %v7951_v3 = vor.u32 %v9575_v56, %v7950_v6  ;;  %v9719_v1 = vld [vmem:[%s14834_s3 + $0x594] sm:$0xf0]  ;;  %v8382_v56 = vld [vmem:[%s14834_s3 + $0x468] sm:$0xf] }
 0x2c6   :  { %5270 = vmatpush.bf16.msra.mxu0 %v7887_v63  ;;  %v9623_v63 = vld [vmem:[%s14834_s3 + $0x294] sm:$0xf0]  ;;  %5295 = vmatpush.bf16.msra.mxu2 %v8159_v41  ;;  %v8527_v6 = vor.u32 %v9719_v1, %v8526_v50  ;;  %v8670_v1 = vld [vmem:[%s14834_s3 + $0x6a8] sm:$0xf] }
 0x2c7   :  { %v8143_v10 = vor.u32 %v9623_v63, %v8142_v22  ;;  %v9707_v29 = vld [vmem:[%s14834_s3 + $0x534] sm:$0xf0] }
 0x2c8   :  { %5283 = vmatpush.bf16.msra.mxu1 %v8015_v18  ;;  %v13674_v18 = vpack.c.bf16 %v3504_v40, %v3504_v40  ;;  %v3482_v2 = vpop.f32.mrf.mxu2  ;;  %v9667_v50 = vld [vmem:[%s14834_s3 + $0x3f4] sm:$0xf0] }
 0x2c9   :  { %v8383_v2 = vor.u32 %v9683_v49, %v8382_v56  ;;  %v9703_v56 = vld [vmem:[%s14834_s3 + $0x514] sm:$0xf0]  ;;  %v9569_v49 = vld [vmem:[%s14834_s3 + $0xec] sm:$0xf] }
 0x2ca   :  { %5271 = vmatpush.bf16.msra.mxu0 %v7871_v60  ;;  %v3495_v42 = vpop.f32.mrf.mxu3  ;;  %5158 = vmatmul.bf16.vlgmr.msrb.gmra.mxu3 %v13674_v18  ;;  %v9727_v60 = vld [vmem:[%s14834_s3 + $0x5d4] sm:$0xf0] }
 0x2cb   :  { %5254 = vmatpush.bf16.msrb.mxu3 %v8827_v37  ;;  %5296 = vmatpush.bf16.msra.mxu2 %v8143_v10  ;;  %v8559_v46 = vor.u32 %v9727_v60, %v8558_v58  ;;  %v9715_v37 = vld [vmem:[%s14834_s3 + $0x574] sm:$0xf0]  ;;  %v8366_v10 = vld [vmem:[%s14834_s3 + $0x448] sm:$0xf]  ;;  %v8079_v58 = vor.u32 %v9607_v52, %v8078_v57 }
 0x2cc   :  { %5284 = vmatpush.bf16.msra.mxu1 %v7999_v0  ;;  %v8126_v0 = vld [vmem:[%s14834_s3 + $0x268] sm:$0xf]  ;;  %v9711_v60 = vld [vmem:[%s14834_s3 + $0x554] sm:$0xf0]  ;;  %v8367_v48 = vor.u32 %v9679_v34, %v8366_v10  ;;  %v7920_v10 = vld [vmem:[%s14834_s3 + $0xd8] sm:$0xf0] }
 0x2cd   :  { %v8127_v47 = vor.u32 %v9619_v11, %v8126_v0  ;;  %v9768_v11 = vld [vmem:[%s14834_s3 + $0x724] sm:$0xf]  ;;  %v9751_v57 = vld [vmem:[%s14834_s3 + $0x694] sm:$0xf0] }
 0x2ce   :  { %5272 = vmatpush.bf16.msra.mxu0 %v7855_v38  ;;  %v9723_v38 = vld [vmem:[%s14834_s3 + $0x5b4] sm:$0xf0] }
 0x2cf   :  { %5255 = vmatpush.bf16.msrb.mxu3 %v8811_v4  ;;  %5297 = vmatpush.bf16.msra.mxu2 %v8127_v47  ;;  %v8543_v33 = vor.u32 %v9723_v38, %v8542_v23  ;;  %v8494_v4 = vld [vmem:[%s14834_s3 + $0x548] sm:$0xf]  ;;  %v9675_v23 = vld [vmem:[%s14834_s3 + $0x434] sm:$0xf0] }
 0x2d0   :  { %5285 = vmatpush.bf16.msra.mxu1 %v7983_v15  ;;  %v8110_v15 = vld [vmem:[%s14834_s3 + $0x248] sm:$0xf]  ;;  %v8495_v47 = vor.u32 %v9711_v60, %v8494_v4  ;;  %v8048_v4 = vld [vmem:[%s14834_s3 + $0x1d8] sm:$0xf0] }
 0x2d1   :  { %v8111_v31 = vor.u32 %v9615_v27, %v8110_v15  ;;  %v8731_v27 = vor.u32 %v9768_v11, %v8728_v24  ;;  %v8286_v60 = vld [vmem:[%s14834_s3 + $0x3a8] sm:$0xf]  ;;  %v9747_v24 = vld [vmem:[%s14834_s3 + $0x674] sm:$0xf0] }
 0x2d2   :  { %5273 = vmatpush.bf16.msra.mxu0 %v7839_v51  ;;  %v9776_v51 = vld [vmem:[%s14834_s3 + $0x764] sm:$0xf]  ;;  %v8638_v11 = vld [vmem:[%s14834_s3 + $0x668] sm:$0xf] }
 0x2d3   :  { %5256 = vmatpush.bf16.msrb.mxu3 %v8795_v25  ;;  %5298 = vmatpush.bf16.msra.mxu2 %v8111_v31  ;;  %v8763_v41 = vor.u32 %v9776_v51, %v8760_v54  ;;  %v9764_v31 = vld [vmem:[%s14834_s3 + $0x704] sm:$0xf]  ;;  %v9755_v51 = vld [vmem:[%s14834_s3 + $0x6b4] sm:$0xf0]  ;;  %v8479_v54 = vor.u32 %v9707_v29, %v8478_v28 }
 0x2d4   :  { %5286 = vmatpush.bf16.msra.mxu1 %v7967_v55  ;;  %v8399_v55 = vor.u32 %v9687_v44, %v8398_v36  ;;  %v8318_v36 = vld [vmem:[%s14834_s3 + $0x3e8] sm:$0xf]  ;;  %v9743_v28 = vld [vmem:[%s14834_s3 + $0x654] sm:$0xf0] }
 0x2d6   :  { %5274 = vmatpush.bf16.msra.mxu0 %v7823_v17  ;;  %v5068_v40 = vpop.f32.mrf.mxu0  ;;  %v8744_v17 = vld [vmem:[%s14834_s3 + $0x750] sm:$0xf0] }
 0x2d7   :  { %5257 = vmatpush.bf16.msrb.mxu3 %v8779_v45  ;;  %v5069_v22 = vadd.f32 %v5068_v40, %v3771_v35  ;;  %5299 = vmatpush.bf16.msra.mxu2 %v8095_v5  ;;  %v8747_v8 = vor.u32 %v9772_v61, %v8744_v17  ;;  %v8712_v35 = vld [vmem:[%s14834_s3 + $0x710] sm:$0xf0]  ;;  %v8351_v45 = vor.u32 %v9675_v23, %v8350_v21  ;;  %v7936_v40 = vld [vmem:[%s14834_s3 + $0xf8] sm:$0xf0]  ;;  %v8302_v61 = vld [vmem:[%s14834_s3 + $0x3c8] sm:$0xf] }
 0x2d8   :  { %5287 = vmatpush.bf16.msra.mxu1 %v7951_v3  ;;  %v5081_v63 = vpop.f32.mrf.mxu1  ;;  %v8702_v3 = vld [vmem:[%s14834_s3 + $0x6e8] sm:$0xf]  ;;  %v8671_v5 = vor.u32 %v9755_v51, %v8670_v1  ;;  %v8639_v21 = vor.u32 %v9747_v24, %v8638_v11  ;;  %v9593_v23 = vld [vmem:[%s14834_s3 + $0x1ac] sm:$0xf]  ;;  %v9651_v51 = vld [vmem:[%s14834_s3 + $0x374] sm:$0xf0] }
 0x2d9   :  { %5275 = vmatmul.bf16.vlgmr.msra.gmra.mxu0 %v12976_v16  ;;  %v5082_v42 = vadd.f32 %v5081_v63, %v5069_v22  ;;  %v8335_v22 = vor.u32 %v9671_v20, %v8334_v32  ;;  %v9663_v63 = vld [vmem:[%s14834_s3 + $0x3d4] sm:$0xf0]  ;;  %v8654_v17 = vld [vmem:[%s14834_s3 + $0x688] sm:$0xf]  ;;  %v9629_v11 = vld [vmem:[%s14834_s3 + $0x2cc] sm:$0xf] }
 0x2da   :  { %5319 = vmatpush.bf16.msrb.mxu0 %v8447_v62  ;;  %v9763_v62 = vld [vmem:[%s14834_s3 + $0x6f4] sm:$0xf0]  ;;  %5210 = vmatmul.bf16.vlgmr.msra.gmra.mxu3 %v12989_v26  ;;  %v8303_v34 = vor.u32 %v9663_v63, %v8302_v61  ;;  %v8254_v1 = vld [vmem:[%s14834_s3 + $0x368] sm:$0xf]  ;;  %v8176_v24 = vld [vmem:[%s14834_s3 + $0x2d8] sm:$0xf0] }
 0x2db   :  { %5288 = vmatmul.bf16.vlgmr.msra.gmra.mxu1 %v12978_v39  ;;  %5258 = vmatpush.bf16.msrb.mxu3 %v8763_v41  ;;  %v8703_v0 = vor.u32 %v9763_v62, %v8702_v3  ;;  %v8319_v41 = vor.u32 %v9667_v50, %v8318_v36  ;;  %v7939_v62 = vor.u32 %v9569_v49, %v7936_v40  ;;  %v8016_v50 = vld [vmem:[%s14834_s3 + $0x198] sm:$0xf0]  ;;  %v9739_v32 = vld [vmem:[%s14834_s3 + $0x634] sm:$0xf0] }
 0x2dc   :  { %5332 = vmatpush.bf16.msrb.mxu1 %v8575_v9  ;;  %v8511_v9 = vor.u32 %v9715_v37, %v8510_v59  ;;  %5300 = vmatpush.bf16.msra.mxu2 %v8079_v58  ;;  %v9601_v59 = vld [vmem:[%s14834_s3 + $0x1ec] sm:$0xf]  ;;  %v8064_v37 = vld [vmem:[%s14834_s3 + $0x1f8] sm:$0xf0]  ;;  %v8255_v49 = vor.u32 %v9651_v51, %v8254_v1  ;;  %v9647_v61 = vld [vmem:[%s14834_s3 + $0x354] sm:$0xf0] }
 0x2dd   :  { %v9597_v58 = vld [vmem:[%s14834_s3 + $0x1cc] sm:$0xf]  ;;  %v9735_v63 = vld [vmem:[%s14834_s3 + $0x614] sm:$0xf0]  ;;  %v7824_v1 = vld [vmem:[%s14834_s3 + $0x18] sm:$0xf0] }
 0x2de   :  { %5320 = vmatpush.bf16.msrb.mxu0 %v8431_v13  ;;  %v8686_v13 = vld [vmem:[%s14834_s3 + $0x6c8] sm:$0xf]  ;;  %v5070_v15 = vpop.f32.mrf.mxu0  ;;  %v9573_v51 = vld [vmem:[%s14834_s3 + $0x10c] sm:$0xf] }
 0x2df   :  { %5259 = vmatpush.bf16.msrb.mxu3 %v8747_v8  ;;  %5301 = vmatmul.bf16.vlgmr.msra.gmra.mxu2 %v12980_v12  ;;  %v8655_v8 = vor.u32 %v9751_v57, %v8654_v17  ;;  %v9655_v15 = vld [vmem:[%s14834_s3 + $0x394] sm:$0xf0] }
 0x2e0   :  { %5333 = vmatpush.bf16.msrb.mxu1 %v8559_v46  ;;  %v5094_v46 = vpop.f32.mrf.mxu2  ;;  %5345 = vmatpush.bf16.msrb.mxu2 %v8703_v0  ;;  %v9659_v0 = vld [vmem:[%s14834_s3 + $0x3b4] sm:$0xf0] }
 0x2e1   :  { %v5095_v38 = vadd.f32 %v5094_v46, %v5082_v42  ;;  %v8067_v42 = vor.u32 %v9601_v59, %v8064_v37  ;;  %v7904_v46 = vld [vmem:[%s14834_s3 + $0xb8] sm:$0xf0]  ;;  %v8238_v59 = vld [vmem:[%s14834_s3 + $0x348] sm:$0xf] }
 0x2e2   :  { %5321 = vmatpush.bf16.msrb.mxu0 %v8415_v30  ;;  %v5107_v25 = vpop.f32.mrf.mxu3  ;;  %v5083_v30 = vpop.f32.mrf.mxu1 }
 0x2e3   :  { %v13839_v44 = vadd.f32 %v5107_v25, %v5095_v38  ;;  %5260 = vmatpush.bf16.msrb.mxu3 %v8731_v27  ;;  %v8032_v38 = vld [vmem:[%s14834_s3 + $0x1b8] sm:$0xf0]  ;;  %v8270_v25 = vld [vmem:[%s14834_s3 + $0x388] sm:$0xf] }
 0x2e4   :  { %5334 = vmatpush.bf16.msrb.mxu1 %v8543_v33  ;;  %v8687_v33 = vor.u32 %v9759_v14, %v8686_v13  ;;  %v8051_v13 = vor.u32 %v9597_v58, %v8048_v4  ;;  %v9561_v14 = vld [vmem:[%s14834_s3 + $0xac] sm:$0xf]  ;;  %v8622_v27 = vld [vmem:[%s14834_s3 + $0x648] sm:$0xf]  ;;  %v8035_v30 = vor.u32 %v9593_v23, %v8032_v38  ;;  %v7984_v4 = vld [vmem:[%s14834_s3 + $0x158] sm:$0xf0] }
 0x2e5   :  { %v7907_v29 = vor.u32 %v9561_v14, %v7904_v46  ;;  %v8623_v36 = vor.u32 %v9743_v28, %v8622_v27  ;;  %v7968_v23 = vld [vmem:[%s14834_s3 + $0x138] sm:$0xf0]  ;;  %v9639_v27 = vld [vmem:[%s14834_s3 + $0x314] sm:$0xf0]  ;;  %v8830_v28 = vld [vmem:[%s14834_s3 + $0x7e8] sm:$0xf] }
 0x2e6   :  { %5322 = vmatpush.bf16.msrb.mxu0 %v8399_v55  ;;  %v8462_v55 = vld [vmem:[%s14834_s3 + $0x508] sm:$0xf]  ;;  %5346 = vmatpush.bf16.msrb.mxu2 %v8687_v33  ;;  %v9557_v33 = vld [vmem:[%s14834_s3 + $0x8c] sm:$0xf] }
 0x2e8   :  { %5335 = vmatpush.bf16.msrb.mxu1 %v8527_v6  ;;  %v8715_v6 = vor.u32 %v9764_v31, %v8712_v35  ;;  %v5096_v52 = vpop.f32.mrf.mxu2  ;;  %v7888_v31 = vld [vmem:[%s14834_s3 + $0x98] sm:$0xf0]  ;;  %v8271_v35 = vor.u32 %v9655_v15, %v8270_v25  ;;  %v8179_v25 = vor.u32 %v9629_v11, %v8176_v24  ;;  %v8206_v15 = vld [vmem:[%s14834_s3 + $0x308] sm:$0xf]  ;;  %v9721_v11 = vld [vmem:[%s14834_s3 + $0x5ac] sm:$0xf] }
 0x2e9   :  { %v7891_v20 = vor.u32 %v9557_v33, %v7888_v31  ;;  %v9633_v52 = vld [vmem:[%s14834_s3 + $0x2ec] sm:$0xf]  ;;  %v8160_v31 = vld [vmem:[%s14834_s3 + $0x2b8] sm:$0xf0] }
 0x2ea   :  { %5323 = vmatpush.bf16.msrb.mxu0 %v8383_v2  ;;  %v8463_v2 = vor.u32 %v9703_v56, %v8462_v55  ;;  %v5109_v3 = vpop.f32.mrf.mxu3  ;;  %5261 = vmatpush.bf16.msrb.mxu3 %v8715_v6  ;;  %v9553_v6 = vld [vmem:[%s14834_s3 + $0x6c] sm:$0xf]  ;;  %v7872_v56 = vld [vmem:[%s14834_s3 + $0x78] sm:$0xf0] }
 0x2eb   :  { %5347 = vmatpush.bf16.msrb.mxu2 %v8671_v5  ;;  %v8000_v5 = vld [vmem:[%s14834_s3 + $0x178] sm:$0xf0]  ;;  %v7875_v3 = vor.u32 %v9553_v6, %v7872_v56  ;;  %v9625_v33 = vld [vmem:[%s14834_s3 + $0x2ac] sm:$0xf] }
 0x2ec   :  { %5336 = vmatpush.bf16.msrb.mxu1 %v8511_v9  ;;  %v9565_v9 = vld [vmem:[%s14834_s3 + $0xcc] sm:$0xf]  ;;  %v8448_v6 = vld [vmem:[%s14834_s3 + $0x4f8] sm:$0xf0] }
 0x2ed   :  { %5262 = vmatmul.bf16.vlgmr.msrb.gmra.mxu3 %v13674_v18  ;;  %v9729_v56 = vld [vmem:[%s14834_s3 + $0x5ec] sm:$0xf] }
 0x2ee   :  { %5324 = vmatpush.bf16.msrb.mxu0 %v8367_v48  ;;  %5306 = vmatpush.bf16.msra.mxu3 %v8319_v41  ;;  %v7923_v48 = vor.u32 %v9565_v9, %v7920_v10  ;;  %v9585_v41 = vld [vmem:[%s14834_s3 + $0x16c] sm:$0xf]  ;;  %v8239_v9 = vor.u32 %v9647_v61, %v8238_v59 }
 0x2ef   :  { %5348 = vmatpush.bf16.msrb.mxu2 %v8655_v8  ;;  %v9581_v8 = vld [vmem:[%s14834_s3 + $0x14c] sm:$0xf] }
 0x2f0   :  { %5337 = vmatpush.bf16.msrb.mxu1 %v8495_v47  ;;  %v8287_v47 = vor.u32 %v9659_v0, %v8286_v60  ;;  %v8222_v60 = vld [vmem:[%s14834_s3 + $0x328] sm:$0xf]  ;;  %v9643_v0 = vld [vmem:[%s14834_s3 + $0x334] sm:$0xf0]  ;;  %v7987_v14 = vor.u32 %v9581_v8, %v7984_v4  ;;  %v9621_v59 = vld [vmem:[%s14834_s3 + $0x28c] sm:$0xf] }
 0x2f1   :  { %v8223_v46 = vor.u32 %v9643_v0, %v8222_v60  ;;  %v9689_v60 = vld [vmem:[%s14834_s3 + $0x4ac] sm:$0xf]  ;;  %v8416_v0 = vld [vmem:[%s14834_s3 + $0x4b8] sm:$0xf0] }
 0x2f2   :  { %5325 = vmatpush.bf16.msrb.mxu0 %v8351_v45  ;;  %5307 = vmatpush.bf16.msra.mxu3 %v8303_v34  ;;  %v9589_v45 = vld [vmem:[%s14834_s3 + $0x18c] sm:$0xf]  ;;  %v7856_v34 = vld [vmem:[%s14834_s3 + $0x58] sm:$0xf0] }
 0x2f3   :  { %5349 = vmatpush.bf16.msrb.mxu2 %v8639_v21  ;;  %v8019_v55 = vor.u32 %v9589_v45, %v8016_v50  ;;  %v9577_v21 = vld [vmem:[%s14834_s3 + $0x12c] sm:$0xf]  ;;  %v8207_v50 = vor.u32 %v9639_v27, %v8206_v15  ;;  %v8528_v27 = vld [vmem:[%s14834_s3 + $0x598] sm:$0xf0] }
 0x2f4   :  { %5338 = vmatpush.bf16.msrb.mxu1 %v8479_v54  ;;  %v8606_v54 = vld [vmem:[%s14834_s3 + $0x628] sm:$0xf]  ;;  %v7971_v45 = vor.u32 %v9577_v21, %v7968_v23 }
 0x2f5   :  { %v8607_v40 = vor.u32 %v9739_v32, %v8606_v54  ;;  %v7952_v54 = vld [vmem:[%s14834_s3 + $0x118] sm:$0xf0] }
 0x2f6   :  { %5326 = vmatpush.bf16.msrb.mxu0 %v8335_v22  ;;  %5308 = vmatpush.bf16.msra.mxu3 %v8287_v47  ;;  %v5120_v37 = vpop.f32.mrf.mxu0  ;;  %v8590_v22 = vld [vmem:[%s14834_s3 + $0x608] sm:$0xf]  ;;  %v7840_v47 = vld [vmem:[%s14834_s3 + $0x38] sm:$0xf0]  ;;  %v7955_v61 = vor.u32 %v9573_v51, %v7952_v54 }
 0x2f7   :  { %5350 = vmatpush.bf16.msrb.mxu2 %v8623_v36  ;;  %v5121_v17 = vadd.f32 %v5120_v37, %v13839_v44  ;;  %v8591_v10 = vor.u32 %v9735_v63, %v8590_v22  ;;  %v9549_v44 = vld [vmem:[%s14834_s3 + $0x4c] sm:$0xf]  ;;  %v8144_v37 = vld [vmem:[%s14834_s3 + $0x298] sm:$0xf0] }
 0x2f8   :  { %5339 = vmatpush.bf16.msrb.mxu1 %v8463_v2  ;;  %v5133_v57 = vpop.f32.mrf.mxu1  ;;  %v8192_v2 = vld [vmem:[%s14834_s3 + $0x2f8] sm:$0xf0]  ;;  %v9541_v36 = vld [vmem:[%s14834_s3 + $0xc] sm:$0xf] }
 0x2f9   :  { %5327 = vmatmul.bf16.vlgmr.msrb.gmra.mxu0 %v13157_v19  ;;  %v8195_v58 = vor.u32 %v9633_v52, %v8192_v2  ;;  %v8432_v52 = vld [vmem:[%s14834_s3 + $0x4d8] sm:$0xf0]  ;;  %v9725_v2 = vld [vmem:[%s14834_s3 + $0x5cc] sm:$0xf] }
 0x2fa   :  { %5371 = vmatpush.bf16.msra.mxu0 %v7939_v62  ;;  %5309 = vmatpush.bf16.msra.mxu3 %v8271_v35  ;;  %v8003_v62 = vor.u32 %v9585_v41, %v8000_v5  ;;  %v9791_v41 = vld [vmem:[%s14834_s3 + $0x7d4] sm:$0xf0]  ;;  %v7827_v5 = vor.u32 %v9541_v36, %v7824_v1  ;;  %v9713_v1 = vld [vmem:[%s14834_s3 + $0x56c] sm:$0xf] }
 0x2fb   :  { %5340 = vmatmul.bf16.vlgmr.msrb.gmra.mxu1 %v13168_v7  ;;  %5351 = vmatpush.bf16.msrb.mxu2 %v8607_v40  ;;  %v8814_v40 = vld [vmem:[%s14834_s3 + $0x7c8] sm:$0xf] }
 0x2fc   :  { %5384 = vmatpush.bf16.msra.mxu1 %v8067_v42  ;;  %v13993_v42 = vadd.f32 %v5133_v57, %v5121_v17  ;;  %v8815_v17 = vor.u32 %v9791_v41, %v8814_v40  ;;  %v9693_v57 = vld [vmem:[%s14834_s3 + $0x4cc] sm:$0xf]  ;;  %v8080_v40 = vld [vmem:[%s14834_s3 + $0x218] sm:$0xf0] }
 0x2fd   :  { %v8435_v8 = vor.u32 %v9693_v57, %v8432_v52  ;;  %v9709_v52 = vld [vmem:[%s14834_s3 + $0x54c] sm:$0xf] }
 0x2fe   :  { %5372 = vmatpush.bf16.msra.mxu0 %v7923_v48  ;;  %5310 = vmatpush.bf16.msra.mxu3 %v8255_v49  ;;  %v7859_v48 = vor.u32 %v9549_v44, %v7856_v34  ;;  %v5122_v38 = vpop.f32.mrf.mxu0  ;;  %v8576_v49 = vld [vmem:[%s14834_s3 + $0x5f8] sm:$0xf0]  ;;  %v9617_v44 = vld [vmem:[%s14834_s3 + $0x26c] sm:$0xf] }
 0x2ff   :  { %5352 = vmatpush.bf16.msrb.mxu2 %v8591_v10  ;;  %v8579_v63 = vor.u32 %v9729_v56, %v8576_v49  ;;  %v9787_v10 = vld [vmem:[%s14834_s3 + $0x7b4] sm:$0xf0]  ;;  %v8128_v34 = vld [vmem:[%s14834_s3 + $0x278] sm:$0xf0]  ;;  %v9685_v38 = vld [vmem:[%s14834_s3 + $0x48c] sm:$0xf] }
 0x300   :  { %5385 = vmatpush.bf16.msra.mxu1 %v8051_v13  ;;  %v9545_v13 = vld [vmem:[%s14834_s3 + $0x2c] sm:$0xf]  ;;  %v8131_v24 = vor.u32 %v9617_v44, %v8128_v34  ;;  %v8688_v34 = vld [vmem:[%s14834_s3 + $0x6d8] sm:$0xf0] }
 0x301   :  { %v7843_v35 = vor.u32 %v9545_v13, %v7840_v47  ;;  %v8782_v13 = vld [vmem:[%s14834_s3 + $0x788] sm:$0xf]  ;;  %v8419_v47 = vor.u32 %v9689_v60, %v8416_v0  ;;  %v9605_v49 = vld [vmem:[%s14834_s3 + $0x20c] sm:$0xf] }
 0x302   :  { %5373 = vmatpush.bf16.msra.mxu0 %v7907_v29  ;;  %5311 = vmatpush.bf16.msra.mxu3 %v8239_v9  ;;  %v5135_v29 = vpop.f32.mrf.mxu1  ;;  %v8798_v9 = vld [vmem:[%s14834_s3 + $0x7a8] sm:$0xf]  ;;  %v8083_v57 = vor.u32 %v9605_v49, %v8080_v40  ;;  %v9757_v44 = vld [vmem:[%s14834_s3 + $0x6cc] sm:$0xf]  ;;  %v8640_v40 = vld [vmem:[%s14834_s3 + $0x678] sm:$0xf0] }
 0x303   :  { %5397 = vmatpush.bf16.msra.mxu2 %v8195_v58  ;;  %v8799_v4 = vor.u32 %v9787_v10, %v8798_v9  ;;  %v9779_v29 = vld [vmem:[%s14834_s3 + $0x774] sm:$0xf0]  ;;  %v9745_v49 = vld [vmem:[%s14834_s3 + $0x66c] sm:$0xf] }
 0x304   :  { %5386 = vmatpush.bf16.msra.mxu1 %v8035_v30  ;;  %v9795_v30 = vld [vmem:[%s14834_s3 + $0x7f4] sm:$0xf0]  ;;  %5353 = vmatmul.bf16.vlgmr.msrb.gmra.mxu2 %v13440_v53 }
 0x305   :  { %v8831_v32 = vor.u32 %v9795_v30, %v8830_v28  ;;  %v8766_v28 = vld [vmem:[%s14834_s3 + $0x768] sm:$0xf]  ;;  %v3772_v30 = vperm.slane %v13729_v43, 1  ;;  %v8384_v43 = vld [vmem:[%s14834_s3 + $0x478] sm:$0xf0] }
 0x306   :  { %5374 = vmatpush.bf16.msra.mxu0 %v7891_v20  ;;  %5312 = vmatpush.bf16.msra.mxu3 %v8223_v46  ;;  %v8163_v20 = vor.u32 %v9625_v33, %v8160_v31  ;;  %v9613_v46 = vld [vmem:[%s14834_s3 + $0x24c] sm:$0xf]  ;;  %v8096_v31 = vld [vmem:[%s14834_s3 + $0x238] sm:$0xf0]  ;;  %v9771_v9 = vld [vmem:[%s14834_s3 + $0x734] sm:$0xf0] }
 0x307   :  { %5398 = vmatpush.bf16.msra.mxu2 %v8179_v25  ;;  %v9717_v25 = vld [vmem:[%s14834_s3 + $0x58c] sm:$0xf] }
 0x308   :  { %5387 = vmatpush.bf16.msra.mxu1 %v8019_v55  ;;  %v9697_v55 = vld [vmem:[%s14834_s3 + $0x4ec] sm:$0xf]  ;;  %v8531_v36 = vor.u32 %v9717_v25, %v8528_v27 }
 0x309   :  { %v8451_v22 = vor.u32 %v9697_v55, %v8448_v6  ;;  %v9609_v33 = vld [vmem:[%s14834_s3 + $0x22c] sm:$0xf]  ;;  %v9775_v55 = vld [vmem:[%s14834_s3 + $0x754] sm:$0xf0] }
 0x30a   :  { %5375 = vmatpush.bf16.msra.mxu0 %v7875_v3  ;;  %5313 = vmatpush.bf16.msra.mxu3 %v8207_v50  ;;  %v8147_v3 = vor.u32 %v9621_v59, %v8144_v37  ;;  %v9681_v50 = vld [vmem:[%s14834_s3 + $0x46c] sm:$0xf]  ;;  %v8099_v54 = vor.u32 %v9609_v33, %v8096_v31  ;;  %v8704_v59 = vld [vmem:[%s14834_s3 + $0x6f8] sm:$0xf0]  ;;  %v8894_v31 = vld [vmem:[%s14836_s5 + $0x70] sm:$0xf] }
 0x30b   :  { %5399 = vmatpush.bf16.msra.mxu2 %v8163_v20  ;;  %v8750_v20 = vld [vmem:[%s14834_s3 + $0x748] sm:$0xf]  ;;  %v8387_v41 = vor.u32 %v9681_v50, %v8384_v43  ;;  %v9669_v25 = vld [vmem:[%s14834_s3 + $0x40c] sm:$0xf]  ;;  %v8656_v43 = vld [vmem:[%s14834_s3 + $0x698] sm:$0xf0] }
 0x30c   :  { %5388 = vmatpush.bf16.msra.mxu1 %v8003_v62  ;;  %v8560_v62 = vld [vmem:[%s14834_s3 + $0x5d8] sm:$0xf0]  ;;  %v9661_v33 = vld [vmem:[%s14834_s3 + $0x3cc] sm:$0xf] }
 0x30d   :  { %5314 = vmatmul.bf16.vlgmr.msra.gmra.mxu3 %v12989_v26  ;;  %v8563_v58 = vor.u32 %v9725_v2, %v8560_v62  ;;  %v8496_v2 = vld [vmem:[%s14834_s3 + $0x558] sm:$0xf0]  ;;  %v8734_v62 = vld [vmem:[%s14834_s3 + $0x728] sm:$0xf]  ;;  %v9749_v50 = vld [vmem:[%s14834_s3 + $0x68c] sm:$0xf] }
 0x30e   :  { %5376 = vmatpush.bf16.msra.mxu0 %v7859_v48  ;;  %5358 = vmatpush.bf16.msrb.mxu3 %v8831_v32  ;;  %v8544_v48 = vld [vmem:[%s14834_s3 + $0x5b8] sm:$0xf0]  ;;  %v8735_v0 = vor.u32 %v9771_v9, %v8734_v62 }
 0x30f   :  { %5400 = vmatpush.bf16.msra.mxu2 %v8147_v3  ;;  %v8547_v21 = vor.u32 %v9721_v11, %v8544_v48  ;;  %v8512_v32 = vld [vmem:[%s14834_s3 + $0x578] sm:$0xf0]  ;;  %v9705_v11 = vld [vmem:[%s14834_s3 + $0x52c] sm:$0xf] }
 0x310   :  { %5389 = vmatpush.bf16.msra.mxu1 %v7987_v14  ;;  %v9783_v14 = vld [vmem:[%s14834_s3 + $0x794] sm:$0xf0]  ;;  %v8624_v62 = vld [vmem:[%s14834_s3 + $0x658] sm:$0xf0] }
 0x311   :  { %v8783_v23 = vor.u32 %v9783_v14, %v8782_v13  ;;  %v8691_v13 = vor.u32 %v9757_v44, %v8688_v34  ;;  %v8718_v14 = vld [vmem:[%s14834_s3 + $0x708] sm:$0xf] }
 0x312   :  { %5377 = vmatpush.bf16.msra.mxu0 %v7843_v35  ;;  %5359 = vmatpush.bf16.msrb.mxu3 %v8815_v17  ;;  %v8368_v17 = vld [vmem:[%s14834_s3 + $0x458] sm:$0xf0] }
 0x313   :  { %5401 = vmatpush.bf16.msra.mxu2 %v8131_v24  ;;  %v8480_v24 = vld [vmem:[%s14834_s3 + $0x538] sm:$0xf0] }
 0x314   :  { %5390 = vmatpush.bf16.msra.mxu1 %v7971_v45  ;;  %v8767_v45 = vor.u32 %v9779_v29, %v8766_v28  ;;  %v9701_v28 = vld [vmem:[%s14834_s3 + $0x50c] sm:$0xf] }
 0x316   :  { %5378 = vmatpush.bf16.msra.mxu0 %v7827_v5  ;;  %5360 = vmatpush.bf16.msrb.mxu3 %v8799_v4  ;;  %v5172_v51 = vpop.f32.mrf.mxu0  ;;  %v9761_v5 = vld [vmem:[%s14834_s3 + $0x6ec] sm:$0xf]  ;;  %v8352_v4 = vld [vmem:[%s14834_s3 + $0x438] sm:$0xf0] }
 0x317   :  { %v5173_v6 = vadd.f32 %v5172_v51, %v3772_v30  ;;  %v8707_v3 = vor.u32 %v9761_v5, %v8704_v59  ;;  %v9653_v59 = vld [vmem:[%s14834_s3 + $0x38c] sm:$0xf] }
 0x318   :  { %5391 = vmatpush.bf16.msra.mxu1 %v7955_v61  ;;  %v5185_v56 = vpop.f32.mrf.mxu1  ;;  %v8515_v61 = vor.u32 %v9713_v1, %v8512_v32  ;;  %v8659_v32 = vor.u32 %v9749_v50, %v8656_v43  ;;  %v9641_v50 = vld [vmem:[%s14834_s3 + $0x32c] sm:$0xf]  ;;  %v8224_v43 = vld [vmem:[%s14834_s3 + $0x338] sm:$0xf0] }
 0x319   :  { %5379 = vmatmul.bf16.vlgmr.msra.gmra.mxu0 %v12976_v16  ;;  %v8112_v16 = vld [vmem:[%s14834_s3 + $0x258] sm:$0xf0]  ;;  %v14192_v37 = vadd.f32 %v5185_v56, %v5173_v6  ;;  %v9809_v6 = vld [vmem:[%s14836_s5 + $0x64] sm:$0xf0] }
 0x31a   :  { %5423 = vmatpush.bf16.msrb.mxu0 %v8451_v22  ;;  %v8115_v15 = vor.u32 %v9613_v46, %v8112_v16  ;;  %5361 = vmatpush.bf16.msrb.mxu3 %v8783_v23  ;;  %v8751_v22 = vor.u32 %v9775_v55, %v8750_v20  ;;  %v9767_v46 = vld [vmem:[%s14834_s3 + $0x714] sm:$0xf0]  ;;  %v9665_v16 = vld [vmem:[%s14834_s3 + $0x3ec] sm:$0xf]  ;;  %v8886_v55 = vld [vmem:[%s14836_s5 + $0x60] sm:$0xf] }
 0x31b   :  { %5392 = vmatmul.bf16.vlgmr.msra.gmra.mxu1 %v12978_v39  ;;  %v8400_v39 = vld [vmem:[%s14834_s3 + $0x498] sm:$0xf0]  ;;  %v9753_v23 = vld [vmem:[%s14834_s3 + $0x6ac] sm:$0xf]  ;;  %v8719_v27 = vor.u32 %v9767_v46, %v8718_v14  ;;  %v8887_v5 = vor.u32 %v9809_v6, %v8886_v55  ;;  %v8862_v46 = vld [vmem:[%s14836_s5 + $0x30] sm:$0xf]  ;;  %v8227_v55 = vor.u32 %v9641_v50, %v8224_v43 }
 0x31c   :  { %5436 = vmatpush.bf16.msrb.mxu1 %v8579_v63  ;;  %v8403_v35 = vor.u32 %v9685_v38, %v8400_v39  ;;  %5402 = vmatpush.bf16.msra.mxu2 %v8115_v15  ;;  %v9677_v63 = vld [vmem:[%s14834_s3 + $0x44c] sm:$0xf]  ;;  %v8672_v38 = vld [vmem:[%s14834_s3 + $0x6b8] sm:$0xf0]  ;;  %v8483_v39 = vor.u32 %v9705_v11, %v8480_v24  ;;  %v9799_v6 = vld [vmem:[%s14836_s5 + $0x14] sm:$0xf0] }
 0x31d   :  { %v8371_v10 = vor.u32 %v9677_v63, %v8368_v17  ;;  %v8336_v15 = vld [vmem:[%s14834_s3 + $0x418] sm:$0xf0]  ;;  %v8675_v30 = vor.u32 %v9753_v23, %v8672_v38  ;;  %v9657_v20 = vld [vmem:[%s14834_s3 + $0x3ac] sm:$0xf]  ;;  %v8643_v63 = vor.u32 %v9745_v49, %v8640_v40  ;;  %v9807_v17 = vld [vmem:[%s14836_s5 + $0x54] sm:$0xf0] }
 0x31e   :  { %5424 = vmatpush.bf16.msrb.mxu0 %v8435_v8  ;;  %5362 = vmatpush.bf16.msrb.mxu3 %v8767_v45  ;;  %v8499_v8 = vor.u32 %v9709_v52, %v8496_v2  ;;  %v5174_v60 = vpop.f32.mrf.mxu0  ;;  %v8304_v45 = vld [vmem:[%s14834_s3 + $0x3d8] sm:$0xf0]  ;;  %v9827_v52 = vld [vmem:[%s14836_s5 + $0xf4] sm:$0xf0]  ;;  %v9645_v14 = vld [vmem:[%s14834_s3 + $0x34c] sm:$0xf] }
 0x31f   :  { %v8288_v56 = vld [vmem:[%s14834_s3 + $0x3b8] sm:$0xf0]  ;;  %v9803_v23 = vld [vmem:[%s14836_s5 + $0x34] sm:$0xf0]  ;;  %v8942_v38 = vld [vmem:[%s14836_s5 + $0xd0] sm:$0xf] }
 0x320   :  { %5437 = vmatpush.bf16.msrb.mxu1 %v8563_v58  ;;  %5403 = vmatpush.bf16.msra.mxu2 %v8099_v54  ;;  %v9673_v58 = vld [vmem:[%s14834_s3 + $0x42c] sm:$0xf]  ;;  %v5187_v48 = vpop.f32.mrf.mxu1  ;;  %v8307_v54 = vor.u32 %v9661_v33, %v8304_v45  ;;  %v8272_v2 = vld [vmem:[%s14834_s3 + $0x398] sm:$0xf0]  ;;  %v9821_v45 = vld [vmem:[%s14836_s5 + $0xc4] sm:$0xf0] }
 0x321   :  { %v8275_v44 = vor.u32 %v9653_v59, %v8272_v2  ;;  %v8256_v60 = vld [vmem:[%s14834_s3 + $0x378] sm:$0xf0]  ;;  %v9819_v49 = vld [vmem:[%s14836_s5 + $0xb4] sm:$0xf0]  ;;  %v9797_v2 = vld [vmem:[%s14836_s5 + $0x4] sm:$0xf0] }
 0x322   :  { %5425 = vmatpush.bf16.msrb.mxu0 %v8419_v47  ;;  %5363 = vmatpush.bf16.msrb.mxu3 %v8751_v22  ;;  %v8355_v47 = vor.u32 %v9673_v58, %v8352_v4  ;;  %v8291_v22 = vor.u32 %v9657_v20, %v8288_v56  ;;  %v8950_v58 = vld [vmem:[%s14836_s5 + $0xe0] sm:$0xf]  ;;  %v9825_v4 = vld [vmem:[%s14836_s5 + $0xe4] sm:$0xf0]  ;;  %v8608_v11 = vld [vmem:[%s14834_s3 + $0x638] sm:$0xf0] }
 0x323   :  { %v8951_v24 = vor.u32 %v9825_v4, %v8950_v58  ;;  %v8926_v56 = vld [vmem:[%s14836_s5 + $0xb0] sm:$0xf]  ;;  %v8208_v59 = vld [vmem:[%s14834_s3 + $0x318] sm:$0xf0]  ;;  %v8952_v50 = vld [vmem:[%s14836_s5 + $0xe8] sm:$0xf0] }
 0x324   :  { %5438 = vmatpush.bf16.msrb.mxu1 %v8547_v21  ;;  %5404 = vmatpush.bf16.msra.mxu2 %v8083_v57  ;;  %v8320_v21 = vld [vmem:[%s14834_s3 + $0x3f8] sm:$0xf0]  ;;  %v8958_v57 = vld [vmem:[%s14836_s5 + $0xf0] sm:$0xf]  ;;  %v14507_v43 = vld [vmem:[%s14835_s4] sm:$0xf] }
 0x325   :  { %v8323_v29 = vor.u32 %v9665_v16, %v8320_v21  ;;  %v8959_v9 = vor.u32 %v9827_v52, %v8958_v57  ;;  %v8838_v57 = vld [vmem:[%s14836_s5] sm:$0xf]  ;;  %v8910_v4 = vld [vmem:[%s14836_s5 + $0x90] sm:$0xf] }
 0x326   :  { %5426 = vmatpush.bf16.msrb.mxu0 %v8403_v35  ;;  %5364 = vmatpush.bf16.msrb.mxu3 %v8735_v0  ;;  %v9811_v35 = vld [vmem:[%s14836_s5 + $0x74] sm:$0xf0]  ;;  %v9737_v0 = vld [vmem:[%s14834_s3 + $0x62c] sm:$0xf] }
 0x327   :  { %5405 = vmatmul.bf16.vlgmr.msra.gmra.mxu2 %v12980_v12  ;;  %v8464_v12 = vld [vmem:[%s14834_s3 + $0x518] sm:$0xf0]  ;;  %v8895_v51 = vor.u32 %v9811_v35, %v8894_v31  ;;  %v8611_v21 = vor.u32 %v9737_v0, %v8608_v11  ;;  %v9801_v35 = vld [vmem:[%s14836_s5 + $0x24] sm:$0xf0]  ;;  %v9808_v11 = vld [vmem:[%s14836_s5 + $0x64] sm:$0xf] }
 0x328   :  { %5439 = vmatpush.bf16.msrb.mxu1 %v8531_v36  ;;  %5449 = vmatpush.bf16.msrb.mxu2 %v8707_v3  ;;  %v8339_v36 = vor.u32 %v9669_v25, %v8336_v15  ;;  %v8467_v1 = vor.u32 %v9701_v28, %v8464_v12  ;;  %v9741_v3 = vld [vmem:[%s14834_s3 + $0x64c] sm:$0xf]  ;;  %v8240_v15 = vld [vmem:[%s14834_s3 + $0x358] sm:$0xf0] }
 0x329   :  { %v8627_v34 = vor.u32 %v9741_v3, %v8624_v62  ;;  %v8592_v28 = vld [vmem:[%s14834_s3 + $0x618] sm:$0xf0]  ;;  %v8243_v33 = vor.u32 %v9645_v14, %v8240_v15  ;;  %v8918_v3 = vld [vmem:[%s14836_s5 + $0xa0] sm:$0xf]  ;;  %v9826_v15 = vld [vmem:[%s14836_s5 + $0xf4] sm:$0xf] }
 0x32a   :  { %5427 = vmatpush.bf16.msrb.mxu0 %v8387_v41  ;;  %5365 = vmatpush.bf16.msrb.mxu3 %v8719_v27  ;;  %v14298_v41 = vpop.f32.mrf.mxu2  ;;  %v9733_v27 = vld [vmem:[%s14834_s3 + $0x60c] sm:$0xf]  ;;  %v8800_v14 = vld [vmem:[%s14834_s3 + $0x7b8] sm:$0xf0] }
 0x32b   :  { %v8595_v31 = vor.u32 %v9733_v27, %v8592_v28  ;;  %v8960_v27 = vld [vmem:[%s14836_s5 + $0xf8] sm:$0xf0]  ;;  %v9781_v28 = vld [vmem:[%s14834_s3 + $0x78c] sm:$0xf] }
 0x32c   :  { %5440 = vmatpush.bf16.msrb.mxu1 %v8515_v61  ;;  %5450 = vmatpush.bf16.msrb.mxu2 %v8691_v13  ;;  %v8878_v61 = vld [vmem:[%s14836_s5 + $0x50] sm:$0xf] }
 0x32d   :  { %5366 = vmatmul.bf16.vlgmr.msrb.gmra.mxu3 %v13674_v18 }
 0x32e   :  { %5428 = vmatpush.bf16.msrb.mxu0 %v8371_v10  ;;  %5410 = vmatpush.bf16.msra.mxu3 %v8323_v29  ;;  %v8879_v10 = vor.u32 %v9807_v17, %v8878_v61  ;;  %v8863_v29 = vor.u32 %v9803_v23, %v8862_v46  ;;  %v8927_v61 = vor.u32 %v9819_v49, %v8926_v56  ;;  %v9813_v23 = vld [vmem:[%s14836_s5 + $0x84] sm:$0xf0] }
 0x32f   :  { %v5147_v56 = vadd.f32 %v14298_v41, %v13993_v42  ;;  %v9773_v42 = vld [vmem:[%s14834_s3 + $0x74c] sm:$0xf]  ;;  %v8752_v41 = vld [vmem:[%s14834_s3 + $0x758] sm:$0xf0] }
 0x330   :  { %5441 = vmatpush.bf16.msrb.mxu1 %v8499_v8  ;;  %5451 = vmatpush.bf16.msrb.mxu2 %v8675_v30  ;;  %v9805_v8 = vld [vmem:[%s14836_s5 + $0x44] sm:$0xf0]  ;;  %v8854_v30 = vld [vmem:[%s14836_s5 + $0x20] sm:$0xf] }
 0x332   :  { %5429 = vmatpush.bf16.msrb.mxu0 %v8355_v47  ;;  %5411 = vmatpush.bf16.msra.mxu3 %v8307_v54  ;;  %v5148_v48 = vpop.f32.mrf.mxu2  ;;  %v8855_v54 = vor.u32 %v9801_v35, %v8854_v30 }
 0x334   :  { %5442 = vmatpush.bf16.msrb.mxu1 %v8483_v39  ;;  %5452 = vmatpush.bf16.msrb.mxu2 %v8659_v32  ;;  %v9823_v39 = vld [vmem:[%s14836_s5 + $0xd4] sm:$0xf0]  ;;  %v8846_v32 = vld [vmem:[%s14836_s5 + $0x10] sm:$0xf] }
 0x335   :  { %v8943_v12 = vor.u32 %v9823_v39, %v8942_v38  ;;  %v8847_v17 = vor.u32 %v9799_v6, %v8846_v32  ;;  %v8768_v32 = vld [vmem:[%s14834_s3 + $0x778] sm:$0xf0]  ;;  %v9802_v6 = vld [vmem:[%s14836_s5 + $0x34] sm:$0xf] }
 0x336   :  { %5430 = vmatpush.bf16.msrb.mxu0 %v8339_v36  ;;  %5412 = vmatpush.bf16.msra.mxu3 %v8291_v22  ;;  %v14356_v16 = vpop.f32.mrf.mxu0  ;;  %v8934_v36 = vld [vmem:[%s14836_s5 + $0xc0] sm:$0xf]  ;;  %v9793_v22 = vld [vmem:[%s14834_s3 + $0x7ec] sm:$0xf] }
 0x338   :  { %5443 = vmatpush.bf16.msrb.mxu1 %v8467_v1  ;;  %5453 = vmatpush.bf16.msrb.mxu2 %v8643_v63  ;;  %v14367_v25 = vpop.f32.mrf.mxu1  ;;  %v8935_v1 = vor.u32 %v9821_v45, %v8934_v36  ;;  %v8832_v63 = vld [vmem:[%s14834_s3 + $0x7f8] sm:$0xf0]  ;;  %v8872_v36 = vld [vmem:[%s14836_s5 + $0x48] sm:$0xf0]  ;;  %v9824_v45 = vld [vmem:[%s14836_s5 + $0xe4] sm:$0xf] }
 0x339   :  { %5431 = vmatmul.bf16.vlgmr.msrb.gmra.mxu0 %v13157_v19  ;;  %v9649_v19 = vld [vmem:[%s14834_s3 + $0x36c] sm:$0xf]  ;;  %v8835_v62 = vor.u32 %v9793_v22, %v8832_v63 }
 0x33a   :  { %5873 = vmatpush.bf16.msra.mxu0 %v8895_v51  ;;  %5413 = vmatpush.bf16.msra.mxu3 %v8275_v44  ;;  %v8259_v47 = vor.u32 %v9649_v19, %v8256_v60  ;;  %v14396_v51 = vpop.f32.mrf.mxu2  ;;  %v8816_v44 = vld [vmem:[%s14834_s3 + $0x7d8] sm:$0xf0]  ;;  %v9815_v60 = vld [vmem:[%s14836_s5 + $0x94] sm:$0xf0] }
 0x33b   :  { %5444 = vmatmul.bf16.vlgmr.msrb.gmra.mxu1 %v13168_v7  ;;  %v8870_v7 = vld [vmem:[%s14836_s5 + $0x40] sm:$0xf]  ;;  %v8911_v48 = vor.u32 %v9815_v60, %v8910_v4 }
 0x33c   :  { %5886 = vmatpush.bf16.msra.mxu1 %v8959_v9  ;;  %v8871_v13 = vor.u32 %v9805_v8, %v8870_v7  ;;  %5454 = vmatpush.bf16.msrb.mxu2 %v8627_v34  ;;  %v9810_v9 = vld [vmem:[%s14836_s5 + $0x74] sm:$0xf]  ;;  %v9789_v7 = vld [vmem:[%s14834_s3 + $0x7cc] sm:$0xf]  ;;  %v8839_v8 = vor.u32 %v9797_v2, %v8838_v57 }
 0x33d   :  { %v8819_v0 = vor.u32 %v9789_v7, %v8816_v44  ;;  %v9820_v7 = vld [vmem:[%s14836_s5 + $0xc4] sm:$0xf]  ;;  %v8936_v44 = vld [vmem:[%s14836_s5 + $0xc8] sm:$0xf0] }
 0x33e   :  { %5874 = vmatpush.bf16.msra.mxu0 %v8887_v5  ;;  %5414 = vmatpush.bf16.msra.mxu3 %v8259_v47  ;;  %v5226_v20 = vpop.f32.mrf.mxu0  ;;  %v9637_v5 = vld [vmem:[%s14834_s3 + $0x30c] sm:$0xf]  ;;  %v9806_v47 = vld [vmem:[%s14836_s5 + $0x54] sm:$0xf] }
 0x33f   :  { %v8211_v52 = vor.u32 %v9637_v5, %v8208_v59  ;;  %v8955_v20 = vor.u32 %v9824_v45, %v8952_v50  ;;  %v8864_v5 = vld [vmem:[%s14836_s5 + $0x38] sm:$0xf0]  ;;  %v9822_v59 = vld [vmem:[%s14836_s5 + $0xd4] sm:$0xf]  ;;  %v5199_v50 = vadd.f32 %v14396_v51, %v14192_v37 }
 0x340   :  { %5887 = vmatpush.bf16.msra.mxu1 %v8951_v24  ;;  %5455 = vmatpush.bf16.msrb.mxu2 %v8611_v21  ;;  %v5239_v40 = vpop.f32.mrf.mxu1  ;;  %v8888_v24 = vld [vmem:[%s14836_s5 + $0x68] sm:$0xf0]  ;;  %v8902_v21 = vld [vmem:[%s14836_s5 + $0x80] sm:$0xf] }
 0x341   :  { %v8891_v46 = vor.u32 %v9808_v11, %v8888_v24  ;;  %v8903_v39 = vor.u32 %v9813_v23, %v8902_v21  ;;  %v9765_v21 = vld [vmem:[%s14834_s3 + $0x70c] sm:$0xf]  ;;  %v8720_v23 = vld [vmem:[%s14834_s3 + $0x718] sm:$0xf0] }
 0x342   :  { %5875 = vmatpush.bf16.msra.mxu0 %v8879_v10  ;;  %5415 = vmatpush.bf16.msra.mxu3 %v8243_v33  ;;  %v8896_v10 = vld [vmem:[%s14836_s5 + $0x78] sm:$0xf0]  ;;  %v5200_v34 = vpop.f32.mrf.mxu2 }
 0x343   :  { %v8899_v58 = vor.u32 %v9810_v9, %v8896_v10  ;;  %v8856_v9 = vld [vmem:[%s14836_s5 + $0x28] sm:$0xf0] }
 0x344   :  { %5888 = vmatpush.bf16.msra.mxu1 %v8943_v12  ;;  %5456 = vmatpush.bf16.msrb.mxu2 %v8595_v31  ;;  %v8784_v12 = vld [vmem:[%s14834_s3 + $0x798] sm:$0xf0]  ;;  %v9804_v31 = vld [vmem:[%s14836_s5 + $0x44] sm:$0xf]  ;;  %v9769_v34 = vld [vmem:[%s14834_s3 + $0x72c] sm:$0xf] }
 0x345   :  { %v8787_v35 = vor.u32 %v9781_v28, %v8784_v12  ;;  %v9796_v28 = vld [vmem:[%s14836_s5 + $0x4] sm:$0xf]  ;;  %v8840_v12 = vld [vmem:[%s14836_s5 + $0x8] sm:$0xf0] }
 0x346   :  { %5876 = vmatpush.bf16.msra.mxu0 %v8871_v13  ;;  %5416 = vmatpush.bf16.msra.mxu3 %v8227_v55  ;;  %v9785_v13 = vld [vmem:[%s14834_s3 + $0x7ac] sm:$0xf]  ;;  %v8875_v55 = vor.u32 %v9804_v31, %v8872_v36  ;;  %v8912_v31 = vld [vmem:[%s14836_s5 + $0x98] sm:$0xf0] }
 0x347   :  { %5457 = vmatmul.bf16.vlgmr.msrb.gmra.mxu2 %v13440_v53  ;;  %v9817_v53 = vld [vmem:[%s14836_s5 + $0xa4] sm:$0xf0]  ;;  %v8803_v38 = vor.u32 %v9785_v13, %v8800_v14  ;;  %v9818_v13 = vld [vmem:[%s14836_s5 + $0xb4] sm:$0xf]  ;;  %v8928_v14 = vld [vmem:[%s14836_s5 + $0xb8] sm:$0xf0] }
 0x348   :  { %5889 = vmatpush.bf16.msra.mxu1 %v8935_v1  ;;  %v8919_v19 = vor.u32 %v9817_v53, %v8918_v3  ;;  %v3773_v1 = vperm.slane %v14507_v43, 2  ;;  %v8867_v53 = vor.u32 %v9802_v6, %v8864_v5  ;;  %v9014_v6 = vld [vmem:[%s14836_s5 + $0x160] sm:$0xf] }
 0x34a   :  { %5877 = vmatpush.bf16.msra.mxu0 %v8863_v29  ;;  %5417 = vmatpush.bf16.msra.mxu3 %v8211_v52  ;;  %v8963_v29 = vor.u32 %v9826_v15, %v8960_v27  ;;  %v14490_v30 = vpop.f32.mrf.mxu2  ;;  %v8723_v27 = vor.u32 %v9765_v21, %v8720_v23  ;;  %v9840_v21 = vld [vmem:[%s14836_s5 + $0x164] sm:$0xf]  ;;  %v9016_v23 = vld [vmem:[%s14836_s5 + $0x168] sm:$0xf0] }
 0x34c   :  { %5890 = vmatpush.bf16.msra.mxu1 %v8927_v61  ;;  %v8944_v61 = vld [vmem:[%s14836_s5 + $0xd8] sm:$0xf0] }
 0x34d   :  { %5418 = vmatmul.bf16.vlgmr.msra.gmra.mxu3 %v12989_v26  ;;  %v8880_v26 = vld [vmem:[%s14836_s5 + $0x58] sm:$0xf0]  ;;  %v8947_v57 = vor.u32 %v9822_v59, %v8944_v61  ;;  %v9839_v61 = vld [vmem:[%s14836_s5 + $0x154] sm:$0xf0] }
 0x34e   :  { %5878 = vmatpush.bf16.msra.mxu0 %v8855_v54  ;;  %5462 = vmatpush.bf16.msrb.mxu3 %v8835_v62  ;;  %v8883_v33 = vor.u32 %v9806_v47, %v8880_v26  ;;  %v9777_v54 = vld [vmem:[%s14834_s3 + $0x76c] sm:$0xf]  ;;  %v9800_v62 = vld [vmem:[%s14836_s5 + $0x24] sm:$0xf] }
 0x34f   :  { %v8771_v40 = vor.u32 %v9777_v54, %v8768_v32  ;;  %v8859_v60 = vor.u32 %v9800_v62, %v8856_v9  ;;  %v9816_v26 = vld [vmem:[%s14836_s5 + $0xa4] sm:$0xf]  ;;  %v9022_v54 = vld [vmem:[%s14836_s5 + $0x170] sm:$0xf]  ;;  %v9843_v32 = vld [vmem:[%s14836_s5 + $0x174] sm:$0xf0] }
 0x350   :  { %5891 = vmatpush.bf16.msra.mxu1 %v8919_v19  ;;  %v8755_v19 = vor.u32 %v9773_v42, %v8752_v41  ;;  %v9837_v41 = vld [vmem:[%s14836_s5 + $0x144] sm:$0xf0]  ;;  %v8990_v9 = vld [vmem:[%s14836_s5 + $0x130] sm:$0xf] }
 0x352   :  { %5879 = vmatpush.bf16.msra.mxu0 %v8847_v17  ;;  %5463 = vmatpush.bf16.msrb.mxu3 %v8819_v0  ;;  %v5159_v17 = vpop.f32.mrf.mxu3  ;;  %v5252_v3 = vpop.f32.mrf.mxu2  ;;  %v9798_v0 = vld [vmem:[%s14836_s5 + $0x14] sm:$0xf] }
 0x353   :  { %v5160_v52 = vadd.f32 %v5159_v17, %v5147_v56  ;;  %v9841_v56 = vld [vmem:[%s14836_s5 + $0x164] sm:$0xf0] }
 0x354   :  { %5892 = vmatpush.bf16.msra.mxu1 %v8911_v48  ;;  %v8848_v48 = vld [vmem:[%s14836_s5 + $0x18] sm:$0xf0]  ;;  %v9015_v5 = vor.u32 %v9841_v56, %v9014_v6  ;;  %v9830_v6 = vld [vmem:[%s14836_s5 + $0x114] sm:$0xf] }
 0x355   :  { %v5475_v10 = vmax.f32 %v5160_v52, 0.0  ;;  %v8851_v15 = vor.u32 %v9798_v0, %v8848_v48  ;;  %v9829_v48 = vld [vmem:[%s14836_s5 + $0x104] sm:$0xf0]  ;;  %v8976_v56 = vld [vmem:[%s14836_s5 + $0x118] sm:$0xf0] }
 0x356   :  { %5880 = vmatpush.bf16.msra.mxu0 %v8839_v8  ;;  %5464 = vmatpush.bf16.msrb.mxu3 %v8803_v38  ;;  %v5276_v49 = vpop.f32.mrf.mxu0  ;;  %v8736_v8 = vld [vmem:[%s14834_s3 + $0x738] sm:$0xf0]  ;;  %v8931_v38 = vor.u32 %v9818_v13, %v8928_v14  ;;  %v9842_v14 = vld [vmem:[%s14836_s5 + $0x174] sm:$0xf] }
 0x357   :  { %v5277_v22 = vadd.f32 %v5276_v49, %v3773_v1  ;;  %v5479_v4 = vpack.c.bf16 %v5475_v10, %v5475_v10  ;;  %v8739_v24 = vor.u32 %v9769_v34, %v8736_v8  ;;  %v8982_v34 = vld [vmem:[%s14836_s5 + $0x120] sm:$0xf]  ;;  %v9833_v8 = vld [vmem:[%s14836_s5 + $0x124] sm:$0xf0] }
 0x358   :  { %5893 = vmatpush.bf16.msra.mxu1 %v8903_v39  ;;  %v5289_v63 = vpop.f32.mrf.mxu1  ;;  %v8920_v39 = vld [vmem:[%s14836_s5 + $0xa8] sm:$0xf0] }
 0x359   :  { %v14536_v2 = vadd.f32 %v5289_v63, %v5277_v22  ;;  %5881 = vmatmul.bf16.vlgmr.msra.gmra.mxu0 %v5479_v4 }
 0x35a   :  { %5925 = vmatpush.bf16.msrb.mxu0 %v8899_v58  ;;  %5465 = vmatpush.bf16.msrb.mxu3 %v8787_v35  ;;  %v8939_v58 = vor.u32 %v9820_v7, %v8936_v44  ;;  %v5161_v47 = vpop.f32.mrf.mxu3  ;;  %v8843_v35 = vor.u32 %v9796_v28, %v8840_v12 }
 0x35c   :  { %5938 = vmatpush.bf16.msrb.mxu1 %v8963_v29  ;;  %v8923_v29 = vor.u32 %v9816_v26, %v8920_v39  ;;  %v9019_v26 = vor.u32 %v9840_v21, %v9016_v23  ;;  %v3774_v39 = vperm.slane %v14507_v43, 3  ;;  %v9000_v43 = vld [vmem:[%s14836_s5 + $0x148] sm:$0xf0] }
 0x35e   :  { %5926 = vmatpush.bf16.msrb.mxu0 %v8891_v46  ;;  %5466 = vmatpush.bf16.msrb.mxu3 %v8771_v40  ;;  %v5278_v11 = vpop.f32.mrf.mxu0 }
 0x360   :  { %5939 = vmatpush.bf16.msrb.mxu1 %v8955_v20  ;;  %v5291_v46 = vpop.f32.mrf.mxu1  ;;  %v9812_v20 = vld [vmem:[%s14836_s5 + $0x84] sm:$0xf] }
 0x361   :  { %v9024_v46 = vld [vmem:[%s14836_s5 + $0x178] sm:$0xf0] }
 0x362   :  { %5927 = vmatpush.bf16.msrb.mxu0 %v8883_v33  ;;  %5467 = vmatpush.bf16.msrb.mxu3 %v8755_v19  ;;  %v9814_v33 = vld [vmem:[%s14836_s5 + $0x94] sm:$0xf]  ;;  %v5211_v36 = vpop.f32.mrf.mxu3  ;;  %v14614_v49 = vpop.f32.mrf.mxu2  ;;  %v9027_v47 = vor.u32 %v9842_v14, %v9024_v46  ;;  %v9046_v46 = vld [vmem:[%s14836_s5 + $0x1a0] sm:$0xf] }
 0x363   :  { %v8915_v45 = vor.u32 %v9814_v33, %v8912_v31  ;;  %v5212_v1 = vadd.f32 %v5211_v36, %v5199_v50  ;;  %v9836_v31 = vld [vmem:[%s14836_s5 + $0x144] sm:$0xf] }
 0x364   :  { %5940 = vmatpush.bf16.msrb.mxu1 %v8947_v57  ;;  %v9003_v50 = vor.u32 %v9836_v31, %v9000_v43  ;;  %v9856_v31 = vld [vmem:[%s14836_s5 + $0x1e4] sm:$0xf]  ;;  %v9080_v43 = vld [vmem:[%s14836_s5 + $0x1e8] sm:$0xf0] }
 0x365   :  { %v5225_v51 = vadd.f32 %v14356_v16, %v5212_v1  ;;  %v9006_v16 = vld [vmem:[%s14836_s5 + $0x150] sm:$0xf]  ;;  %v9834_v1 = vld [vmem:[%s14836_s5 + $0x134] sm:$0xf] }
 0x366   :  { %5928 = vmatpush.bf16.msrb.mxu0 %v8875_v55  ;;  %5468 = vmatpush.bf16.msrb.mxu3 %v8739_v24  ;;  %v9023_v55 = vor.u32 %v9843_v32, %v9022_v54  ;;  %v9007_v22 = vor.u32 %v9839_v61, %v9006_v16  ;;  %v8966_v24 = vld [vmem:[%s14836_s5 + $0x100] sm:$0xf]  ;;  %v8992_v54 = vld [vmem:[%s14836_s5 + $0x138] sm:$0xf0]  ;;  %v8968_v16 = vld [vmem:[%s14836_s5 + $0x108] sm:$0xf0] }
 0x367   :  { %v5238_v59 = vadd.f32 %v14367_v25, %v5225_v51  ;;  %v8998_v25 = vld [vmem:[%s14836_s5 + $0x140] sm:$0xf]  ;;  %v8967_v13 = vor.u32 %v9829_v48, %v8966_v24  ;;  %v8995_v32 = vor.u32 %v9834_v1, %v8992_v54  ;;  %v9072_v1 = vld [vmem:[%s14836_s5 + $0x1d8] sm:$0xf0] }
 0x368   :  { %5941 = vmatpush.bf16.msrb.mxu1 %v8939_v58  ;;  %5899 = vmatpush.bf16.msra.mxu2 %v9023_v55  ;;  %v8999_v3 = vor.u32 %v9837_v41, %v8998_v25  ;;  %v8983_v58 = vor.u32 %v9833_v8, %v8982_v34  ;;  %v9859_v25 = vld [vmem:[%s14836_s5 + $0x1f4] sm:$0xf0] }
 0x369   :  { %v5251_v42 = vadd.f32 %v14490_v30, %v5238_v59  ;;  %v9835_v30 = vld [vmem:[%s14836_s5 + $0x134] sm:$0xf0]  ;;  %v9828_v59 = vld [vmem:[%s14836_s5 + $0x104] sm:$0xf] }
 0x36a   :  { %5929 = vmatpush.bf16.msrb.mxu0 %v8867_v53  ;;  %5469 = vmatpush.bf16.msrb.mxu3 %v8723_v27  ;;  %v5213_v40 = vpop.f32.mrf.mxu3  ;;  %v5304_v57 = vpop.f32.mrf.mxu2  ;;  %v8991_v10 = vor.u32 %v9835_v30, %v8990_v9  ;;  %v9008_v27 = vld [vmem:[%s14836_s5 + $0x158] sm:$0xf0]  ;;  %v8971_v61 = vor.u32 %v9828_v59, %v8968_v16  ;;  %v9855_v9 = vld [vmem:[%s14836_s5 + $0x1d4] sm:$0xf0]  ;;  %v9846_v16 = vld [vmem:[%s14836_s5 + $0x194] sm:$0xf] }
 0x36c   :  { %5942 = vmatpush.bf16.msrb.mxu1 %v8931_v38  ;;  %5900 = vmatpush.bf16.msra.mxu2 %v9015_v5  ;;  %v8979_v5 = vor.u32 %v9830_v6, %v8976_v56  ;;  %v9056_v6 = vld [vmem:[%s14836_s5 + $0x1b8] sm:$0xf0] }
 0x36d   :  { %5470 = vmatmul.bf16.vlgmr.msrb.gmra.mxu3 %v13674_v18  ;;  %v8904_v18 = vld [vmem:[%s14836_s5 + $0x88] sm:$0xf0] }
 0x36e   :  { %5930 = vmatpush.bf16.msrb.mxu0 %v8859_v60  ;;  %v8907_v37 = vor.u32 %v9812_v20, %v8904_v18  ;;  %v9831_v60 = vld [vmem:[%s14836_s5 + $0x114] sm:$0xf0]  ;;  %v9832_v18 = vld [vmem:[%s14836_s5 + $0x124] sm:$0xf] }
 0x370   :  { %5943 = vmatpush.bf16.msrb.mxu1 %v8923_v29  ;;  %5901 = vmatpush.bf16.msra.mxu2 %v9007_v22  ;;  %v5303_v22 = vadd.f32 %v14614_v49, %v14536_v2  ;;  %v9857_v2 = vld [vmem:[%s14836_s5 + $0x1e4] sm:$0xf0] }
 0x372   :  { %5931 = vmatpush.bf16.msrb.mxu0 %v8851_v15  ;;  %v5263_v52 = vpop.f32.mrf.mxu3  ;;  %v9838_v15 = vld [vmem:[%s14836_s5 + $0x154] sm:$0xf] }
 0x373   :  { %v5264_v53 = vadd.f32 %v5263_v52, %v5251_v42  ;;  %v9011_v28 = vor.u32 %v9838_v15, %v9008_v27  ;;  %v9086_v42 = vld [vmem:[%s14836_s5 + $0x1f0] sm:$0xf]  ;;  %v9078_v52 = vld [vmem:[%s14836_s5 + $0x1e0] sm:$0xf]  ;;  %v9845_v27 = vld [vmem:[%s14836_s5 + $0x184] sm:$0xf0] }
 0x374   :  { %5944 = vmatpush.bf16.msrb.mxu1 %v8915_v45  ;;  %5902 = vmatpush.bf16.msra.mxu2 %v8999_v3  ;;  %v9087_v57 = vor.u32 %v9859_v25, %v9086_v42  ;;  %v9079_v3 = vor.u32 %v9857_v2, %v9078_v52 }
 0x375   :  { %v5476_v62 = vmax.f32 %v5264_v53, 0.0 }
 0x376   :  { %5932 = vmatpush.bf16.msrb.mxu0 %v8843_v35  ;;  %v14623_v63 = vpop.f32.mrf.mxu0  ;;  %5912 = vmatpush.bf16.msra.mxu3 %v9087_v57  ;;  %v9032_v57 = vld [vmem:[%s14836_s5 + $0x188] sm:$0xf0] }
 0x377   :  { %v5480_v19 = vpack.c.bf16 %v5476_v62, %v5476_v62  ;;  %v9070_v62 = vld [vmem:[%s14836_s5 + $0x1d0] sm:$0xf] }
 0x378   :  { %5945 = vmatpush.bf16.msrb.mxu1 %v8907_v37  ;;  %v14625_v17 = vpop.f32.mrf.mxu1  ;;  %5903 = vmatpush.bf16.msra.mxu2 %v8991_v10  ;;  %v8984_v37 = vld [vmem:[%s14836_s5 + $0x128] sm:$0xf0]  ;;  %v9071_v10 = vor.u32 %v9855_v9, %v9070_v62 }
 0x379   :  { %5933 = vmatmul.bf16.vlgmr.msrb.gmra.mxu0 %v5479_v4  ;;  %5894 = vmatmul.bf16.vlgmr.msra.gmra.mxu1 %v5480_v19  ;;  %v8974_v4 = vld [vmem:[%s14836_s5 + $0x110] sm:$0xf]  ;;  %v8987_v51 = vor.u32 %v9832_v18, %v8984_v37 }
 0x37a   :  { %v5265_v0 = vpop.f32.mrf.mxu3  ;;  %v8975_v11 = vor.u32 %v9831_v60, %v8974_v4  ;;  %5913 = vmatpush.bf16.msra.mxu3 %v9079_v3 }
 0x37b   :  { %v9851_v0 = vld [vmem:[%s14836_s5 + $0x1b4] sm:$0xf0] }
 0x37c   :  { %5904 = vmatpush.bf16.msra.mxu2 %v8983_v58 }
 0x37e   :  { %v5330_v7 = vpop.f32.mrf.mxu0  ;;  %5914 = vmatpush.bf16.msra.mxu3 %v9071_v10 }
 0x380   :  { %v5343_v44 = vpop.f32.mrf.mxu1  ;;  %5905 = vmatpush.bf16.msra.mxu2 %v8975_v11 }
 0x381   :  { %v9853_v44 = vld [vmem:[%s14836_s5 + $0x1c4] sm:$0xf0] }
 0x384   :  { %5906 = vmatpush.bf16.msra.mxu2 %v8967_v13 }
 0x387   :  { %v5354_v38 = vpop.f32.mrf.mxu2 }
 0x388   :  { %5951 = vmatpush.bf16.msrb.mxu2 %v9027_v47  ;;  %v9849_v47 = vld [vmem:[%s14836_s5 + $0x1a4] sm:$0xf0] }
 0x389   :  { %5946 = vmatmul.bf16.vlgmr.msrb.gmra.mxu1 %v5480_v19  ;;  %v9047_v21 = vor.u32 %v9849_v47, %v9046_v46 }
 0x38c   :  { %5952 = vmatpush.bf16.msrb.mxu2 %v9019_v26  ;;  %v9847_v26 = vld [vmem:[%s14836_s5 + $0x194] sm:$0xf0] }
 0x38f   :  { %v5356_v45 = vpop.f32.mrf.mxu2 }
 0x390   :  { %5953 = vmatpush.bf16.msrb.mxu2 %v9011_v28  ;;  %v5315_v36 = vpop.f32.mrf.mxu3  ;;  %v9858_v28 = vld [vmem:[%s14836_s5 + $0x1f4] sm:$0xf] }
 0x391   :  { %v5316_v41 = vadd.f32 %v5315_v36, %v5303_v22  ;;  %v9083_v36 = vor.u32 %v9856_v31, %v9080_v43 }
 0x393   :  { %v5329_v49 = vadd.f32 %v14623_v63, %v5316_v41  ;;  %v9062_v63 = vld [vmem:[%s14836_s5 + $0x1c0] sm:$0xf]  ;;  %v9844_v41 = vld [vmem:[%s14836_s5 + $0x184] sm:$0xf] }
 0x394   :  { %5954 = vmatpush.bf16.msrb.mxu2 %v9003_v50  ;;  %v9063_v8 = vor.u32 %v9853_v44, %v9062_v63  ;;  %v9854_v50 = vld [vmem:[%s14836_s5 + $0x1d4] sm:$0xf]  ;;  %v9035_v2 = vor.u32 %v9844_v41, %v9032_v57 }
 0x395   :  { %v5342_v30 = vadd.f32 %v14625_v17, %v5329_v49  ;;  %v9054_v17 = vld [vmem:[%s14836_s5 + $0x1b0] sm:$0xf]  ;;  %v9075_v54 = vor.u32 %v9854_v50, %v9072_v1 }
 0x396   :  { %v5380_v12 = vpop.f32.mrf.mxu0  ;;  %5915 = vmatpush.bf16.msra.mxu3 %v9063_v8  ;;  %v9055_v24 = vor.u32 %v9851_v0, %v9054_v17 }
 0x397   :  { %v5381_v29 = vadd.f32 %v5380_v12, %v3774_v39  ;;  %v5355_v34 = vadd.f32 %v5354_v38, %v5342_v30  ;;  %v9038_v38 = vld [vmem:[%s14836_s5 + $0x190] sm:$0xf]  ;;  %v9030_v39 = vld [vmem:[%s14836_s5 + $0x180] sm:$0xf]  ;;  %v9088_v12 = vld [vmem:[%s14836_s5 + $0x1f8] sm:$0xf0] }
 0x398   :  { %v5393_v33 = vpop.f32.mrf.mxu1  ;;  %5955 = vmatpush.bf16.msrb.mxu2 %v8995_v32  ;;  %v5317_v40 = vpop.f32.mrf.mxu3  ;;  %v9039_v15 = vor.u32 %v9847_v26, %v9038_v38  ;;  %v9852_v32 = vld [vmem:[%s14836_s5 + $0x1c4] sm:$0xf]  ;;  %v14_v38 = vstv %s14838_s8 }
 0x399   :  { %v14683_v35 = vadd.f32 %v5393_v33, %v5381_v29  ;;  %v9031_v29 = vor.u32 %v9845_v27, %v9030_v39  ;;  %v9091_v33 = vor.u32 %v9858_v28, %v9088_v12  ;;  %v9848_v40 = vld [vmem:[%s14836_s5 + $0x1a4] sm:$0xf]  ;;  %15 = vst [vmem:[#allocation2] sm:$0x1] %v14_v38  ;;  %v5979_v27 = vld [vmem:[%s14839_s7] sm:$0x3] }
 0x39a   :  { %5916 = vmatpush.bf16.msra.mxu3 %v9055_v24  ;;  %v5981_v31 = vperm.slane %v5979_v27, 0  ;;  %v5982_v43 = vperm.slane %v5979_v27, 1 }
 0x39c   :  { %5956 = vmatpush.bf16.msrb.mxu2 %v8987_v51  ;;  %v9850_v51 = vld [vmem:[%s14836_s5 + $0x1b4] sm:$0xf] }
 0x39d   :  { %v9059_v56 = vor.u32 %v9850_v51, %v9056_v6 }
 0x39e   :  { %v5382_v20 = vpop.f32.mrf.mxu0  ;;  %5917 = vmatpush.bf16.msra.mxu3 %v9047_v21 }
 0x39f   :  { %v9064_v20 = vld [vmem:[%s14836_s5 + $0x1c8] sm:$0xf0] }
 0x3a0   :  { %v5395_v55 = vpop.f32.mrf.mxu1  ;;  %5957 = vmatpush.bf16.msrb.mxu2 %v8979_v5  ;;  %v9048_v5 = vld [vmem:[%s14836_s5 + $0x1a8] sm:$0xf0] }
 0x3a1   :  { %v9067_v55 = vor.u32 %v9852_v32, %v9064_v20  ;;  %v9051_v59 = vor.u32 %v9848_v40, %v9048_v5  ;;  %v9860_v32 = vld [vmem:[#allocation2] ss:$0 sm:$0xff] }
 0x3a2   :  { %5918 = vmatpush.bf16.msra.mxu3 %v9039_v15 }
 0x3a4   :  { %5958 = vmatpush.bf16.msrb.mxu2 %v8971_v61  ;;  %v9040_v61 = vld [vmem:[%s14836_s5 + $0x198] sm:$0xf0] }
 0x3a5   :  { %v9043_v42 = vor.u32 %v9846_v16, %v9040_v61 }
 0x3a6   :  { %5919 = vmatpush.bf16.msra.mxu3 %v9031_v29 }
 0x3aa   :  { %v14724_v53 = vpop.f32.mrf.mxu2  ;;  %5964 = vmatpush.bf16.msrb.mxu3 %v9091_v33 }
 0x3ab   :  { %v5407_v52 = vadd.f32 %v14724_v53, %v14683_v35 }
 0x3ae   :  { %5965 = vmatpush.bf16.msrb.mxu3 %v9083_v36 }
 0x3b0   :  { %v5367_v58 = vpop.f32.mrf.mxu3 }
 0x3b1   :  { %v5368_v60 = vadd.f32 %v5367_v58, %v5355_v34  ;;  %v5547_v58 = vld [vmem:[%s14837_s6] sm:$0x3] }
 0x3b2   :  { %v5408_v4 = vpop.f32.mrf.mxu2  ;;  %5966 = vmatpush.bf16.msrb.mxu3 %v9075_v54 }
 0x3b3   :  { %v5477_v11 = vmax.f32 %v5368_v60, 0.0  ;;  %v5549_v4 = vperm.slane %v5547_v58, 0 }
 0x3b5   :  { %v5481_v48 = vpack.c.bf16 %v5477_v11, %v5477_v11 }
 0x3b6   :  { %v14733_v19 = vpop.f32.mrf.mxu0  ;;  %5967 = vmatpush.bf16.msrb.mxu3 %v9067_v55 }
 0x3b7   :  { %5907 = vmatmul.bf16.vlgmr.msra.gmra.mxu2 %v5481_v48 }
 0x3b8   :  { %v14735_v7 = vpop.f32.mrf.mxu1  ;;  %v5369_v23 = vpop.f32.mrf.mxu3 }
 0x3ba   :  { %5968 = vmatpush.bf16.msrb.mxu3 %v9059_v56 }
 0x3be   :  { %v5434_v13 = vpop.f32.mrf.mxu0  ;;  %5969 = vmatpush.bf16.msrb.mxu3 %v9051_v59 }
 0x3c0   :  { %v5447_v14 = vpop.f32.mrf.mxu1 }
 0x3c2   :  { %5970 = vmatpush.bf16.msrb.mxu3 %v9043_v42 }
 0x3c6   :  { %5971 = vmatpush.bf16.msrb.mxu3 %v9035_v2 }
 0x3c7   :  { %5959 = vmatmul.bf16.vlgmr.msrb.gmra.mxu2 %v5481_v48 }
 0x3ca   :  { %v5458_v45 = vpop.f32.mrf.mxu2 }
 0x3d0   :  { %v5419_v18 = vpop.f32.mrf.mxu3 }
 0x3d1   :  { %v5420_v49 = vadd.f32 %v5419_v18, %v5407_v52 }
 0x3d2   :  { %v5460_v37 = vpop.f32.mrf.mxu2 }
 0x3d3   :  { %v5433_v3 = vadd.f32 %v14733_v19, %v5420_v49 }
 0x3d5   :  { %v5446_v9 = vadd.f32 %v14735_v7, %v5433_v3  ;;  %v5550_v7 = vperm.slane %v5547_v58, 1 }
 0x3d6   :  { %v5882_v25 = vpop.f32.mrf.mxu0 }
 0x3d7   :  { %v5459_v30 = vadd.f32 %v5458_v45, %v5446_v9  ;;  %v5883_v60 = vadd.f32 %v5882_v25, %v5549_v4 }
 0x3d8   :  { %v5421_v22 = vpop.f32.mrf.mxu3 }
 0x3de   :  { %v5884_v62 = vpop.f32.mrf.mxu0 }
 0x3f0   :  { %v5471_v63 = vpop.f32.mrf.mxu3 }
 0x3f1   :  { %v5472_v44 = vadd.f32 %v5471_v63, %v5459_v30 }
 0x3f3   :  { %v5478_v34 = vmax.f32 %v5472_v44, 0.0 }
 0x3f5   :  { %v5482_v8 = vpack.c.bf16 %v5478_v34, %v5478_v34 }
 0x3f6   :  { %v5934_v10 = vpop.f32.mrf.mxu0  ;;  %v5895_v17 = vpop.f32.mrf.mxu1 }
 0x3f7   :  { %5920 = vmatmul.bf16.vlgmr.msra.gmra.mxu3 %v5482_v8  ;;  %v5896_v19 = vadd.f32 %v5895_v17, %v5883_v60  ;;  %v5935_v11 = vadd.f32 %v5934_v10, %v5550_v7 }
 0x3f8   :  { %v5473_v53 = vpop.f32.mrf.mxu3 }
 0x3fe   :  { %v5936_v35 = vpop.f32.mrf.mxu0  ;;  %v5897_v0 = vpop.f32.mrf.mxu1 }
 0x406   :  { %v5947_v24 = vpop.f32.mrf.mxu1 }
 0x407   :  { %5972 = vmatmul.bf16.vlgmr.msrb.gmra.mxu3 %v5482_v8  ;;  %v5948_v48 = vadd.f32 %v5947_v24, %v5935_v11 }
 0x40e   :  { %v5949_v13 = vpop.f32.mrf.mxu1 }
 0x43a   :  { %v5908_v14 = vpop.f32.mrf.mxu2 }
 0x43b   :  { %v5909_v46 = vadd.f32 %v5908_v14, %v5896_v19 }
 0x442   :  { %v5910_v47 = vpop.f32.mrf.mxu2 }
 0x44a   :  { %v5960_v21 = vpop.f32.mrf.mxu2 }
 0x44b   :  { %v5961_v28 = vadd.f32 %v5960_v21, %v5948_v48 }
 0x452   :  { %v5962_v23 = vpop.f32.mrf.mxu2 }
 0x47a   :  { %v5921_v26 = vpop.f32.mrf.mxu3 }
 0x47b   :  { %v5922_v15 = vadd.f32 %v5921_v26, %v5909_v46 }
 0x47d   :  { %v5977_v29 = vmax.f32 %v5922_v15, 0.0 }
 0x47f   :  { %v5985_v45 = vmul.f32 %v5981_v31, %v5977_v29 }
 0x482   :  { %v5923_v39 = vpop.f32.mrf.mxu3 }
 0x48a   :  { %v5973_v12 = vpop.f32.mrf.mxu3 }
 0x48b   :  { %v5974_v33 = vadd.f32 %v5973_v12, %v5961_v28 }
 0x48d   :  { %v5978_v36 = vmax.f32 %v5974_v33, 0.0 }
 0x48f   :  { %v5986_v50 = vmul.f32 %v5982_v43, %v5978_v36 }
 0x491   :  { %v5987_v1 = vadd.f32 %v5986_v50, %v5985_v45 }
 0x492   :  { %v5975_v54 = vpop.f32.mrf.mxu3 }
 0x493   :  { %5988 = vadd.xlane.f32.xlu0 %v5987_v1 }
 0x506   :  { %v5989_v20 = vpop.xlane.xlu0 %5988 }
 0x507   :  { %v5994_v55 = vadd.f32 %v9860_v32, %v5989_v20 }
 0x509   :  { %v5995_v18 = vsub.f32 0.0, %v5994_v55 }
 0x50b   :  { %v5996_v37 = vmul.f32 1.442695, %v5995_v18 }
 0x50d   :  { %9861 = vpow2.f32 %v5996_v37 }
 0x513   :  { %v9862_v51 = vpop.eup %9861 }
 0x514   :  { %v5998_v6 = vadd.f32 1.0, %v9862_v51 }
 0x516   :  { %9863 = vrcp.f32 %v5998_v6  ;;  %v6010_v59 = vand.u32 2147483648, %v5998_v6  ;;  %v6008_v61 = vand.u32 2147483647, %v5998_v6  ;;  %vm6004_vm1 = vweird.f32 %v5998_v6 }
 0x518   :  { %v6011_v42 = vor.u32 1.1754944e-38, %v6010_v59  ;;  %vm6009_vm4 = vcmp.eq.f32.partialorder %v6008_v61, 8.507059e+37 }
 0x51c   :  { %v9864_v56 = vpop.eup %9863 }
 0x51d   :  { %v6000_v40 = vmul.f32 %v9864_v56, %v5998_v6  ;;  %vm6005_vm0 = vweird.f32 %v9864_v56 }
 0x51e   :  { %vm6006_vm2 = vmor %vm6004_vm1, %vm6005_vm0 }
 0x51f   :  { %v6001_v5 = vsub.f32 1.0, %v6000_v40 }
 0x521   :  { %v6002_v16 = vmul.f32 %v9864_v56, %v6001_v5 }
 0x523   :  { %v6003_v22 = vadd.f32 %v9864_v56, %v6002_v16 }
 0x525   :  { %v6007_v25 = vsel %vm6006_vm2, %v9864_v56, %v6003_v22 }
 0x526   :  { %v6012_v41 = vsel %vm6009_vm4, %v6011_v42, %v6007_v25 }
 0x527   :  { %6015 = vst.msk [vmem:[%s14840_s9] sm:$0xff] %vm6014_vm3, %v6012_v41 }

</bundles_post_ra>
